<compile_context>
chip_gen: v7x
topology: tpu7x:2x2x1
jax: 0.10.0
libtpu: 0.0.40
codegen_flags: <defaults>
</compile_context>

<pallas_src>
import jax
import jax.numpy as jnp
from jax.experimental import pallas as pl
from jax.experimental.pallas import tpu as pltpu

H = W = 28
PH = PW = 14                 # pooled spatial
C_OUT = 32
TAPS = 9                     # 3x3 kernel
HIDDEN = 128
NCLASS = 10
FLAT = C_OUT * PH * PW       # 6272
BIG = 4 * C_OUT              # 128 = 4 "r" slots x 32 channels (lane-dense)
ROWS = PH * PW // 4          # 49 rows per image in the folded layout
TB = 8                       # images per grid step (both kernels)
HIGHEST = jax.lax.Precision.HIGHEST   # reference only


# ---------------- Pallas kernels ----------------

def conv_pool_kernel(c00_ref, c01_ref, c10_ref, c11_ref, w_ref, b_ref, o_ref):
    # c*_ref: (TB*49, 36) f32 patches for one of the 4 pool offsets
    #         row = b*49 + q, col = r*9 + (ky*3+kx), spatial pixel s = 4*q + r
    # w_ref : (36, 128) bf16 block-diagonal conv weight (4 diagonal copies of (9,32))
    # b_ref : (1, 128) f32 bias tiled 4x
    # o_ref : (TB*49, 128) f32 pooled activation; col r*32+c == (pixel s=4q+r, channel c)
    w = w_ref[...]
    acc = jnp.dot(c00_ref[...].astype(jnp.bfloat16), w,
                  preferred_element_type=jnp.float32)
    for c_ref in (c01_ref, c10_ref, c11_ref):
        acc = jnp.maximum(
            acc, jnp.dot(c_ref[...].astype(jnp.bfloat16), w,
                         preferred_element_type=jnp.float32))
    # max-then-(bias, relu) == maxpool(relu(conv + bias)) since bias is shared and relu monotone
    o_ref[...] = jnp.maximum(acc + b_ref[...], 0.0)


def mlp_kernel(x_ref, w1_ref, b1_ref, w2_ref, b2_ref, o_ref):
    # x: (TB, 6272) f32   w1: (6272, 128) bf16   w2: (128, 10) bf16
    h = jnp.dot(x_ref[...].astype(jnp.bfloat16), w1_ref[...],
                preferred_element_type=jnp.float32) + b1_ref[...]
    h = jnp.maximum(h, 0.0)
    o_ref[...] = jnp.dot(h.astype(jnp.bfloat16), w2_ref[...],
                         preferred_element_type=jnp.float32) + b2_ref[...]


# ---------------- one-time parameter preparation (hoisted out of forward) ----------------

def prepare_params(params):
    conv_w, conv_b, fc1_w, fc1_b, fc2_w, fc2_b = params
    w_taps = jnp.transpose(conv_w.reshape(C_OUT, TAPS))              # (9, 32), tap = ky*3+kx
    w_big = jnp.kron(jnp.eye(4, dtype=w_taps.dtype), w_taps)         # (36, 128) block-diagonal
    b_big = jnp.tile(conv_b, 4).reshape(1, BIG)                      # (1, 128)
    # fc1 consumes the conv kernel's (spatial, channel) flatten instead of torch's (C,H,W)
    w1 = jnp.transpose(fc1_w.reshape(HIDDEN, C_OUT, PH * PW), (2, 1, 0)).reshape(FLAT, HIDDEN)
    return (w_big.astype(jnp.bfloat16), b_big,
            w1.astype(jnp.bfloat16), fc1_b.reshape(1, HIDDEN),
            jnp.transpose(fc2_w).astype(jnp.bfloat16), fc2_b.reshape(1, NCLASS))


# ---------------- wrapper (index plumbing only) ----------------

def _pool_offset_patches(xpad, dy, dx):
    # xpad: (B, 30, 30) -> (B*49, 36): row b*49+q, col r*9 + (ky*3+kx) holds
    # xpad[b, 2*(4q+r)//14*... ] i.e. the 3x3 patch at conv pixel (2i+dy, 2j+dx), s=i*14+j=4q+r.
    # Built purely from static strided slices, no gather.
    taps = [xpad[:, dy + ky: dy + ky + 27: 2, dx + kx: dx + kx + 27: 2]
            for ky in range(3) for kx in range(3)]                   # 9 x (B, 14, 14)
    cols = jnp.stack(taps, axis=-1)                                  # (B, 14, 14, 9)
    return cols.reshape(xpad.shape[0] * ROWS, 4 * TAPS)              # free row-major reshape


def mnist_cnn_forward(x, prep):
    w_big, b_big, w1, b1, w2, b2 = prep
    B = x.shape[0]
    Bp = ((B + TB - 1) // TB) * TB
    if Bp != B:
        x = jnp.pad(x, ((0, Bp - B), (0, 0), (0, 0), (0, 0)))
    xpad = jnp.pad(x[:, 0], ((0, 0), (1, 1), (1, 1)))                # (Bp, 30, 30)
    cols = [_pool_offset_patches(xpad, dy, dx) for dy in (0, 1) for dx in (0, 1)]

    pooled = pl.pallas_call(
        conv_pool_kernel,
        out_shape=jax.ShapeDtypeStruct((Bp * ROWS, BIG), jnp.float32),
        grid=(Bp // TB,),
        in_specs=[pl.BlockSpec((TB * ROWS, 4 * TAPS), lambda i: (i, 0))] * 4 + [
            pl.BlockSpec((4 * TAPS, BIG), lambda i: (0, 0)),
            pl.BlockSpec((1, BIG), lambda i: (0, 0)),
        ],
        out_specs=pl.BlockSpec((TB * ROWS, BIG), lambda i: (i, 0)),
        compiler_params=pltpu.CompilerParams(dimension_semantics=("parallel",)),
    )(*cols, w_big, b_big)                                           # (Bp*49, 128)

    # already (spatial, channel)-flattened per image -> pure reshape, no transpose
    flat = pooled.reshape(Bp, FLAT)

    out = pl.pallas_call(
        mlp_kernel,
        out_shape=jax.ShapeDtypeStruct((Bp, NCLASS), jnp.float32),
        grid=(Bp // TB,),
        in_specs=[
            pl.BlockSpec((TB, FLAT), lambda i: (i, 0)),
            pl.BlockSpec((FLAT, HIDDEN), lambda i: (0, 0)),          # weights stay resident
            pl.BlockSpec((1, HIDDEN), lambda i: (0, 0)),
            pl.BlockSpec((HIDDEN, NCLASS), lambda i: (0, 0)),
            pl.BlockSpec((1, NCLASS), lambda i: (0, 0)),
        ],
        out_specs=pl.BlockSpec((TB, NCLASS), lambda i: (i, 0)),
        compiler_params=pltpu.CompilerParams(dimension_semantics=("parallel",)),
    )(flat, w1, b1, w2, b2)
    return out[:B]


# ---------------- deterministic params & reference ----------------

def init_params(key):
    ks = jax.random.split(key, 6)
    conv_w = jax.random.normal(ks[0], (C_OUT, 1, 3, 3), jnp.float32) * 0.3
    conv_b = jax.random.normal(ks[1], (C_OUT,), jnp.float32) * 0.1
    fc1_w = jax.random.normal(ks[2], (HIDDEN, FLAT), jnp.float32) * 0.0126
    fc1_b = jax.random.normal(ks[3], (HIDDEN,), jnp.float32) * 0.01
    fc2_w = jax.random.normal(ks[4], (NCLASS, HIDDEN), jnp.float32) * 0.088
    fc2_b = jax.random.normal(ks[5], (NCLASS,), jnp.float32) * 0.01
    return (conv_w, conv_b, fc1_w, fc1_b, fc2_w, fc2_b)


def reference_forward(x, params):
    conv_w, conv_b, fc1_w, fc1_b, fc2_w, fc2_b = params
    conv = jax.lax.conv_general_dilated(
        x, conv_w, window_strides=(1, 1), padding=((1, 1), (1, 1)),
        dimension_numbers=("NCHW", "OIHW", "NCHW"), precision=HIGHEST)
    conv = jnp.maximum(conv + conv_b[None, :, None, None], 0.0)
    pooled = jax.lax.reduce_window(conv, -jnp.inf, jax.lax.max,
                                   (1, 1, 2, 2), (1, 1, 2, 2), "VALID")
    flat = pooled.reshape(x.shape[0], -1)
    h = jnp.maximum(jnp.dot(flat, fc1_w.T, precision=HIGHEST) + fc1_b, 0.0)
    return jnp.dot(h, fc2_w.T, precision=HIGHEST) + fc2_b


if __name__ == "__main__":
    key = jax.random.PRNGKey(0)
    kx, kp = jax.random.split(key)
    B = 12                                                   # exercises batch padding + 2 grid steps
    x = jax.random.normal(kx, (B, 1, 28, 28), jnp.float32)   # MNIST-shaped NCHW input
    params = init_params(kp)
    prep = prepare_params(params)                            # one-time param prep (not per-forward)

    fwd = jax.jit(mnist_cnn_forward)
    out = jax.block_until_ready(fwd(x, prep))

    ref = reference_forward(x, params)
    assert out.shape == (B, NCLASS)
    max_err = float(jnp.max(jnp.abs(out - ref)))
    # bf16 single-pass MXU vs f32 HIGHEST reference -> allow bf16-level tolerance
    assert jnp.allclose(out, ref, atol=2e-2, rtol=2e-2), max_err
    print("KERNEL_OK")
</pallas_src>

<mosaic_0001>
module attributes {stable_mosaic.version = 11 : i64} {
  func.func @conv_pool_kernel(%arg0: i32, %arg1: memref<392x36xf32, #tpu.memory_space<vmem>>, %arg2: memref<392x36xf32, #tpu.memory_space<vmem>>, %arg3: memref<392x36xf32, #tpu.memory_space<vmem>>, %arg4: memref<392x36xf32, #tpu.memory_space<vmem>>, %arg5: memref<36x128xbf16, #tpu.memory_space<vmem>>, %arg6: memref<1x128xf32, #tpu.memory_space<vmem>>, %arg7: memref<392x128xf32, #tpu.memory_space<vmem>>) attributes {dimension_semantics = [#tpu.dimension_semantics<parallel>], iteration_bounds = array<i64: 2>, scalar_prefetch = 0 : i64, scratch_operands = 0 : i64, tpu.core_type = #tpu.core_type<tc>, window_params = [{transform_indices = @transform_0, window_bounds = array<i64: 392, 36>}, {transform_indices = @transform_1, window_bounds = array<i64: 392, 36>}, {transform_indices = @transform_2, window_bounds = array<i64: 392, 36>}, {transform_indices = @transform_3, window_bounds = array<i64: 392, 36>}, {pipeline_mode = #tpu.pipeline_mode<synchronous>, transform_indices = @transform_4, window_bounds = array<i64: 36, 128>}, {pipeline_mode = #tpu.pipeline_mode<synchronous>, transform_indices = @transform_5, window_bounds = array<i64: 1, 128>}, {transform_indices = @transform_6, window_bounds = array<i64: 392, 128>}]} {
    %c0 = arith.constant 0 : index
    %c0_0 = arith.constant 0 : index
    %0 = vector.load %arg5[%c0, %c0_0] : memref<36x128xbf16, #tpu.memory_space<vmem>>, vector<36x128xbf16>
    %c0_1 = arith.constant 0 : index
    %c0_2 = arith.constant 0 : index
    %1 = vector.load %arg1[%c0_1, %c0_2] : memref<392x36xf32, #tpu.memory_space<vmem>>, vector<392x36xf32>
    %2 = arith.truncf %1 : vector<392x36xf32> to vector<392x36xbf16>
    %cst = arith.constant dense<0.000000e+00> : vector<392x128xf32>
    %3 = tpu.matmul %2, %0, %cst {dimension_numbers = #tpu.dot_dimension_numbers<[1], [0], [0], [1], [0, 0, 1, 1], [], []>} : vector<392x36xbf16>, vector<36x128xbf16>, vector<392x128xf32> -> vector<392x128xf32>
    %c0_3 = arith.constant 0 : index
    %c0_4 = arith.constant 0 : index
    %4 = vector.load %arg2[%c0_3, %c0_4] : memref<392x36xf32, #tpu.memory_space<vmem>>, vector<392x36xf32>
    %5 = arith.truncf %4 : vector<392x36xf32> to vector<392x36xbf16>
    %cst_5 = arith.constant dense<0.000000e+00> : vector<392x128xf32>
    %6 = tpu.matmul %5, %0, %cst_5 {dimension_numbers = #tpu.dot_dimension_numbers<[1], [0], [0], [1], [0, 0, 1, 1], [], []>} : vector<392x36xbf16>, vector<36x128xbf16>, vector<392x128xf32> -> vector<392x128xf32>
    %7 = arith.maximumf %3, %6 : vector<392x128xf32>
    %c0_6 = arith.constant 0 : index
    %c0_7 = arith.constant 0 : index
    %8 = vector.load %arg3[%c0_6, %c0_7] : memref<392x36xf32, #tpu.memory_space<vmem>>, vector<392x36xf32>
    %9 = arith.truncf %8 : vector<392x36xf32> to vector<392x36xbf16>
    %cst_8 = arith.constant dense<0.000000e+00> : vector<392x128xf32>
    %10 = tpu.matmul %9, %0, %cst_8 {dimension_numbers = #tpu.dot_dimension_numbers<[1], [0], [0], [1], [0, 0, 1, 1], [], []>} : vector<392x36xbf16>, vector<36x128xbf16>, vector<392x128xf32> -> vector<392x128xf32>
    %11 = arith.maximumf %7, %10 : vector<392x128xf32>
    %c0_9 = arith.constant 0 : index
    %c0_10 = arith.constant 0 : index
    %12 = vector.load %arg4[%c0_9, %c0_10] : memref<392x36xf32, #tpu.memory_space<vmem>>, vector<392x36xf32>
    %13 = arith.truncf %12 : vector<392x36xf32> to vector<392x36xbf16>
    %cst_11 = arith.constant dense<0.000000e+00> : vector<392x128xf32>
    %14 = tpu.matmul %13, %0, %cst_11 {dimension_numbers = #tpu.dot_dimension_numbers<[1], [0], [0], [1], [0, 0, 1, 1], [], []>} : vector<392x36xbf16>, vector<36x128xbf16>, vector<392x128xf32> -> vector<392x128xf32>
    %15 = arith.maximumf %11, %14 : vector<392x128xf32>
    %c0_12 = arith.constant 0 : index
    %c0_13 = arith.constant 0 : index
    %16 = vector.load %arg6[%c0_12, %c0_13] : memref<1x128xf32, #tpu.memory_space<vmem>>, vector<1x128xf32>
    %17 = vector.broadcast %16 : vector<1x128xf32> to vector<392x128xf32>
    %18 = arith.addf %15, %17 : vector<392x128xf32>
    %cst_14 = arith.constant 0.000000e+00 : f32
    %19 = vector.broadcast %cst_14 : f32 to vector<392x128xf32>
    %20 = arith.maximumf %18, %19 : vector<392x128xf32>
    %c0_15 = arith.constant 0 : index
    %c0_16 = arith.constant 0 : index
    %21 = vector.load %arg7[%c0_15, %c0_16] : memref<392x128xf32, #tpu.memory_space<vmem>>, vector<392x128xf32>
    tpu.vector_store %arg7[%c0_15, %c0_16], %20 {strides = array<i32>} : memref<392x128xf32, #tpu.memory_space<vmem>>, vector<392x128xf32>,
    return
  }
  func.func @transform_0(%arg0: i32) -> (i32, i32) {
    %c0_i32 = arith.constant 0 : i32
    %c0_i32_0 = arith.constant 0 : i32
    return %arg0, %c0_i32 : i32, i32
  }
  func.func @transform_1(%arg0: i32) -> (i32, i32) {
    %c0_i32 = arith.constant 0 : i32
    %c0_i32_0 = arith.constant 0 : i32
    return %arg0, %c0_i32 : i32, i32
  }
  func.func @transform_2(%arg0: i32) -> (i32, i32) {
    %c0_i32 = arith.constant 0 : i32
    %c0_i32_0 = arith.constant 0 : i32
    return %arg0, %c0_i32 : i32, i32
  }
  func.func @transform_3(%arg0: i32) -> (i32, i32) {
    %c0_i32 = arith.constant 0 : i32
    %c0_i32_0 = arith.constant 0 : i32
    return %arg0, %c0_i32 : i32, i32
  }
  func.func @transform_4(%arg0: i32) -> (i32, i32) {
    %c0_i32 = arith.constant 0 : i32
    %c0_i32_0 = arith.constant 0 : i32
    %c0_i32_1 = arith.constant 0 : i32
    return %c0_i32, %c0_i32_0 : i32, i32
  }
  func.func @transform_5(%arg0: i32) -> (i32, i32) {
    %c0_i32 = arith.constant 0 : i32
    %c0_i32_0 = arith.constant 0 : i32
    %c0_i32_1 = arith.constant 0 : i32
    return %c0_i32, %c0_i32_0 : i32, i32
  }
  func.func @transform_6(%arg0: i32) -> (i32, i32) {
    %c0_i32 = arith.constant 0 : i32
    %c0_i32_0 = arith.constant 0 : i32
    return %arg0, %c0_i32 : i32, i32
  }
}

module attributes {stable_mosaic.version = 11 : i64} {
  func.func @mlp_kernel(%arg0: i32, %arg1: memref<8x6272xf32, #tpu.memory_space<vmem>>, %arg2: memref<6272x128xbf16, #tpu.memory_space<vmem>>, %arg3: memref<1x128xf32, #tpu.memory_space<vmem>>, %arg4: memref<128x10xbf16, #tpu.memory_space<vmem>>, %arg5: memref<1x10xf32, #tpu.memory_space<vmem>>, %arg6: memref<8x10xf32, #tpu.memory_space<vmem>>) attributes {dimension_semantics = [#tpu.dimension_semantics<parallel>], iteration_bounds = array<i64: 2>, scalar_prefetch = 0 : i64, scratch_operands = 0 : i64, tpu.core_type = #tpu.core_type<tc>, window_params = [{transform_indices = @transform_0, window_bounds = array<i64: 8, 6272>}, {pipeline_mode = #tpu.pipeline_mode<synchronous>, transform_indices = @transform_1, window_bounds = array<i64: 6272, 128>}, {pipeline_mode = #tpu.pipeline_mode<synchronous>, transform_indices = @transform_2, window_bounds = array<i64: 1, 128>}, {pipeline_mode = #tpu.pipeline_mode<synchronous>, transform_indices = @transform_3, window_bounds = array<i64: 128, 10>}, {pipeline_mode = #tpu.pipeline_mode<synchronous>, transform_indices = @transform_4, window_bounds = array<i64: 1, 10>}, {transform_indices = @transform_5, window_bounds = array<i64: 8, 10>}]} {
    %c0 = arith.constant 0 : index
    %c0_0 = arith.constant 0 : index
    %0 = vector.load %arg1[%c0, %c0_0] : memref<8x6272xf32, #tpu.memory_space<vmem>>, vector<8x6272xf32>
    %1 = arith.truncf %0 : vector<8x6272xf32> to vector<8x6272xbf16>
    %c0_1 = arith.constant 0 : index
    %c0_2 = arith.constant 0 : index
    %2 = vector.load %arg2[%c0_1, %c0_2] : memref<6272x128xbf16, #tpu.memory_space<vmem>>, vector<6272x128xbf16>
    %cst = arith.constant dense<0.000000e+00> : vector<8x128xf32>
    %3 = tpu.matmul %1, %2, %cst {dimension_numbers = #tpu.dot_dimension_numbers<[1], [0], [0], [1], [0, 0, 1, 1], [], []>} : vector<8x6272xbf16>, vector<6272x128xbf16>, vector<8x128xf32> -> vector<8x128xf32>
    %c0_3 = arith.constant 0 : index
    %c0_4 = arith.constant 0 : index
    %4 = vector.load %arg3[%c0_3, %c0_4] : memref<1x128xf32, #tpu.memory_space<vmem>>, vector<1x128xf32>
    %5 = vector.broadcast %4 : vector<1x128xf32> to vector<8x128xf32>
    %6 = arith.addf %3, %5 : vector<8x128xf32>
    %cst_5 = arith.constant 0.000000e+00 : f32
    %7 = vector.broadcast %cst_5 : f32 to vector<8x128xf32>
    %8 = arith.maximumf %6, %7 : vector<8x128xf32>
    %9 = arith.truncf %8 : vector<8x128xf32> to vector<8x128xbf16>
    %c0_6 = arith.constant 0 : index
    %c0_7 = arith.constant 0 : index
    %10 = vector.load %arg4[%c0_6, %c0_7] : memref<128x10xbf16, #tpu.memory_space<vmem>>, vector<128x10xbf16>
    %cst_8 = arith.constant dense<0.000000e+00> : vector<8x10xf32>
    %11 = tpu.matmul %9, %10, %cst_8 {dimension_numbers = #tpu.dot_dimension_numbers<[1], [0], [0], [1], [0, 0, 1, 1], [], []>} : vector<8x128xbf16>, vector<128x10xbf16>, vector<8x10xf32> -> vector<8x10xf32>
    %c0_9 = arith.constant 0 : index
    %c0_10 = arith.constant 0 : index
    %12 = vector.load %arg5[%c0_9, %c0_10] : memref<1x10xf32, #tpu.memory_space<vmem>>, vector<1x10xf32>
    %13 = vector.broadcast %12 : vector<1x10xf32> to vector<8x10xf32>
    %14 = arith.addf %11, %13 : vector<8x10xf32>
    %c0_11 = arith.constant 0 : index
    %c0_12 = arith.constant 0 : index
    %15 = vector.load %arg6[%c0_11, %c0_12] : memref<8x10xf32, #tpu.memory_space<vmem>>, vector<8x10xf32>
    tpu.vector_store %arg6[%c0_11, %c0_12], %14 {strides = array<i32>} : memref<8x10xf32, #tpu.memory_space<vmem>>, vector<8x10xf32>,
    return
  }
  func.func @transform_0(%arg0: i32) -> (i32, i32) {
    %c0_i32 = arith.constant 0 : i32
    %c0_i32_0 = arith.constant 0 : i32
    return %arg0, %c0_i32 : i32, i32
  }
  func.func @transform_1(%arg0: i32) -> (i32, i32) {
    %c0_i32 = arith.constant 0 : i32
    %c0_i32_0 = arith.constant 0 : i32
    %c0_i32_1 = arith.constant 0 : i32
    return %c0_i32, %c0_i32_0 : i32, i32
  }
  func.func @transform_2(%arg0: i32) -> (i32, i32) {
    %c0_i32 = arith.constant 0 : i32
    %c0_i32_0 = arith.constant 0 : i32
    %c0_i32_1 = arith.constant 0 : i32
    return %c0_i32, %c0_i32_0 : i32, i32
  }
  func.func @transform_3(%arg0: i32) -> (i32, i32) {
    %c0_i32 = arith.constant 0 : i32
    %c0_i32_0 = arith.constant 0 : i32
    %c0_i32_1 = arith.constant 0 : i32
    return %c0_i32, %c0_i32_0 : i32, i32
  }
  func.func @transform_4(%arg0: i32) -> (i32, i32) {
    %c0_i32 = arith.constant 0 : i32
    %c0_i32_0 = arith.constant 0 : i32
    %c0_i32_1 = arith.constant 0 : i32
    return %c0_i32, %c0_i32_0 : i32, i32
  }
  func.func @transform_5(%arg0: i32) -> (i32, i32) {
    %c0_i32 = arith.constant 0 : i32
    %c0_i32_0 = arith.constant 0 : i32
    return %arg0, %c0_i32 : i32, i32
  }
}

</mosaic_0001>

<bundles_post_ra>
// kernel: mnist_cnn_forward.2
= control target key start
LH: loop header
LB: loop body
LE: loop exit
PB: predicated region body
PF: predicated region fallthrough
CT: control target
= control target key end

     0   :  { %s2974_s21 = smov 0   ;;  %s4078_s0 = inlined_call_operand.vmem [shape: f32[784,36], index: 0, kind: input, shape index: {}]   ;;  %s4079_s1 = inlined_call_operand.vmem [shape: f32[784,36], index: 1, kind: input, shape index: {}]   ;;  %s4080_s2 = inlined_call_operand.vmem [shape: f32[784,36], index: 2, kind: input, shape index: {}]   ;;  %s4081_s3 = inlined_call_operand.vmem [shape: f32[784,36], index: 3, kind: input, shape index: {}]   ;;  %s4082_s4 = inlined_call_operand.vmem [shape: bf16[36,128], index: 4, kind: input, shape index: {}]   ;;  %s4083_s5 = inlined_call_operand.vmem [shape: f32[1,128], index: 5, kind: input, shape index: {}]   ;;  %s4084_s6 = inlined_call_operand.vmem [shape: f32[784,128], index: 6, kind: output, shape index: {}]  }
   0x1 LB: > { %s2264_s22 = sadd.s32 4294967295, %s2935_s21   ;;  %p2268_p0 = scmp.ge.s32.totalorder %s2935_s21, 1  ;;  %s2935_s21 = sphi %s2974_s21, %s16_s21  }
   0x2   : > { %p246_p1 = scmp.lt.s32.totalorder %s2935_s21, 3 }
   0x4   : > { %p247_p2 = pnand %p2268_p0, %p246_p1 }
   0x6   : > { %250 = sbr.rel (%p247_p2) target bundleno = 639 (0x27f), region = 44 }
   0xd   : > { %v2926_v0 = vld [vmem:[%s4082_s4] sm:$0xff]   ;;  %v4085_v1 = vmov 0.0   ;;  %v2927_v2 = vld [vmem:[%s4082_s4 + $0x8] sm:$0xff]   ;;  %v2928_v3 = vld [vmem:[%s4082_s4 + $0x10] ss:$0 sps:$4 sm:$0x33]  }
   0xe   : > { %2492 = vmatprep.subr.bf16.mxu0 %v4085_v1  ;;  %2598 = vmatprep.subr.bf16.mxu1 %v4085_v1  ;;  %s291_s29 = smul.u32 49, %s2264_s22  ;;  %vm492_vm0 = vcmask 1041408   ;;  %vm2938_vm1 = vmmov 0   ;;  %vm416_vm2 = vcmask 293888  }
   0xf   : > { %2493 = vmatpush3.bf16.msra.mxu0 %v2926_v0  ;;  %2599 = vmatpush3.bf16.msra.mxu1 %v2926_v0  ;;  %v494_v4 = vsel %vm492_vm0, %v2928_v3, 0 }
  0x10   : > { %2494 = vmatprep.subr.bf16.mxu0 %v4085_v1  ;;  %2600 = vmatprep.subr.bf16.mxu1 %v4085_v1  ;;  %p292_p3 = scmp.lt.s32.totalorder %s291_s29, 97 }
  0x11   : > { %2498 = vmatprep.mubr.msk.bf16.mxu0 %vm2938_vm1, %v4085_v1  ;;  %2604 = vmatprep.mubr.msk.bf16.mxu1 %vm2938_vm1, %v4085_v1 }
  0x12   : > { %s4282_s29 = smov (!%p292_p3, %s291_s29), 97 }
  0x13   : > { %2495 = vmatpush3.bf16.msra.mxu0 %v2927_v2  ;;  %2601 = vmatpush3.bf16.msra.mxu1 %v2927_v2  ;;  %s3001_s30 = sshll.u32 %s4282_s29, 3 }
  0x14   : > { %2496 = vmatprep.subr.bf16.mxu0 %v4085_v1  ;;  %2602 = vmatprep.subr.bf16.mxu1 %v4085_v1  ;;  %s3007_s9 = scalar_lea.vmem %s4078_s0, %s3001_s30  ;;  %s3013_s12 = scalar_lea.vmem %s4079_s1, %s3001_s30 }
  0x15   : > { %v327_v5 = vld [vmem:[%s3007_s9] sm:$0xff]  ;;  %v328_v6 = vld [vmem:[%s3007_s9 + $0x8] sm:$0xff]  ;;  %v329_v11 = vld [vmem:[%s3007_s9 + $0x10] sm:$0xff]  ;;  %s3267_s15 = scalar_lea.vmem %s4080_s2, %s3001_s30  ;;  %s3273_s18 = scalar_lea.vmem %s4081_s3, %s3001_s30 }
  0x16   : > { %v728_v7 = vld [vmem:[%s3013_s12] sm:$0xff]  ;;  %v376_v8 = vpack.c.bf16 %v328_v6, %v327_v5  ;;  %v729_v9 = vld [vmem:[%s3013_s12 + $0x8] sm:$0xff]  ;;  %v330_v12 = vld [vmem:[%s3007_s9 + $0x18] sm:$0xff]  ;;  %s3835_s24 = scalar_lea.vmem %s4084_s6, %s3001_s30 }
  0x17   : > { %2497 = vmatpush3.bf16.msra.mxu0 %v494_v4  ;;  %2603 = vmatpush3.bf16.msra.mxu1 %v494_v4  ;;  %v777_v10 = vpack.c.bf16 %v729_v9, %v728_v7  ;;  %v730_v13 = vld [vmem:[%s3013_s12 + $0x10] sm:$0xff]  ;;  %v731_v14 = vld [vmem:[%s3013_s12 + $0x18] sm:$0xff]  ;;  %v377_v15 = vpack.c.bf16 %v330_v12, %v329_v11  ;;  %v331_v17 = vld [vmem:[%s3007_s9 + $0x20] sm:$0xff] }
  0x18   : > { %2704 = vmatprep.subr.bf16.mxu0 %v4085_v1  ;;  %2810 = vmatprep.subr.bf16.mxu1 %v4085_v1  ;;  %v778_v16 = vpack.c.bf16 %v731_v14, %v730_v13  ;;  %v332_v18 = vld [vmem:[%s3007_s9 + $0x28] sm:$0xff]  ;;  %v732_v19 = vld [vmem:[%s3013_s12 + $0x20] sm:$0xff]  ;;  %v333_v23 = vld [vmem:[%s3007_s9 + $0x30] sm:$0xff] }
  0x19   : > { %v733_v20 = vld [vmem:[%s3013_s12 + $0x28] sm:$0xff]  ;;  %v378_v21 = vpack.c.bf16 %v332_v18, %v331_v17  ;;  %v334_v24 = vld [vmem:[%s3007_s9 + $0x38] sm:$0xff]  ;;  %v734_v25 = vld [vmem:[%s3013_s12 + $0x30] sm:$0xff] }
  0x1a   : > { %2499 = vmatmul.mubr.msk.bf16.vlgmr.msra.gmra.mrb[0].mxu0 %vm416_vm2, %v376_v8  ;;  %2605 = vmatmul.mubr.msk.bf16.vlgmr.msra.gmra.mrb[0].mxu1 %vm416_vm2, %v777_v10  ;;  %v779_v22 = vpack.c.bf16 %v733_v20, %v732_v19  ;;  %v735_v26 = vld [vmem:[%s3013_s12 + $0x38] sm:$0xff]  ;;  %v379_v27 = vpack.c.bf16 %v334_v24, %v333_v23  ;;  %v335_v29 = vld [vmem:[%s3007_s9 + $0x40] sm:$0xff]  ;;  %v336_v30 = vld [vmem:[%s3007_s9 + $0x48] sm:$0xff] }
  0x1b   : > { %2705 = vmatpush3.bf16.msra.mxu0 %v2926_v0  ;;  %2811 = vmatpush3.bf16.msra.mxu1 %v2926_v0  ;;  %v780_v28 = vpack.c.bf16 %v735_v26, %v734_v25  ;;  %v736_v31 = vld [vmem:[%s3013_s12 + $0x40] sm:$0xff]  ;;  %v737_v32 = vld [vmem:[%s3013_s12 + $0x48] sm:$0xff]  ;;  %v380_v33 = vpack.c.bf16 %v336_v30, %v335_v29  ;;  %v337_v35 = vld [vmem:[%s3007_s9 + $0x50] sm:$0xff] }
  0x1c   : > { %2502 = vmatprep.mubr.msk.bf16.mxu0 %vm2938_vm1, %v4085_v1  ;;  %2608 = vmatprep.mubr.msk.bf16.mxu1 %vm2938_vm1, %v4085_v1  ;;  %v781_v34 = vpack.c.bf16 %v737_v32, %v736_v31  ;;  %v338_v36 = vld [vmem:[%s3007_s9 + $0x58] sm:$0xff]  ;;  %v738_v37 = vld [vmem:[%s3013_s12 + $0x50] sm:$0xff]  ;;  %v339_v41 = vld [vmem:[%s3007_s9 + $0x60] sm:$0xff] }
  0x1d   : > { %2706 = vmatprep.subr.bf16.mxu0 %v4085_v1  ;;  %2812 = vmatprep.subr.bf16.mxu1 %v4085_v1  ;;  %v739_v38 = vld [vmem:[%s3013_s12 + $0x58] sm:$0xff]  ;;  %v381_v39 = vpack.c.bf16 %v338_v36, %v337_v35  ;;  %v340_v42 = vld [vmem:[%s3007_s9 + $0x68] sm:$0xff]  ;;  %v740_v43 = vld [vmem:[%s3013_s12 + $0x60] sm:$0xff] }
  0x1e   : > { %v782_v40 = vpack.c.bf16 %v739_v38, %v738_v37  ;;  %v741_v44 = vld [vmem:[%s3013_s12 + $0x68] sm:$0xff]  ;;  %v382_v45 = vpack.c.bf16 %v340_v42, %v339_v41  ;;  %v341_v47 = vld [vmem:[%s3007_s9 + $0x70] sm:$0xff]  ;;  %v342_v48 = vld [vmem:[%s3007_s9 + $0x78] sm:$0xff] }
  0x1f   : > { %2707 = vmatpush3.bf16.msra.mxu0 %v2927_v2  ;;  %2813 = vmatpush3.bf16.msra.mxu1 %v2927_v2  ;;  %v783_v46 = vpack.c.bf16 %v741_v44, %v740_v43  ;;  %v742_v49 = vld [vmem:[%s3013_s12 + $0x70] sm:$0xff]  ;;  %v743_v50 = vld [vmem:[%s3013_s12 + $0x78] sm:$0xff]  ;;  %v383_v51 = vpack.c.bf16 %v342_v48, %v341_v47  ;;  %v343_v53 = vld [vmem:[%s3007_s9 + $0x80] sm:$0xff] }
  0x20   : > { %2708 = vmatprep.subr.bf16.mxu0 %v4085_v1  ;;  %2814 = vmatprep.subr.bf16.mxu1 %v4085_v1  ;;  %v784_v52 = vpack.c.bf16 %v743_v50, %v742_v49  ;;  %v344_v54 = vld [vmem:[%s3007_s9 + $0x88] sm:$0xff]  ;;  %v744_v55 = vld [vmem:[%s3013_s12 + $0x80] sm:$0xff]  ;;  %v345_v59 = vld [vmem:[%s3007_s9 + $0x90] sm:$0xff] }
  0x21   : > { %v745_v56 = vld [vmem:[%s3013_s12 + $0x88] sm:$0xff]  ;;  %v384_v57 = vpack.c.bf16 %v344_v54, %v343_v53  ;;  %v346_v60 = vld [vmem:[%s3007_s9 + $0x98] sm:$0xff]  ;;  %v746_v61 = vld [vmem:[%s3013_s12 + $0x90] sm:$0xff] }
  0x22   : > { %2503 = vmatmul.mubr.msk.bf16.gmra.mrb[4].mxu0 %vm416_vm2, %v377_v15  ;;  %2609 = vmatmul.mubr.msk.bf16.gmra.mrb[4].mxu1 %vm416_vm2, %v778_v16  ;;  %v785_v58 = vpack.c.bf16 %v745_v56, %v744_v55  ;;  %v747_v62 = vld [vmem:[%s3013_s12 + $0x98] sm:$0xff]  ;;  %v385_v63 = vpack.c.bf16 %v346_v60, %v345_v59  ;;  %v347_v2 = vld [vmem:[%s3007_s9 + $0xa0] sm:$0xff]  ;;  %v348_v3 = vld [vmem:[%s3007_s9 + $0xa8] sm:$0xff] }
  0x23   : > { %2506 = vmatprep.mubr.msk.bf16.mxu0 %vm2938_vm1, %v4085_v1  ;;  %2612 = vmatprep.mubr.msk.bf16.mxu1 %vm2938_vm1, %v4085_v1  ;;  %v786_v0 = vpack.c.bf16 %v747_v62, %v746_v61  ;;  %v749_v5 = vld [vmem:[%s3013_s12 + $0xa8] sm:$0xff]  ;;  %v386_v6 = vpack.c.bf16 %v348_v3, %v347_v2  ;;  %v349_v8 = vld [vmem:[%s3007_s9 + $0xb0] sm:$0xff]  ;;  %v350_v9 = vld [vmem:[%s3007_s9 + $0xb8] sm:$0xff] }
  0x24   : > { %2709 = vmatpush3.bf16.msra.mxu0 %v494_v4  ;;  %2815 = vmatpush3.bf16.msra.mxu1 %v494_v4  ;;  %v748_v4 = vld [vmem:[%s3013_s12 + $0xa0] sm:$0xff]  ;;  %v750_v10 = vld [vmem:[%s3013_s12 + $0xb0] sm:$0xff]  ;;  %v751_v11 = vld [vmem:[%s3013_s12 + $0xb8] sm:$0xff]  ;;  %v387_v12 = vpack.c.bf16 %v350_v9, %v349_v8 }
  0x25   : > { %v787_v7 = vpack.c.bf16 %v749_v5, %v748_v4  ;;  %v788_v13 = vpack.c.bf16 %v751_v11, %v750_v10  ;;  %v351_v14 = vld [vmem:[%s3007_s9 + $0xc0] sm:$0xff]  ;;  %v352_v15 = vld [vmem:[%s3007_s9 + $0xc8] sm:$0xff]  ;;  %v353_v20 = vld [vmem:[%s3007_s9 + $0xd0] sm:$0xff] }
  0x26   : > { %v752_v16 = vld [vmem:[%s3013_s12 + $0xc0] sm:$0xff]  ;;  %v753_v17 = vld [vmem:[%s3013_s12 + $0xc8] sm:$0xff]  ;;  %v388_v18 = vpack.c.bf16 %v352_v15, %v351_v14  ;;  %v755_v23 = vld [vmem:[%s3013_s12 + $0xd8] sm:$0xff] }
  0x27   : > { %v789_v19 = vpack.c.bf16 %v753_v17, %v752_v16  ;;  %v355_v26 = vld [vmem:[%s3007_s9 + $0xe0] sm:$0xff]  ;;  %v757_v29 = vld [vmem:[%s3013_s12 + $0xe8] sm:$0xff]  ;;  %v357_v32 = vld [vmem:[%s3007_s9 + $0xf0] sm:$0xff] }
  0x28   : > { %v759_v35 = vld [vmem:[%s3013_s12 + $0xf8] sm:$0xff]  ;;  %v359_v38 = vld [vmem:[%s3007_s9 + $0x100] sm:$0xff]  ;;  %v761_v41 = vld [vmem:[%s3013_s12 + $0x108] sm:$0xff] }
  0x29   : > { %v361_v44 = vld [vmem:[%s3007_s9 + $0x110] sm:$0xff]  ;;  %v763_v47 = vld [vmem:[%s3013_s12 + $0x118] sm:$0xff]  ;;  %v363_v50 = vld [vmem:[%s3007_s9 + $0x120] sm:$0xff] }
  0x2a   : > { %2507 = vmatmul.mubr.msk.bf16.gmra.mrb[8].mxu0 %vm416_vm2, %v378_v21  ;;  %2613 = vmatmul.mubr.msk.bf16.gmra.mrb[8].mxu1 %vm416_vm2, %v779_v22  ;;  %v354_v21 = vld [vmem:[%s3007_s9 + $0xd8] sm:$0xff]  ;;  %v754_v22 = vld [vmem:[%s3013_s12 + $0xd0] sm:$0xff]  ;;  %v765_v53 = vld [vmem:[%s3013_s12 + $0x128] sm:$0xff] }
  0x2b   : > { %2510 = vmatprep.mubr.msk.bf16.mxu0 %vm2938_vm1, %v4085_v1  ;;  %2616 = vmatprep.mubr.msk.bf16.mxu1 %vm2938_vm1, %v4085_v1  ;;  %v389_v24 = vpack.c.bf16 %v354_v21, %v353_v20  ;;  %v790_v25 = vpack.c.bf16 %v755_v23, %v754_v22  ;;  %v365_v56 = vld [vmem:[%s3007_s9 + $0x130] sm:$0xff]  ;;  %v767_v59 = vld [vmem:[%s3013_s12 + $0x138] sm:$0xff]  ;;  %v367_v62 = vld [vmem:[%s3007_s9 + $0x140] sm:$0xff] }
  0x2c   : > { %v769_v2 = vld [vmem:[%s3013_s12 + $0x148] sm:$0xff]  ;;  %v369_v5 = vld [vmem:[%s3007_s9 + $0x150] sm:$0xff]  ;;  %v771_v8 = vld [vmem:[%s3013_s12 + $0x158] sm:$0xff] }
  0x2d   : > { %v371_v11 = vld [vmem:[%s3007_s9 + $0x160] sm:$0xff]  ;;  %v773_v14 = vld [vmem:[%s3013_s12 + $0x168] sm:$0xff]  ;;  %v373_v17 = vld [vmem:[%s3007_s9 + $0x170] sm:$0xff] }
  0x2e   : > { %v775_v20 = vld [vmem:[%s3013_s12 + $0x178] sm:$0xff]  ;;  %v375_v23 = vld [vmem:[%s3007_s9 + $0x180] sm:$0xff] }
  0x32   : > { %2511 = vmatmul.mubr.msk.bf16.gmra.mrb[12].mxu0 %vm416_vm2, %v379_v27  ;;  %2617 = vmatmul.mubr.msk.bf16.gmra.mrb[12].mxu1 %vm416_vm2, %v780_v28  ;;  %v356_v27 = vld [vmem:[%s3007_s9 + $0xe8] sm:$0xff]  ;;  %v756_v28 = vld [vmem:[%s3013_s12 + $0xe0] sm:$0xff] }
  0x33   : > { %2514 = vmatprep.mubr.msk.bf16.mxu0 %vm2938_vm1, %v4085_v1  ;;  %2620 = vmatprep.mubr.msk.bf16.mxu1 %vm2938_vm1, %v4085_v1  ;;  %v390_v30 = vpack.c.bf16 %v356_v27, %v355_v26  ;;  %v791_v31 = vpack.c.bf16 %v757_v29, %v756_v28  ;;  %v1158_v27 = vld [vmem:[%s3267_s15] sm:$0xff]  ;;  %v1159_v28 = vld [vmem:[%s3267_s15 + $0x8] sm:$0xff] }
  0x34   : > { %v1588_v29 = vld [vmem:[%s3273_s18] sm:$0xff] }
  0x3a   : > { %2515 = vmatmul.mubr.msk.bf16.gmra.mrb[16].mxu0 %vm416_vm2, %v380_v33  ;;  %2621 = vmatmul.mubr.msk.bf16.gmra.mrb[16].mxu1 %vm416_vm2, %v781_v34  ;;  %v358_v33 = vld [vmem:[%s3007_s9 + $0xf8] sm:$0xff]  ;;  %v758_v34 = vld [vmem:[%s3013_s12 + $0xf0] sm:$0xff] }
  0x3b   : > { %2518 = vmatprep.mubr.msk.bf16.mxu0 %vm2938_vm1, %v4085_v1  ;;  %2624 = vmatprep.mubr.msk.bf16.mxu1 %vm2938_vm1, %v4085_v1  ;;  %v391_v36 = vpack.c.bf16 %v358_v33, %v357_v32  ;;  %v792_v37 = vpack.c.bf16 %v759_v35, %v758_v34  ;;  %v1160_v33 = vld [vmem:[%s3267_s15 + $0x10] sm:$0xff]  ;;  %v1161_v34 = vld [vmem:[%s3267_s15 + $0x18] sm:$0xff] }
  0x3c   : > { %v1590_v35 = vld [vmem:[%s3273_s18 + $0x10] sm:$0xff] }
  0x42   : > { %2519 = vmatmul.mubr.msk.bf16.gmra.mrb[20].mxu0 %vm416_vm2, %v381_v39  ;;  %2625 = vmatmul.mubr.msk.bf16.gmra.mrb[20].mxu1 %vm416_vm2, %v782_v40  ;;  %v360_v39 = vld [vmem:[%s3007_s9 + $0x108] sm:$0xff]  ;;  %v760_v40 = vld [vmem:[%s3013_s12 + $0x100] sm:$0xff] }
  0x43   : > { %2522 = vmatprep.mubr.msk.bf16.mxu0 %vm2938_vm1, %v4085_v1  ;;  %2628 = vmatprep.mubr.msk.bf16.mxu1 %vm2938_vm1, %v4085_v1  ;;  %v392_v42 = vpack.c.bf16 %v360_v39, %v359_v38  ;;  %v793_v43 = vpack.c.bf16 %v761_v41, %v760_v40  ;;  %v1162_v39 = vld [vmem:[%s3267_s15 + $0x20] sm:$0xff]  ;;  %v1163_v40 = vld [vmem:[%s3267_s15 + $0x28] sm:$0xff] }
  0x44   : > { %v1592_v41 = vld [vmem:[%s3273_s18 + $0x20] sm:$0xff] }
  0x4a   : > { %2523 = vmatmul.mubr.msk.bf16.gmra.mrb[24].mxu0 %vm416_vm2, %v382_v45  ;;  %2629 = vmatmul.mubr.msk.bf16.gmra.mrb[24].mxu1 %vm416_vm2, %v783_v46  ;;  %v362_v45 = vld [vmem:[%s3007_s9 + $0x118] sm:$0xff]  ;;  %v762_v46 = vld [vmem:[%s3013_s12 + $0x110] sm:$0xff] }
  0x4b   : > { %2526 = vmatprep.mubr.msk.bf16.mxu0 %vm2938_vm1, %v4085_v1  ;;  %2632 = vmatprep.mubr.msk.bf16.mxu1 %vm2938_vm1, %v4085_v1  ;;  %v393_v48 = vpack.c.bf16 %v362_v45, %v361_v44  ;;  %v794_v49 = vpack.c.bf16 %v763_v47, %v762_v46  ;;  %v1209_v46 = vpack.c.bf16 %v1163_v40, %v1162_v39  ;;  %v1170_v40 = vld [vmem:[%s3267_s15 + $0x60] sm:$0xff] }
  0x52   : > { %2527 = vmatmul.mubr.msk.bf16.gmra.mrb[28].mxu0 %vm416_vm2, %v383_v51  ;;  %2633 = vmatmul.mubr.msk.bf16.gmra.mrb[28].mxu1 %vm416_vm2, %v784_v52  ;;  %v364_v51 = vld [vmem:[%s3007_s9 + $0x128] sm:$0xff]  ;;  %v764_v52 = vld [vmem:[%s3013_s12 + $0x120] sm:$0xff] }
  0x53   : > { %2530 = vmatprep.mubr.msk.bf16.mxu0 %vm2938_vm1, %v4085_v1  ;;  %2636 = vmatprep.mubr.msk.bf16.mxu1 %vm2938_vm1, %v4085_v1  ;;  %v394_v54 = vpack.c.bf16 %v364_v51, %v363_v50  ;;  %v795_v55 = vpack.c.bf16 %v765_v53, %v764_v52 }
  0x5a   : > { %2531 = vmatmul.mubr.msk.bf16.gmra.mrb[32].mxu0 %vm416_vm2, %v384_v57  ;;  %2637 = vmatmul.mubr.msk.bf16.gmra.mrb[32].mxu1 %vm416_vm2, %v785_v58  ;;  %v366_v57 = vld [vmem:[%s3007_s9 + $0x138] sm:$0xff]  ;;  %v766_v58 = vld [vmem:[%s3013_s12 + $0x130] sm:$0xff] }
  0x5b   : > { %2534 = vmatprep.mubr.msk.bf16.mxu0 %vm2938_vm1, %v4085_v1  ;;  %2640 = vmatprep.mubr.msk.bf16.mxu1 %vm2938_vm1, %v4085_v1  ;;  %v395_v60 = vpack.c.bf16 %v366_v57, %v365_v56  ;;  %v796_v61 = vpack.c.bf16 %v767_v59, %v766_v58  ;;  %v1165_v56 = vld [vmem:[%s3267_s15 + $0x38] sm:$0xff]  ;;  %v1594_v57 = vld [vmem:[%s3273_s18 + $0x30] sm:$0xff] }
  0x5c   : > { %v1595_v58 = vld [vmem:[%s3273_s18 + $0x38] sm:$0xff] }
  0x62   : > { %2535 = vmatmul.mubr.msk.bf16.gmra.mrb[36].mxu0 %vm416_vm2, %v385_v63  ;;  %2641 = vmatmul.mubr.msk.bf16.gmra.mrb[36].mxu1 %vm416_vm2, %v786_v0  ;;  %v368_v63 = vld [vmem:[%s3007_s9 + $0x148] sm:$0xff]  ;;  %v768_v0 = vld [vmem:[%s3013_s12 + $0x140] sm:$0xff] }
  0x63   : > { %2538 = vmatprep.mubr.msk.bf16.mxu0 %vm2938_vm1, %v4085_v1  ;;  %2644 = vmatprep.mubr.msk.bf16.mxu1 %vm2938_vm1, %v4085_v1  ;;  %v396_v3 = vpack.c.bf16 %v368_v63, %v367_v62  ;;  %v797_v4 = vpack.c.bf16 %v769_v2, %v768_v0 }
  0x6a   : > { %2539 = vmatmul.mubr.msk.bf16.gmra.mrb[40].mxu0 %vm416_vm2, %v386_v6  ;;  %2645 = vmatmul.mubr.msk.bf16.gmra.mrb[40].mxu1 %vm416_vm2, %v787_v7  ;;  %v370_v6 = vld [vmem:[%s3007_s9 + $0x158] sm:$0xff]  ;;  %v770_v7 = vld [vmem:[%s3013_s12 + $0x150] sm:$0xff] }
  0x6b   : > { %2542 = vmatprep.mubr.msk.bf16.mxu0 %vm2938_vm1, %v4085_v1  ;;  %2648 = vmatprep.mubr.msk.bf16.mxu1 %vm2938_vm1, %v4085_v1  ;;  %v397_v9 = vpack.c.bf16 %v370_v6, %v369_v5  ;;  %v798_v10 = vpack.c.bf16 %v771_v8, %v770_v7  ;;  %v1166_v8 = vld [vmem:[%s3267_s15 + $0x40] sm:$0xff] }
  0x72   : > { %2543 = vmatmul.mubr.msk.bf16.gmra.mrb[44].mxu0 %vm416_vm2, %v387_v12  ;;  %2649 = vmatmul.mubr.msk.bf16.gmra.mrb[44].mxu1 %vm416_vm2, %v788_v13  ;;  %v372_v12 = vld [vmem:[%s3007_s9 + $0x168] sm:$0xff]  ;;  %v772_v13 = vld [vmem:[%s3013_s12 + $0x160] sm:$0xff] }
  0x73   : > { %2546 = vmatprep.mubr.msk.bf16.mxu0 %vm2938_vm1, %v4085_v1  ;;  %2652 = vmatprep.mubr.msk.bf16.mxu1 %vm2938_vm1, %v4085_v1  ;;  %v398_v15 = vpack.c.bf16 %v372_v12, %v371_v11  ;;  %v799_v16 = vpack.c.bf16 %v773_v14, %v772_v13  ;;  %v1597_v11 = vld [vmem:[%s3273_s18 + $0x48] sm:$0xff] }
  0x7a   : > { %2547 = vmatmul.mubr.msk.bf16.gmra.mrb[48].mxu0 %vm416_vm2, %v388_v18  ;;  %2653 = vmatmul.mubr.msk.bf16.gmra.mrb[48].mxu1 %vm416_vm2, %v789_v19  ;;  %v374_v18 = vld [vmem:[%s3007_s9 + $0x178] sm:$0xff]  ;;  %v774_v19 = vld [vmem:[%s3013_s12 + $0x170] sm:$0xff] }
  0x7b   : > { %2550 = vmatprep.mubr.msk.bf16.mxu0 %vm2938_vm1, %v4085_v1  ;;  %2656 = vmatprep.mubr.msk.bf16.mxu1 %vm2938_vm1, %v4085_v1  ;;  %v399_v21 = vpack.c.bf16 %v374_v18, %v373_v17  ;;  %v800_v22 = vpack.c.bf16 %v775_v20, %v774_v19 }
  0x82   : > { %2551 = vmatmul.mubr.msk.bf16.gmra.mrb[52].mxu0 %vm416_vm2, %v389_v24  ;;  %2657 = vmatmul.mubr.msk.bf16.gmra.mrb[52].mxu1 %vm416_vm2, %v790_v25  ;;  %v776_v24 = vld [vmem:[%s3013_s12 + $0x180] sm:$0xff]  ;;  %v400_v25 = vpack.c.bf16 %v375_v23, %v375_v23 }
  0x83   : > { %2554 = vmatprep.mubr.msk.bf16.mxu0 %vm2938_vm1, %v4085_v1  ;;  %2660 = vmatprep.mubr.msk.bf16.mxu1 %vm2938_vm1, %v4085_v1  ;;  %v801_v26 = vpack.c.bf16 %v776_v24, %v776_v24  ;;  %v1168_v24 = vld [vmem:[%s3267_s15 + $0x50] sm:$0xff] }
  0x8a   : > { %2555 = vmatmul.mubr.msk.bf16.gmra.mrb[56].mxu0 %vm416_vm2, %v390_v30  ;;  %2661 = vmatmul.mubr.msk.bf16.gmra.mrb[56].mxu1 %vm416_vm2, %v791_v31  ;;  %v1589_v30 = vld [vmem:[%s3273_s18 + $0x8] sm:$0xff]  ;;  %v1207_v31 = vpack.c.bf16 %v1159_v28, %v1158_v27  ;;  %v1599_v27 = vld [vmem:[%s3273_s18 + $0x58] sm:$0xff] }
  0x8b   : > { %2558 = vmatprep.mubr.msk.bf16.mxu0 %vm2938_vm1, %v4085_v1  ;;  %2664 = vmatprep.mubr.msk.bf16.mxu1 %vm2938_vm1, %v4085_v1  ;;  %v1637_v32 = vpack.c.bf16 %v1589_v30, %v1588_v29 }
  0x92   : > { %2559 = vmatmul.mubr.msk.bf16.gmra.mrb[60].mxu0 %vm416_vm2, %v391_v36  ;;  %2665 = vmatmul.mubr.msk.bf16.gmra.mrb[60].mxu1 %vm416_vm2, %v792_v37  ;;  %v1591_v36 = vld [vmem:[%s3273_s18 + $0x18] sm:$0xff]  ;;  %v1208_v37 = vpack.c.bf16 %v1161_v34, %v1160_v33 }
  0x93   : > { %2562 = vmatprep.mubr.msk.bf16.mxu0 %vm2938_vm1, %v4085_v1  ;;  %2668 = vmatprep.mubr.msk.bf16.mxu1 %vm2938_vm1, %v4085_v1  ;;  %v1638_v38 = vpack.c.bf16 %v1591_v36, %v1590_v35 }
  0x9a   : > { %2563 = vmatmul.mubr.msk.bf16.gmra.mrb[64].mxu0 %vm416_vm2, %v392_v42  ;;  %2669 = vmatmul.mubr.msk.bf16.gmra.mrb[64].mxu1 %vm416_vm2, %v793_v43  ;;  %v1593_v42 = vld [vmem:[%s3273_s18 + $0x28] sm:$0xff] }
  0x9b   : > { %2566 = vmatprep.mubr.msk.bf16.mxu0 %vm2938_vm1, %v4085_v1  ;;  %2672 = vmatprep.mubr.msk.bf16.mxu1 %vm2938_vm1, %v4085_v1  ;;  %v1639_v50 = vpack.c.bf16 %v1593_v42, %v1592_v41  ;;  %v1171_v41 = vld [vmem:[%s3267_s15 + $0x68] sm:$0xff]  ;;  %v1600_v42 = vld [vmem:[%s3273_s18 + $0x60] sm:$0xff] }
  0xa2   : > { %2567 = vmatmul.mubr.msk.bf16.gmra.mrb[68].mxu0 %vm416_vm2, %v393_v48  ;;  %2673 = vmatmul.mubr.msk.bf16.gmra.mrb[68].mxu1 %vm416_vm2, %v794_v49 }
  0xa3   : > { %2570 = vmatprep.mubr.msk.bf16.mxu0 %vm2938_vm1, %v4085_v1  ;;  %2676 = vmatprep.mubr.msk.bf16.mxu1 %vm2938_vm1, %v4085_v1 }
  0xaa   : > { %2571 = vmatmul.mubr.msk.bf16.gmra.mrb[72].mxu0 %vm416_vm2, %v394_v54  ;;  %2677 = vmatmul.mubr.msk.bf16.gmra.mrb[72].mxu1 %vm416_vm2, %v795_v55  ;;  %v1164_v55 = vld [vmem:[%s3267_s15 + $0x30] sm:$0xff] }
  0xab   : > { %2574 = vmatprep.mubr.msk.bf16.mxu0 %vm2938_vm1, %v4085_v1  ;;  %2680 = vmatprep.mubr.msk.bf16.mxu1 %vm2938_vm1, %v4085_v1  ;;  %v1210_v62 = vpack.c.bf16 %v1165_v56, %v1164_v55 }
  0xb2   : > { %2575 = vmatmul.mubr.msk.bf16.gmra.mrb[76].mxu0 %vm416_vm2, %v395_v60  ;;  %2681 = vmatmul.mubr.msk.bf16.gmra.mrb[76].mxu1 %vm416_vm2, %v796_v61 }
  0xb3   : > { %2578 = vmatprep.mubr.msk.bf16.mxu0 %vm2938_vm1, %v4085_v1  ;;  %2684 = vmatprep.mubr.msk.bf16.mxu1 %vm2938_vm1, %v4085_v1 }
  0xba   : > { %2579 = vmatmul.mubr.msk.bf16.gmra.mrb[80].mxu0 %vm416_vm2, %v396_v3  ;;  %2685 = vmatmul.mubr.msk.bf16.gmra.mrb[80].mxu1 %vm416_vm2, %v797_v4  ;;  %v1640_v3 = vpack.c.bf16 %v1595_v58, %v1594_v57 }
  0xbb   : > { %2582 = vmatprep.mubr.msk.bf16.mxu0 %vm2938_vm1, %v4085_v1  ;;  %2688 = vmatprep.mubr.msk.bf16.mxu1 %vm2938_vm1, %v4085_v1 }
  0xc2   : > { %2583 = vmatmul.mubr.msk.bf16.gmra.mrb[84].mxu0 %vm416_vm2, %v397_v9  ;;  %2689 = vmatmul.mubr.msk.bf16.gmra.mrb[84].mxu1 %vm416_vm2, %v798_v10  ;;  %v1167_v9 = vld [vmem:[%s3267_s15 + $0x48] sm:$0xff]  ;;  %v1596_v10 = vld [vmem:[%s3273_s18 + $0x40] sm:$0xff] }
  0xc3   : > { %2586 = vmatprep.mubr.msk.bf16.mxu0 %vm2938_vm1, %v4085_v1  ;;  %2692 = vmatprep.mubr.msk.bf16.mxu1 %vm2938_vm1, %v4085_v1  ;;  %v1641_v19 = vpack.c.bf16 %v1597_v11, %v1596_v10 }
  0xca   : > { %2587 = vmatmul.mubr.msk.bf16.gmra.mrb[88].mxu0 %vm416_vm2, %v398_v15  ;;  %2693 = vmatmul.mubr.msk.bf16.gmra.mrb[88].mxu1 %vm416_vm2, %v799_v16  ;;  %v1211_v15 = vpack.c.bf16 %v1167_v9, %v1166_v8  ;;  %v1603_v8 = vld [vmem:[%s3273_s18 + $0x78] sm:$0xff] }
  0xcb   : > { %2590 = vmatprep.mubr.msk.bf16.mxu0 %vm2938_vm1, %v4085_v1  ;;  %2696 = vmatprep.mubr.msk.bf16.mxu1 %vm2938_vm1, %v4085_v1 }
  0xd2   : > { %2591 = vmatmul.mubr.msk.bf16.gmra.mrb[92].mxu0 %vm416_vm2, %v399_v21  ;;  %2697 = vmatmul.mubr.msk.bf16.gmra.mrb[92].mxu1 %vm416_vm2, %v800_v22 }
  0xd3   : > { %2594 = vmatprep.mubr.msk.bf16.mxu0 %vm2938_vm1, %v4085_v1  ;;  %2700 = vmatprep.mubr.msk.bf16.mxu1 %vm2938_vm1, %v4085_v1 }
  0xda   : > { %2595 = vmatmul.mubr.msk.bf16.gmra.mrb[96].mxu0 %vm416_vm2, %v400_v25  ;;  %2701 = vmatmul.mubr.msk.bf16.gmra.mrb[96].mxu1 %vm416_vm2, %v801_v26  ;;  %v1169_v25 = vld [vmem:[%s3267_s15 + $0x58] sm:$0xff]  ;;  %v1598_v26 = vld [vmem:[%s3273_s18 + $0x50] sm:$0xff] }
  0xdb   : > { %2710 = vmatprep.mubr.msk.bf16.mxu0 %vm2938_vm1, %v4085_v1  ;;  %2816 = vmatprep.mubr.msk.bf16.mxu1 %vm2938_vm1, %v4085_v1  ;;  %v1642_v35 = vpack.c.bf16 %v1599_v27, %v1598_v26  ;;  %v1174_v27 = vld [vmem:[%s3267_s15 + $0x80] sm:$0xff] }
  0xe2   : > { %2711 = vmatmul.mubr.msk.bf16.vlgmr.msra.gmra.mrb[100].mxu0 %vm416_vm2, %v1207_v31  ;;  %2817 = vmatmul.mubr.msk.bf16.vlgmr.msra.gmra.mrb[100].mxu1 %vm416_vm2, %v1637_v32  ;;  %v1212_v31 = vpack.c.bf16 %v1169_v25, %v1168_v24 }
  0xe3   : > { %2714 = vmatprep.mubr.msk.bf16.mxu0 %vm2938_vm1, %v4085_v1  ;;  %2820 = vmatprep.mubr.msk.bf16.mxu1 %vm2938_vm1, %v4085_v1 }
  0xea   : > { %2715 = vmatmul.mubr.msk.bf16.gmra.mrb[104].mxu0 %vm416_vm2, %v1208_v37  ;;  %2821 = vmatmul.mubr.msk.bf16.gmra.mrb[104].mxu1 %vm416_vm2, %v1638_v38 }
  0xeb   : > { %2718 = vmatprep.mubr.msk.bf16.mxu0 %vm2938_vm1, %v4085_v1  ;;  %2824 = vmatprep.mubr.msk.bf16.mxu1 %vm2938_vm1, %v4085_v1 }
  0xed   : > { %v3305_v43 = vpop.f32.mrb[0].mxu0  ;;  %v3307_v44 = vpop.f32.mrb[0].mxu1 }
  0xee   : > { %v2500_v45 = vpop.f32.mrb[1].mxu0  ;;  %v2606_v48 = vpop.f32.mrb[1].mxu1 }
  0xef   : > { %v3311_v49 = vpop.f32.mrb[2].mxu0  ;;  %v3313_v51 = vpop.f32.mrb[2].mxu1  ;;  %v1601_v45 = vld [vmem:[%s3273_s18 + $0x68] sm:$0xff] }
  0xf0   : > { %v2501_v52 = vpop.f32.mrb[3].mxu0  ;;  %v2607_v54 = vpop.f32.mrb[3].mxu1  ;;  %v1643_v57 = vpack.c.bf16 %v1601_v45, %v1600_v42 }
  0xf1   : > { %v1213_v52 = vpack.c.bf16 %v1171_v41, %v1170_v40 }
  0xf2   : > { %2719 = vmatmul.mubr.msk.bf16.gmra.mrb[108].mxu0 %vm416_vm2, %v1209_v46  ;;  %2825 = vmatmul.mubr.msk.bf16.gmra.mrb[108].mxu1 %vm416_vm2, %v1639_v50 }
  0xf3   : > { %2722 = vmatprep.mubr.msk.bf16.mxu0 %vm2938_vm1, %v4085_v1  ;;  %2828 = vmatprep.mubr.msk.bf16.mxu1 %vm2938_vm1, %v4085_v1 }
  0xf5   : > { %v3327_v59 = vpop.f32.mrb[4].mxu0  ;;  %v3329_v60 = vpop.f32.mrb[4].mxu1 }
  0xf6   : > { %v2504_v61 = vpop.f32.mrb[5].mxu0  ;;  %v2610_v0 = vpop.f32.mrb[5].mxu1 }
  0xf7   : > { %v3333_v2 = vpop.f32.mrb[6].mxu0  ;;  %v3335_v4 = vpop.f32.mrb[6].mxu1 }
  0xf8   : > { %v2505_v5 = vpop.f32.mrb[7].mxu0  ;;  %v2611_v7 = vpop.f32.mrb[7].mxu1 }
  0xf9   : > { %v1173_v5 = vld [vmem:[%s3267_s15 + $0x78] sm:$0xff]  ;;  %v1602_v7 = vld [vmem:[%s3273_s18 + $0x70] sm:$0xff] }
  0xfa   : > { %2723 = vmatmul.mubr.msk.bf16.gmra.mrb[112].mxu0 %vm416_vm2, %v1210_v62  ;;  %2829 = vmatmul.mubr.msk.bf16.gmra.mrb[112].mxu1 %vm416_vm2, %v1640_v3  ;;  %v1172_v3 = vld [vmem:[%s3267_s15 + $0x70] sm:$0xff] }
  0xfb   : > { %2726 = vmatprep.mubr.msk.bf16.mxu0 %vm2938_vm1, %v4085_v1  ;;  %2832 = vmatprep.mubr.msk.bf16.mxu1 %vm2938_vm1, %v4085_v1 }
  0xfd   : > { %v3349_v12 = vpop.f32.mrb[8].mxu0  ;;  %v3351_v13 = vpop.f32.mrb[8].mxu1 }
  0xfe   : > { %v2508_v14 = vpop.f32.mrb[9].mxu0  ;;  %v2614_v17 = vpop.f32.mrb[9].mxu1 }
  0xff   : > { %v3355_v18 = vpop.f32.mrb[10].mxu0  ;;  %v3357_v20 = vpop.f32.mrb[10].mxu1  ;;  %v1214_v14 = vpack.c.bf16 %v1173_v5, %v1172_v3  ;;  %v1177_v3 = vld [vmem:[%s3267_s15 + $0x98] sm:$0xff]  ;;  %v1606_v5 = vld [vmem:[%s3273_s18 + $0x90] sm:$0xff] }
 0x100   : > { %v2509_v21 = vpop.f32.mrb[11].mxu0  ;;  %v2615_v23 = vpop.f32.mrb[11].mxu1 }
 0x101   : > { %v1644_v21 = vpack.c.bf16 %v1603_v8, %v1602_v7  ;;  %v1607_v7 = vld [vmem:[%s3273_s18 + $0x98] sm:$0xff] }
 0x102   : > { %2727 = vmatmul.mubr.msk.bf16.gmra.mrb[116].mxu0 %vm416_vm2, %v1211_v15  ;;  %2833 = vmatmul.mubr.msk.bf16.gmra.mrb[116].mxu1 %vm416_vm2, %v1641_v19 }
 0x103   : > { %2730 = vmatprep.mubr.msk.bf16.mxu0 %vm2938_vm1, %v4085_v1  ;;  %2836 = vmatprep.mubr.msk.bf16.mxu1 %vm2938_vm1, %v4085_v1 }
 0x105   : > { %v3371_v28 = vpop.f32.mrb[12].mxu0  ;;  %v3373_v29 = vpop.f32.mrb[12].mxu1 }
 0x106   : > { %v2512_v30 = vpop.f32.mrb[13].mxu0  ;;  %v2618_v33 = vpop.f32.mrb[13].mxu1 }
 0x107   : > { %v3377_v34 = vpop.f32.mrb[14].mxu0  ;;  %v3379_v36 = vpop.f32.mrb[14].mxu1  ;;  %v1175_v30 = vld [vmem:[%s3267_s15 + $0x88] sm:$0xff] }
 0x108   : > { %v2513_v37 = vpop.f32.mrb[15].mxu0  ;;  %v2619_v39 = vpop.f32.mrb[15].mxu1  ;;  %v1605_v33 = vld [vmem:[%s3273_s18 + $0x88] sm:$0xff]  ;;  %v1215_v40 = vpack.c.bf16 %v1175_v30, %v1174_v27  ;;  %v1646_v27 = vpack.c.bf16 %v1607_v7, %v1606_v5 }
 0x10a   : > { %2731 = vmatmul.mubr.msk.bf16.gmra.mrb[120].mxu0 %vm416_vm2, %v1212_v31  ;;  %2837 = vmatmul.mubr.msk.bf16.gmra.mrb[120].mxu1 %vm416_vm2, %v1642_v35  ;;  %v1604_v31 = vld [vmem:[%s3273_s18 + $0x80] sm:$0xff] }
 0x10b   : > { %2734 = vmatprep.mubr.msk.bf16.mxu0 %vm2938_vm1, %v4085_v1  ;;  %2840 = vmatprep.mubr.msk.bf16.mxu1 %vm2938_vm1, %v4085_v1 }
 0x10d   : > { %v3393_v46 = vpop.f32.mrb[16].mxu0  ;;  %v3395_v48 = vpop.f32.mrb[16].mxu1 }
 0x10e   : > { %v2516_v50 = vpop.f32.mrb[17].mxu0  ;;  %v2622_v55 = vpop.f32.mrb[17].mxu1 }
 0x10f   : > { %v3399_v56 = vpop.f32.mrb[18].mxu0  ;;  %v3401_v58 = vpop.f32.mrb[18].mxu1  ;;  %v1645_v50 = vpack.c.bf16 %v1605_v33, %v1604_v31 }
 0x110   : > { %v2517_v61 = vpop.f32.mrb[19].mxu0  ;;  %v2623_v0 = vpop.f32.mrb[19].mxu1 }
 0x111   : > { %v1176_v0 = vld [vmem:[%s3267_s15 + $0x90] sm:$0xff] }
 0x112   : > { %2735 = vmatmul.mubr.msk.bf16.gmra.mrb[124].mxu0 %vm416_vm2, %v1213_v52  ;;  %2841 = vmatmul.mubr.msk.bf16.gmra.mrb[124].mxu1 %vm416_vm2, %v1643_v57 }
 0x113   : > { %2738 = vmatprep.mubr.msk.bf16.mxu0 %vm2938_vm1, %v4085_v1  ;;  %2844 = vmatprep.mubr.msk.bf16.mxu1 %vm2938_vm1, %v4085_v1 }
 0x115   : > { %v3415_v9 = vpop.f32.mrb[20].mxu0  ;;  %v3417_v10 = vpop.f32.mrb[20].mxu1 }
 0x116   : > { %v2520_v11 = vpop.f32.mrb[21].mxu0  ;;  %v2626_v17 = vpop.f32.mrb[21].mxu1 }
 0x117   : > { %v3421_v19 = vpop.f32.mrb[22].mxu0  ;;  %v3423_v23 = vpop.f32.mrb[22].mxu1  ;;  %v1216_v17 = vpack.c.bf16 %v1177_v3, %v1176_v0 }
 0x118   : > { %v2521_v24 = vpop.f32.mrb[23].mxu0  ;;  %v2627_v26 = vpop.f32.mrb[23].mxu1 }
 0x11a   : > { %2739 = vmatmul.mubr.msk.bf16.gmra.mrb[128].mxu0 %vm416_vm2, %v1214_v14  ;;  %2845 = vmatmul.mubr.msk.bf16.gmra.mrb[128].mxu1 %vm416_vm2, %v1644_v21 }
 0x11b   : > { %2742 = vmatprep.mubr.msk.bf16.mxu0 %vm2938_vm1, %v4085_v1  ;;  %2848 = vmatprep.mubr.msk.bf16.mxu1 %vm2938_vm1, %v4085_v1 }
 0x11d   : > { %v3437_v35 = vpop.f32.mrb[24].mxu0  ;;  %v3439_v37 = vpop.f32.mrb[24].mxu1 }
 0x11e   : > { %v2524_v39 = vpop.f32.mrb[25].mxu0  ;;  %v2630_v42 = vpop.f32.mrb[25].mxu1 }
 0x11f   : > { %v3443_v45 = vpop.f32.mrb[26].mxu0  ;;  %v3445_v52 = vpop.f32.mrb[26].mxu1  ;;  %v1179_v42 = vld [vmem:[%s3267_s15 + $0xa8] sm:$0xff] }
 0x120   : > { %v2525_v55 = vpop.f32.mrb[27].mxu0  ;;  %v2631_v61 = vpop.f32.mrb[27].mxu1 }
 0x121   : > { %v1609_v55 = vld [vmem:[%s3273_s18 + $0xa8] sm:$0xff] }
 0x122   : > { %2743 = vmatmul.mubr.msk.bf16.gmra.mrb[132].mxu0 %vm416_vm2, %v1215_v40  ;;  %2849 = vmatmul.mubr.msk.bf16.gmra.mrb[132].mxu1 %vm416_vm2, %v1645_v50  ;;  %v1178_v40 = vld [vmem:[%s3267_s15 + $0xa0] sm:$0xff] }
 0x123   : > { %2746 = vmatprep.mubr.msk.bf16.mxu0 %vm2938_vm1, %v4085_v1  ;;  %2852 = vmatprep.mubr.msk.bf16.mxu1 %vm2938_vm1, %v4085_v1  ;;  %v1608_v50 = vld [vmem:[%s3273_s18 + $0xa0] sm:$0xff]  ;;  %v1217_v5 = vpack.c.bf16 %v1179_v42, %v1178_v40  ;;  %v1180_v40 = vld [vmem:[%s3267_s15 + $0xb0] sm:$0xff]  ;;  %v1181_v42 = vld [vmem:[%s3267_s15 + $0xb8] sm:$0xff] }
 0x125   : > { %v3459_v8 = vpop.f32.mrb[28].mxu0  ;;  %v3461_v11 = vpop.f32.mrb[28].mxu1 }
 0x126   : > { %v2528_v14 = vpop.f32.mrb[29].mxu0  ;;  %v2634_v24 = vpop.f32.mrb[29].mxu1 }
 0x127   : > { %v3465_v26 = vpop.f32.mrb[30].mxu0  ;;  %v3467_v30 = vpop.f32.mrb[30].mxu1  ;;  %v1647_v24 = vpack.c.bf16 %v1609_v55, %v1608_v50  ;;  %v1610_v50 = vld [vmem:[%s3273_s18 + $0xb0] sm:$0xff]  ;;  %v1611_v55 = vld [vmem:[%s3273_s18 + $0xb8] sm:$0xff] }
 0x128   : > { %v2529_v31 = vpop.f32.mrb[31].mxu0  ;;  %v2635_v39 = vpop.f32.mrb[31].mxu1  ;;  %v1648_v7 = vpack.c.bf16 %v1611_v55, %v1610_v50  ;;  %v1612_v50 = vld [vmem:[%s3273_s18 + $0xc0] sm:$0xff]  ;;  %v1613_v55 = vld [vmem:[%s3273_s18 + $0xc8] sm:$0xff] }
 0x12a   : > { %2747 = vmatmul.mubr.msk.bf16.gmra.mrb[136].mxu0 %vm416_vm2, %v1216_v17  ;;  %2853 = vmatmul.mubr.msk.bf16.gmra.mrb[136].mxu1 %vm416_vm2, %v1646_v27 }
 0x12b   : > { %2750 = vmatprep.mubr.msk.bf16.mxu0 %vm2938_vm1, %v4085_v1  ;;  %2856 = vmatprep.mubr.msk.bf16.mxu1 %vm2938_vm1, %v4085_v1 }
 0x12d   : > { %v3481_v61 = vpop.f32.mrb[32].mxu0  ;;  %v3483_v0 = vpop.f32.mrb[32].mxu1 }
 0x12e   : > { %v2532_v3 = vpop.f32.mrb[33].mxu0  ;;  %v2638_v14 = vpop.f32.mrb[33].mxu1 }
 0x12f   : > { %v3487_v17 = vpop.f32.mrb[34].mxu0  ;;  %v3489_v27 = vpop.f32.mrb[34].mxu1 }
 0x130   : > { %v2533_v31 = vpop.f32.mrb[35].mxu0  ;;  %v2639_v33 = vpop.f32.mrb[35].mxu1 }
 0x132   : > { %2751 = vmatmul.mubr.msk.bf16.gmra.mrb[140].mxu0 %vm416_vm2, %v1217_v5  ;;  %2857 = vmatmul.mubr.msk.bf16.gmra.mrb[140].mxu1 %vm416_vm2, %v1647_v24  ;;  %v1218_v5 = vpack.c.bf16 %v1181_v42, %v1180_v40  ;;  %v1182_v40 = vld [vmem:[%s3267_s15 + $0xc0] sm:$0xff]  ;;  %v1183_v42 = vld [vmem:[%s3267_s15 + $0xc8] sm:$0xff]  ;;  %v1649_v24 = vpack.c.bf16 %v1613_v55, %v1612_v50  ;;  %v1614_v50 = vld [vmem:[%s3273_s18 + $0xd0] sm:$0xff] }
 0x133   : > { %2754 = vmatprep.mubr.msk.bf16.mxu0 %vm2938_vm1, %v4085_v1  ;;  %2860 = vmatprep.mubr.msk.bf16.mxu1 %vm2938_vm1, %v4085_v1  ;;  %v1615_v55 = vld [vmem:[%s3273_s18 + $0xd8] sm:$0xff] }
 0x135   : > { %v3503_v3 = vpop.f32.mrb[36].mxu0  ;;  %v3505_v14 = vpop.f32.mrb[36].mxu1 }
 0x136   : > { %v2536_v33 = vpop.f32.mrb[37].mxu0  ;;  %v2642_v31 = vpop.f32.mrb[37].mxu1 }
 0x137   : > { %v3509_v39 = vpop.f32.mrb[38].mxu0  ;;  %v3511_v21 = vpop.f32.mrb[38].mxu1 }
 0x138   : > { %v2537_v57 = vpop.f32.mrb[39].mxu0  ;;  %v2643_v25 = vpop.f32.mrb[39].mxu1 }
 0x13a   : > { %2755 = vmatmul.mubr.msk.bf16.gmra.mrb[144].mxu0 %vm416_vm2, %v1218_v5  ;;  %2861 = vmatmul.mubr.msk.bf16.gmra.mrb[144].mxu1 %vm416_vm2, %v1648_v7  ;;  %v1219_v5 = vpack.c.bf16 %v1183_v42, %v1182_v40  ;;  %v1184_v40 = vld [vmem:[%s3267_s15 + $0xd0] sm:$0xff]  ;;  %v1185_v42 = vld [vmem:[%s3267_s15 + $0xd8] sm:$0xff]  ;;  %v1650_v7 = vpack.c.bf16 %v1615_v55, %v1614_v50  ;;  %v1616_v50 = vld [vmem:[%s3273_s18 + $0xe0] sm:$0xff] }
 0x13b   : > { %2758 = vmatprep.mubr.msk.bf16.mxu0 %vm2938_vm1, %v4085_v1  ;;  %2864 = vmatprep.mubr.msk.bf16.mxu1 %vm2938_vm1, %v4085_v1  ;;  %v1617_v55 = vld [vmem:[%s3273_s18 + $0xe8] sm:$0xff] }
 0x13d   : > { %v3525_v57 = vpop.f32.mrb[40].mxu0  ;;  %v3527_v33 = vpop.f32.mrb[40].mxu1 }
 0x13e   : > { %v2540_v25 = vpop.f32.mrb[41].mxu0  ;;  %v2646_v31 = vpop.f32.mrb[41].mxu1 }
 0x13f   : > { %v3531_v41 = vpop.f32.mrb[42].mxu0  ;;  %v3533_v15 = vpop.f32.mrb[42].mxu1 }
 0x140   : > { %v2541_v62 = vpop.f32.mrb[43].mxu0  ;;  %v2647_v38 = vpop.f32.mrb[43].mxu1 }
 0x142   : > { %2759 = vmatmul.mubr.msk.bf16.gmra.mrb[148].mxu0 %vm416_vm2, %v1219_v5  ;;  %2865 = vmatmul.mubr.msk.bf16.gmra.mrb[148].mxu1 %vm416_vm2, %v1649_v24  ;;  %v1220_v5 = vpack.c.bf16 %v1185_v42, %v1184_v40  ;;  %v1186_v40 = vld [vmem:[%s3267_s15 + $0xe0] sm:$0xff]  ;;  %v1187_v42 = vld [vmem:[%s3267_s15 + $0xe8] sm:$0xff]  ;;  %v1651_v24 = vpack.c.bf16 %v1617_v55, %v1616_v50  ;;  %v1618_v50 = vld [vmem:[%s3273_s18 + $0xf0] sm:$0xff] }
 0x143   : > { %2762 = vmatprep.mubr.msk.bf16.mxu0 %vm2938_vm1, %v4085_v1  ;;  %2868 = vmatprep.mubr.msk.bf16.mxu1 %vm2938_vm1, %v4085_v1  ;;  %v1619_v55 = vld [vmem:[%s3273_s18 + $0xf8] sm:$0xff] }
 0x145   : > { %v3547_v62 = vpop.f32.mrb[44].mxu0  ;;  %v3549_v25 = vpop.f32.mrb[44].mxu1 }
 0x146   : > { %v2544_v38 = vpop.f32.mrb[45].mxu0  ;;  %v2650_v31 = vpop.f32.mrb[45].mxu1 }
 0x147   : > { %v3553_v54 = vpop.f32.mrb[46].mxu0  ;;  %v3555_v32 = vpop.f32.mrb[46].mxu1 }
 0x148   : > { %4135 = vst [vmem:[#allocation2_spill] sm:$0xff] %v3555_v32  ;;  %v2545_v22 = vpop.f32.mrb[47].mxu0  ;;  %v2651_v6 = vpop.f32.mrb[47].mxu1 }
 0x14a   : > { %2763 = vmatmul.mubr.msk.bf16.gmra.mrb[152].mxu0 %vm416_vm2, %v1220_v5  ;;  %2869 = vmatmul.mubr.msk.bf16.gmra.mrb[152].mxu1 %vm416_vm2, %v1650_v7  ;;  %v1221_v5 = vpack.c.bf16 %v1187_v42, %v1186_v40  ;;  %v4140_v40 = vmov 0.0   ;;  %v1188_v42 = vld [vmem:[%s3267_s15 + $0xf0] sm:$0xff] }
 0x14b   : > { %2766 = vmatprep.mubr.msk.bf16.mxu0 %vm2938_vm1, %v4085_v1  ;;  %2872 = vmatprep.mubr.msk.bf16.mxu1 %vm2938_vm1, %v4085_v1 }
 0x14d   : > { %v3569_v22 = vpop.f32.mrb[48].mxu0  ;;  %v3571_v38 = vpop.f32.mrb[48].mxu1 }
 0x14e   : > { %4136 = vst [vmem:[#allocation3_spill] sm:$0xff] %v3569_v22  ;;  %4137 = vst [vmem:[#allocation4_spill] sm:$0xff] %v3571_v38  ;;  %v2548_v6 = vpop.f32.mrb[49].mxu0  ;;  %v2654_v31 = vpop.f32.mrb[49].mxu1 }
 0x14f   : > { %v3575_v16 = vpop.f32.mrb[50].mxu0  ;;  %v3577_v63 = vpop.f32.mrb[50].mxu1  ;;  %v1189_v6 = vld [vmem:[%s3267_s15 + $0xf8] sm:$0xff] }
 0x150   : > { %4138 = vst [vmem:[#allocation5_spill] sm:$0xff] %v3575_v16  ;;  %4139 = vst [vmem:[#allocation6_spill] sm:$0xff] %v3577_v63  ;;  %v2549_v53 = vpop.f32.mrb[51].mxu0  ;;  %v2655_v1 = vpop.f32.mrb[51].mxu1  ;;  %v1652_v63 = vpack.c.bf16 %v1619_v55, %v1618_v50  ;;  %v1621_v50 = vld [vmem:[%s3273_s18 + $0x108] sm:$0xff] }
 0x152   : > { %2767 = vmatmul.mubr.msk.bf16.gmra.mrb[156].mxu0 %vm416_vm2, %v1221_v5  ;;  %2873 = vmatmul.mubr.msk.bf16.gmra.mrb[156].mxu1 %vm416_vm2, %v1651_v24  ;;  %v1222_v5 = vpack.c.bf16 %v1189_v6, %v1188_v42  ;;  %v1190_v42 = vld [vmem:[%s3267_s15 + $0x100] sm:$0xff]  ;;  %v1191_v6 = vld [vmem:[%s3267_s15 + $0x108] sm:$0xff] }
 0x153   : > { %2770 = vmatprep.mubr.msk.bf16.mxu0 %vm2938_vm1, %v4140_v40  ;;  %2876 = vmatprep.mubr.msk.bf16.mxu1 %vm2938_vm1, %v4140_v40 }
 0x155   : > { %v3591_v53 = vpop.f32.mrb[52].mxu0  ;;  %v3593_v31 = vpop.f32.mrb[52].mxu1 }
 0x156   : > { %4141 = vst [vmem:[#allocation7_spill] sm:$0xff] %v3591_v53  ;;  %4142 = vst [vmem:[#allocation8_spill] sm:$0xff] %v3593_v31  ;;  %v2552_v1 = vpop.f32.mrb[53].mxu0  ;;  %v2658_v47 = vpop.f32.mrb[53].mxu1 }
 0x157   : > { %v3597_v7 = vpop.f32.mrb[54].mxu0  ;;  %v3599_v16 = vpop.f32.mrb[54].mxu1  ;;  %v1620_v47 = vld [vmem:[%s3273_s18 + $0x100] sm:$0xff]  ;;  %v1223_v1 = vpack.c.bf16 %v1191_v6, %v1190_v42  ;;  %v1192_v42 = vld [vmem:[%s3267_s15 + $0x110] sm:$0xff]  ;;  %v1193_v6 = vld [vmem:[%s3267_s15 + $0x118] sm:$0xff] }
 0x158   : > { %4143 = vst [vmem:[#allocation9_spill] sm:$0xff] %v3597_v7  ;;  %4144 = vst [vmem:[#allocation10_spill] sm:$0xff] %v3599_v16  ;;  %v2553_v38 = vpop.f32.mrb[55].mxu0  ;;  %v2659_v32 = vpop.f32.mrb[55].mxu1  ;;  %v1653_v24 = vpack.c.bf16 %v1621_v50, %v1620_v47  ;;  %v1622_v47 = vld [vmem:[%s3273_s18 + $0x110] sm:$0xff]  ;;  %v1623_v50 = vld [vmem:[%s3273_s18 + $0x118] sm:$0xff] }
 0x15a   : > { %2771 = vmatmul.mubr.msk.bf16.gmra.mrb[160].mxu0 %vm416_vm2, %v1222_v5  ;;  %2877 = vmatmul.mubr.msk.bf16.gmra.mrb[160].mxu1 %vm416_vm2, %v1652_v63  ;;  %v1654_v63 = vpack.c.bf16 %v1623_v50, %v1622_v47  ;;  %v1624_v47 = vld [vmem:[%s3273_s18 + $0x120] sm:$0xff]  ;;  %v1625_v50 = vld [vmem:[%s3273_s18 + $0x128] sm:$0xff] }
 0x15b   : > { %2774 = vmatprep.mubr.msk.bf16.mxu0 %vm2938_vm1, %v4140_v40  ;;  %2880 = vmatprep.mubr.msk.bf16.mxu1 %vm2938_vm1, %v4140_v40 }
 0x15d   : > { %v3613_v38 = vpop.f32.mrb[56].mxu0  ;;  %v3615_v55 = vpop.f32.mrb[56].mxu1 }
 0x15e   : > { %4145 = vst [vmem:[#allocation11_spill] sm:$0xff] %v3613_v38  ;;  %4146 = vst [vmem:[#allocation12_spill] sm:$0xff] %v3615_v55  ;;  %v2556_v32 = vpop.f32.mrb[57].mxu0  ;;  %v2662_v5 = vpop.f32.mrb[57].mxu1 }
 0x15f   : > { %v3619_v22 = vpop.f32.mrb[58].mxu0  ;;  %v3621_v16 = vpop.f32.mrb[58].mxu1 }
 0x160   : > { %4147 = vst [vmem:[#allocation13_spill] sm:$0xff] %v3619_v22  ;;  %4148 = vst [vmem:[#allocation14_spill] sm:$0xff] %v3621_v16  ;;  %v2557_v7 = vpop.f32.mrb[59].mxu0  ;;  %v2663_v53 = vpop.f32.mrb[59].mxu1 }
 0x162   : > { %2775 = vmatmul.mubr.msk.bf16.gmra.mrb[164].mxu0 %vm416_vm2, %v1223_v1  ;;  %2881 = vmatmul.mubr.msk.bf16.gmra.mrb[164].mxu1 %vm416_vm2, %v1653_v24  ;;  %v1224_v1 = vpack.c.bf16 %v1193_v6, %v1192_v42  ;;  %v1194_v42 = vld [vmem:[%s3267_s15 + $0x120] sm:$0xff]  ;;  %v1195_v6 = vld [vmem:[%s3267_s15 + $0x128] sm:$0xff]  ;;  %v1655_v24 = vpack.c.bf16 %v1625_v50, %v1624_v47  ;;  %v1626_v47 = vld [vmem:[%s3273_s18 + $0x130] sm:$0xff] }
 0x163   : > { %2778 = vmatprep.mubr.msk.bf16.mxu0 %vm2938_vm1, %v4140_v40  ;;  %2884 = vmatprep.mubr.msk.bf16.mxu1 %vm2938_vm1, %v4140_v40  ;;  %v1627_v50 = vld [vmem:[%s3273_s18 + $0x138] sm:$0xff] }
 0x165   : > { %v3635_v7 = vpop.f32.mrb[60].mxu0  ;;  %v3637_v32 = vpop.f32.mrb[60].mxu1 }
 0x166   : > { %4149 = vst [vmem:[#allocation15_spill] sm:$0xff] %v3635_v7  ;;  %4150 = vst [vmem:[#allocation16_spill] sm:$0xff] %v3637_v32  ;;  %v2560_v53 = vpop.f32.mrb[61].mxu0  ;;  %v2666_v5 = vpop.f32.mrb[61].mxu1 }
 0x167   : > { %v3641_v31 = vpop.f32.mrb[62].mxu0  ;;  %v3643_v16 = vpop.f32.mrb[62].mxu1 }
 0x168   : > { %4151 = vst [vmem:[#allocation17_spill] sm:$0xff] %v3641_v31  ;;  %4152 = vst [vmem:[#allocation18_spill] sm:$0xff] %v3643_v16  ;;  %v2561_v22 = vpop.f32.mrb[63].mxu0  ;;  %v2667_v38 = vpop.f32.mrb[63].mxu1 }
 0x16a   : > { %2779 = vmatmul.mubr.msk.bf16.gmra.mrb[168].mxu0 %vm416_vm2, %v1224_v1  ;;  %2885 = vmatmul.mubr.msk.bf16.gmra.mrb[168].mxu1 %vm416_vm2, %v1654_v63  ;;  %v1225_v1 = vpack.c.bf16 %v1195_v6, %v1194_v42  ;;  %v1196_v42 = vld [vmem:[%s3267_s15 + $0x130] sm:$0xff]  ;;  %v1197_v6 = vld [vmem:[%s3267_s15 + $0x138] sm:$0xff]  ;;  %v1656_v63 = vpack.c.bf16 %v1627_v50, %v1626_v47  ;;  %v1628_v47 = vld [vmem:[%s3273_s18 + $0x140] sm:$0xff] }
 0x16b   : > { %2782 = vmatprep.mubr.msk.bf16.mxu0 %vm2938_vm1, %v4140_v40  ;;  %2888 = vmatprep.mubr.msk.bf16.mxu1 %vm2938_vm1, %v4140_v40  ;;  %v1629_v50 = vld [vmem:[%s3273_s18 + $0x148] sm:$0xff] }
 0x16d   : > { %v3657_v22 = vpop.f32.mrb[64].mxu0  ;;  %v3659_v53 = vpop.f32.mrb[64].mxu1 }
 0x16e   : > { %4153 = vst [vmem:[#allocation19_spill] sm:$0xff] %v3657_v22  ;;  %4154 = vst [vmem:[#allocation20_spill] sm:$0xff] %v3659_v53  ;;  %v2564_v38 = vpop.f32.mrb[65].mxu0  ;;  %v2670_v5 = vpop.f32.mrb[65].mxu1 }
 0x16f   : > { %v3663_v55 = vpop.f32.mrb[66].mxu0  ;;  %v3665_v16 = vpop.f32.mrb[66].mxu1 }
 0x170   : > { %4155 = vst [vmem:[#allocation21_spill] sm:$0xff] %v3663_v55  ;;  %4156 = vst [vmem:[#allocation22_spill] sm:$0xff] %v3665_v16  ;;  %v2565_v31 = vpop.f32.mrb[67].mxu0  ;;  %v2671_v7 = vpop.f32.mrb[67].mxu1 }
 0x172   : > { %2783 = vmatmul.mubr.msk.bf16.gmra.mrb[172].mxu0 %vm416_vm2, %v1225_v1  ;;  %2889 = vmatmul.mubr.msk.bf16.gmra.mrb[172].mxu1 %vm416_vm2, %v1655_v24  ;;  %v1226_v1 = vpack.c.bf16 %v1197_v6, %v1196_v42  ;;  %v1198_v42 = vld [vmem:[%s3267_s15 + $0x140] sm:$0xff]  ;;  %v1199_v6 = vld [vmem:[%s3267_s15 + $0x148] sm:$0xff]  ;;  %v1657_v24 = vpack.c.bf16 %v1629_v50, %v1628_v47  ;;  %v1630_v47 = vld [vmem:[%s3273_s18 + $0x150] sm:$0xff] }
 0x173   : > { %2786 = vmatprep.mubr.msk.bf16.mxu0 %vm2938_vm1, %v4140_v40  ;;  %2892 = vmatprep.mubr.msk.bf16.mxu1 %vm2938_vm1, %v4140_v40  ;;  %v1631_v50 = vld [vmem:[%s3273_s18 + $0x158] sm:$0xff] }
 0x175   : > { %v3679_v31 = vpop.f32.mrb[68].mxu0  ;;  %v3681_v38 = vpop.f32.mrb[68].mxu1 }
 0x176   : > { %4157 = vst [vmem:[#allocation23_spill] sm:$0xff] %v3679_v31  ;;  %4158 = vst [vmem:[#allocation24_spill] sm:$0xff] %v3681_v38  ;;  %v2568_v7 = vpop.f32.mrb[69].mxu0  ;;  %v2674_v5 = vpop.f32.mrb[69].mxu1 }
 0x177   : > { %v3685_v32 = vpop.f32.mrb[70].mxu0  ;;  %v3687_v16 = vpop.f32.mrb[70].mxu1 }
 0x178   : > { %4159 = vst [vmem:[#allocation25_spill] sm:$0xff] %v3685_v32  ;;  %4160 = vst [vmem:[#allocation26_spill] sm:$0xff] %v3687_v16  ;;  %v2569_v55 = vpop.f32.mrb[71].mxu0  ;;  %v2675_v22 = vpop.f32.mrb[71].mxu1 }
 0x17a   : > { %2787 = vmatmul.mubr.msk.bf16.gmra.mrb[176].mxu0 %vm416_vm2, %v1226_v1  ;;  %2893 = vmatmul.mubr.msk.bf16.gmra.mrb[176].mxu1 %vm416_vm2, %v1656_v63  ;;  %v1227_v1 = vpack.c.bf16 %v1199_v6, %v1198_v42  ;;  %v1200_v42 = vld [vmem:[%s3267_s15 + $0x150] sm:$0xff]  ;;  %v1201_v6 = vld [vmem:[%s3267_s15 + $0x158] sm:$0xff]  ;;  %v1658_v63 = vpack.c.bf16 %v1631_v50, %v1630_v47  ;;  %v1632_v47 = vld [vmem:[%s3273_s18 + $0x160] sm:$0xff] }
 0x17b   : > { %2790 = vmatprep.mubr.msk.bf16.mxu0 %vm2938_vm1, %v4140_v40  ;;  %2896 = vmatprep.mubr.msk.bf16.mxu1 %vm2938_vm1, %v4140_v40  ;;  %v1633_v50 = vld [vmem:[%s3273_s18 + $0x168] sm:$0xff] }
 0x17d   : > { %v3701_v55 = vpop.f32.mrb[72].mxu0  ;;  %v3703_v7 = vpop.f32.mrb[72].mxu1 }
 0x17e   : > { %4161 = vst [vmem:[#allocation27_spill] sm:$0xff] %v3701_v55  ;;  %4162 = vst [vmem:[#allocation28_spill] sm:$0xff] %v3703_v7  ;;  %v2572_v22 = vpop.f32.mrb[73].mxu0  ;;  %v2678_v5 = vpop.f32.mrb[73].mxu1 }
 0x17f   : > { %v3707_v53 = vpop.f32.mrb[74].mxu0  ;;  %v3709_v16 = vpop.f32.mrb[74].mxu1 }
 0x180   : > { %4163 = vst [vmem:[#allocation29_spill] sm:$0xff] %v3707_v53  ;;  %4164 = vst [vmem:[#allocation30_spill] sm:$0xff] %v3709_v16  ;;  %v2573_v32 = vpop.f32.mrb[75].mxu0  ;;  %v2679_v31 = vpop.f32.mrb[75].mxu1 }
 0x182   : > { %2791 = vmatmul.mubr.msk.bf16.gmra.mrb[180].mxu0 %vm416_vm2, %v1227_v1  ;;  %2897 = vmatmul.mubr.msk.bf16.gmra.mrb[180].mxu1 %vm416_vm2, %v1657_v24  ;;  %v1228_v1 = vpack.c.bf16 %v1201_v6, %v1200_v42  ;;  %v1202_v42 = vld [vmem:[%s3267_s15 + $0x160] sm:$0xff]  ;;  %v1203_v6 = vld [vmem:[%s3267_s15 + $0x168] sm:$0xff]  ;;  %v1659_v24 = vpack.c.bf16 %v1633_v50, %v1632_v47  ;;  %v1634_v47 = vld [vmem:[%s3273_s18 + $0x170] sm:$0xff] }
 0x183   : > { %2794 = vmatprep.mubr.msk.bf16.mxu0 %vm2938_vm1, %v4140_v40  ;;  %2900 = vmatprep.mubr.msk.bf16.mxu1 %vm2938_vm1, %v4140_v40  ;;  %v1635_v50 = vld [vmem:[%s3273_s18 + $0x178] sm:$0xff] }
 0x185   : > { %v3723_v32 = vpop.f32.mrb[76].mxu0  ;;  %v3725_v22 = vpop.f32.mrb[76].mxu1 }
 0x186   : > { %4165 = vst [vmem:[#allocation31_spill] sm:$0xff] %v3723_v32  ;;  %4166 = vst [vmem:[#allocation32_spill] sm:$0xff] %v3725_v22  ;;  %v2576_v31 = vpop.f32.mrb[77].mxu0  ;;  %v2682_v5 = vpop.f32.mrb[77].mxu1 }
 0x187   : > { %v3729_v38 = vpop.f32.mrb[78].mxu0  ;;  %v3731_v16 = vpop.f32.mrb[78].mxu1 }
 0x188   : > { %4167 = vst [vmem:[#allocation33_spill] sm:$0xff] %v3729_v38  ;;  %4168 = vst [vmem:[#allocation34_spill] sm:$0xff] %v3731_v16  ;;  %v2577_v53 = vpop.f32.mrb[79].mxu0  ;;  %v2683_v55 = vpop.f32.mrb[79].mxu1 }
 0x18a   : > { %2795 = vmatmul.mubr.msk.bf16.gmra.mrb[184].mxu0 %vm416_vm2, %v1228_v1  ;;  %2901 = vmatmul.mubr.msk.bf16.gmra.mrb[184].mxu1 %vm416_vm2, %v1658_v63  ;;  %v1229_v1 = vpack.c.bf16 %v1203_v6, %v1202_v42  ;;  %v1204_v42 = vld [vmem:[%s3267_s15 + $0x170] sm:$0xff]  ;;  %v1205_v6 = vld [vmem:[%s3267_s15 + $0x178] sm:$0xff]  ;;  %v1660_v63 = vpack.c.bf16 %v1635_v50, %v1634_v47 }
 0x18b   : > { %2798 = vmatprep.mubr.msk.bf16.mxu0 %vm2938_vm1, %v4140_v40  ;;  %2904 = vmatprep.mubr.msk.bf16.mxu1 %vm2938_vm1, %v4140_v40 }
 0x18d   : > { %v3745_v53 = vpop.f32.mrb[80].mxu0  ;;  %v3747_v31 = vpop.f32.mrb[80].mxu1 }
 0x18e   : > { %4169 = vst [vmem:[#allocation35_spill] sm:$0xff] %v3745_v53  ;;  %4170 = vst [vmem:[#allocation36_spill] sm:$0xff] %v3747_v31  ;;  %v2580_v55 = vpop.f32.mrb[81].mxu0  ;;  %v2686_v5 = vpop.f32.mrb[81].mxu1 }
 0x18f   : > { %v3751_v7 = vpop.f32.mrb[82].mxu0  ;;  %v3753_v16 = vpop.f32.mrb[82].mxu1 }
 0x190   : > { %4171 = vst [vmem:[#allocation37_spill] sm:$0xff] %v3751_v7  ;;  %4172 = vst [vmem:[#allocation38_spill] sm:$0xff] %v3753_v16  ;;  %v2581_v38 = vpop.f32.mrb[83].mxu0  ;;  %v2687_v32 = vpop.f32.mrb[83].mxu1 }
 0x192   : > { %2799 = vmatmul.mubr.msk.bf16.gmra.mrb[188].mxu0 %vm416_vm2, %v1229_v1  ;;  %2905 = vmatmul.mubr.msk.bf16.gmra.mrb[188].mxu1 %vm416_vm2, %v1659_v24  ;;  %v1230_v1 = vpack.c.bf16 %v1205_v6, %v1204_v42  ;;  %v1206_v42 = vld [vmem:[%s3267_s15 + $0x180] sm:$0xff] }
 0x193   : > { %2802 = vmatprep.mubr.msk.bf16.mxu0 %vm2938_vm1, %v4140_v40  ;;  %2908 = vmatprep.mubr.msk.bf16.mxu1 %vm2938_vm1, %v4140_v40  ;;  %v1636_v6 = vld [vmem:[%s3273_s18 + $0x180] sm:$0xff] }
 0x195   : > { %v3767_v38 = vpop.f32.mrb[84].mxu0  ;;  %v3769_v55 = vpop.f32.mrb[84].mxu1 }
 0x196   : > { %v2584_v32 = vpop.f32.mrb[85].mxu0  ;;  %v2690_v5 = vpop.f32.mrb[85].mxu1 }
 0x197   : > { %v3773_v22 = vpop.f32.mrb[86].mxu0  ;;  %v3775_v16 = vpop.f32.mrb[86].mxu1  ;;  %v1231_v32 = vpack.c.bf16 %v1206_v42, %v1206_v42 }
 0x198   : > { %4173 = vst [vmem:[#allocation39_spill] sm:$0xff] %v3773_v22  ;;  %4174 = vst [vmem:[#allocation40_spill] sm:$0xff] %v3775_v16  ;;  %v2585_v7 = vpop.f32.mrb[87].mxu0  ;;  %v2691_v53 = vpop.f32.mrb[87].mxu1 }
 0x19a   : > { %2803 = vmatmul.mubr.msk.bf16.gmra.mrb[192].mxu0 %vm416_vm2, %v1230_v1  ;;  %2909 = vmatmul.mubr.msk.bf16.gmra.mrb[192].mxu1 %vm416_vm2, %v1660_v63  ;;  %v1661_v63 = vpack.c.bf16 %v1636_v6, %v1636_v6 }
 0x19b   : > { %2806 = vmatprep.mubr.msk.bf16.mxu0 %vm2938_vm1, %v4140_v40  ;;  %2912 = vmatprep.mubr.msk.bf16.mxu1 %vm2938_vm1, %v4140_v40 }
 0x19d   : > { %v3787_v47 = vpop.f32.mrb[88].mxu0  ;;  %v3789_v50 = vpop.f32.mrb[88].mxu1 }
 0x19e   : > { %4175 = vst [vmem:[#allocation41_spill] sm:$0xff] %v3787_v47  ;;  %4176 = vst [vmem:[#allocation42_spill] sm:$0xff] %v3789_v50  ;;  %v2588_v7 = vpop.f32.mrb[89].mxu0  ;;  %v2694_v1 = vpop.f32.mrb[89].mxu1 }
 0x19f   : > { %v3793_v5 = vpop.f32.mrb[90].mxu0  ;;  %v3795_v31 = vpop.f32.mrb[90].mxu1 }
 0x1a0   : > { %4177 = vst [vmem:[#allocation43_spill] sm:$0xff] %v3793_v5  ;;  %4178 = vst [vmem:[#allocation44_spill] sm:$0xff] %v3795_v31  ;;  %v2589_v24 = vpop.f32.mrb[91].mxu0  ;;  %v2695_v16 = vpop.f32.mrb[91].mxu1 }
 0x1a2   : > { %2807 = vmatmul.mubr.msk.bf16.gmra.mrb[196].mxu0 %vm416_vm2, %v1231_v32  ;;  %2913 = vmatmul.mubr.msk.bf16.gmra.mrb[196].mxu1 %vm416_vm2, %v1661_v63 }
 0x1a5   : > { %v3801_v7 = vpop.f32.mrb[92].mxu0  ;;  %v3803_v42 = vpop.f32.mrb[92].mxu1 }
 0x1a6   : > { %4179 = vst [vmem:[#allocation45_spill] sm:$0xff] %v3801_v7  ;;  %4180 = vst [vmem:[#allocation46_spill] sm:$0xff] %v3803_v42  ;;  %v2592_v53 = vpop.f32.mrb[93].mxu0  ;;  %v2698_v6 = vpop.f32.mrb[93].mxu1 }
 0x1a7   : > { %v3807_v50 = vpop.f32.mrb[94].mxu0  ;;  %v3809_v24 = vpop.f32.mrb[94].mxu1 }
 0x1a8   : > { %4181 = vst [vmem:[#allocation47_spill] sm:$0xff] %v3807_v50  ;;  %4182 = vst [vmem:[#allocation48_spill] sm:$0xff] %v3809_v24  ;;  %v2593_v47 = vpop.f32.mrb[95].mxu0  ;;  %v2699_v32 = vpop.f32.mrb[95].mxu1 }
 0x1a9   : > { %v4184_v47 = vmax.f32 %v3305_v43, %v3307_v44 }
 0x1ad   : > { %v3813_v40 = vpop.f32.mrb[96].mxu0  ;;  %v3815_v63 = vpop.f32.mrb[96].mxu1 }
 0x1ae   : > { %4183 = vst [vmem:[#allocation49_spill] sm:$0xff] %v3815_v63  ;;  %v2596_v31 = vpop.f32.mrb[97].mxu0  ;;  %v2702_v5 = vpop.f32.mrb[97].mxu1 }
 0x1af   : > { %v725_v1 = vpop.f32.mrb[98].mxu0  ;;  %v1106_v6 = vpop.f32.mrb[98].mxu1  ;;  %v3825_v31 = vld [vmem:[%s4083_s5] ss:$0 sm:$0xff] }
 0x1b0   : > { %v2597_v42 = vpop.f32.mrb[99].mxu0  ;;  %v2703_v7 = vpop.f32.mrb[99].mxu1 }
 0x1b1   : > { %v4185_v42 = vmax.f32 %v3311_v49, %v3313_v51  ;;  %v4186_v51 = vmax.f32 %v3327_v59, %v3329_v60 }
 0x1b5   : > { %v1341_v22 = vpop.f32.mrb[100].mxu0  ;;  %v1771_v32 = vpop.f32.mrb[100].mxu1 }
 0x1b6   : > { %v1539_v16 = vmax.f32 %v4184_v47, %v1341_v22  ;;  %v2712_v24 = vpop.f32.mrb[101].mxu0  ;;  %v2818_v50 = vpop.f32.mrb[101].mxu1 }
 0x1b7   : > { %v1344_v53 = vpop.f32.mrb[102].mxu0  ;;  %v1774_v7 = vpop.f32.mrb[102].mxu1 }
 0x1b8   : > { %v1969_v5 = vmax.f32 %v1539_v16, %v1771_v32  ;;  %v1540_v1 = vmax.f32 %v4185_v42, %v1344_v53  ;;  %v2713_v6 = vpop.f32.mrb[103].mxu0  ;;  %v2819_v63 = vpop.f32.mrb[103].mxu1  ;;  %v4187_v42 = vmax.f32 %v3333_v2, %v3335_v4 }
 0x1ba   : > { %v2025_v43 = vadd.f32 %v3825_v31, %v1969_v5  ;;  %v1970_v44 = vmax.f32 %v1540_v1, %v1774_v7 }
 0x1bc   : > { %v2074_v22 = vmax.f32 %v2025_v43, 0.0  ;;  %v2026_v50 = vadd.f32 %v3825_v31, %v1970_v44 }
 0x1bd   : > { %v1349_v24 = vpop.f32.mrb[104].mxu0  ;;  %v1779_v63 = vpop.f32.mrb[104].mxu1 }
 0x1be   : > { %2123 = vst [vmem:[%s3835_s24] sm:$0xff] %v2074_v22  ;;  %v2075_v49 = vmax.f32 %v2026_v50, 0.0  ;;  %v1541_v16 = vmax.f32 %v4186_v51, %v1349_v24  ;;  %v2716_v53 = vpop.f32.mrb[105].mxu0  ;;  %v2822_v47 = vpop.f32.mrb[105].mxu1 }
 0x1bf   : > { %v1352_v32 = vpop.f32.mrb[106].mxu0  ;;  %v1782_v7 = vpop.f32.mrb[106].mxu1  ;;  %v4189_v47 = vmax.f32 %v3355_v18, %v3357_v20 }
 0x1c0   : > { %2124 = vst [vmem:[%s3835_s24 + $0x8] sm:$0xff] %v2075_v49  ;;  %v1971_v5 = vmax.f32 %v1541_v16, %v1779_v63  ;;  %v1542_v1 = vmax.f32 %v4187_v42, %v1352_v32  ;;  %v2717_v6 = vpop.f32.mrb[107].mxu0  ;;  %v2823_v43 = vpop.f32.mrb[107].mxu1  ;;  %v4188_v49 = vmax.f32 %v3349_v12, %v3351_v13 }
 0x1c2   : > { %v2027_v44 = vadd.f32 %v3825_v31, %v1971_v5  ;;  %v1972_v22 = vmax.f32 %v1542_v1, %v1782_v7 }
 0x1c4   : > { %v2076_v59 = vmax.f32 %v2027_v44, 0.0  ;;  %v2028_v60 = vadd.f32 %v3825_v31, %v1972_v22  ;;  %v4190_v22 = vmax.f32 %v3371_v28, %v3373_v29 }
 0x1c5   : > { %v1357_v50 = vpop.f32.mrb[108].mxu0  ;;  %v1787_v2 = vpop.f32.mrb[108].mxu1 }
 0x1c6   : > { %2125 = vst [vmem:[%s3835_s24 + $0x10] sm:$0xff] %v2076_v59  ;;  %v2077_v24 = vmax.f32 %v2028_v60, 0.0  ;;  %v1543_v51 = vmax.f32 %v4188_v49, %v1357_v50  ;;  %v2720_v4 = vpop.f32.mrb[109].mxu0  ;;  %v2826_v16 = vpop.f32.mrb[109].mxu1  ;;  %v4191_v49 = vmax.f32 %v3377_v34, %v3379_v36 }
 0x1c7   : > { %v1360_v63 = vpop.f32.mrb[110].mxu0  ;;  %v1790_v5 = vpop.f32.mrb[110].mxu1 }
 0x1c8   : > { %2126 = vst [vmem:[%s3835_s24 + $0x18] sm:$0xff] %v2077_v24  ;;  %v1973_v53 = vmax.f32 %v1543_v51, %v1787_v2  ;;  %v1544_v32 = vmax.f32 %v4189_v47, %v1360_v63  ;;  %v2721_v42 = vpop.f32.mrb[111].mxu0  ;;  %v2827_v1 = vpop.f32.mrb[111].mxu1 }
 0x1ca   : > { %v2029_v7 = vadd.f32 %v3825_v31, %v1973_v53  ;;  %v1974_v6 = vmax.f32 %v1544_v32, %v1790_v5  ;;  %v4192_v5 = vmax.f32 %v3393_v46, %v3395_v48 }
 0x1cc   : > { %v2078_v12 = vmax.f32 %v2029_v7, 0.0  ;;  %v2030_v13 = vadd.f32 %v3825_v31, %v1974_v6 }
 0x1cd   : > { %v1365_v43 = vpop.f32.mrb[112].mxu0  ;;  %v1795_v18 = vpop.f32.mrb[112].mxu1 }
 0x1ce   : > { %2127 = vst [vmem:[%s3835_s24 + $0x20] sm:$0xff] %v2078_v12  ;;  %v2079_v44 = vmax.f32 %v2030_v13, 0.0  ;;  %v1545_v59 = vmax.f32 %v4190_v22, %v1365_v43  ;;  %v2724_v20 = vpop.f32.mrb[113].mxu0  ;;  %v2830_v60 = vpop.f32.mrb[113].mxu1  ;;  %v4193_v12 = vmax.f32 %v3399_v56, %v3401_v58 }
 0x1cf   : > { %v1368_v50 = vpop.f32.mrb[114].mxu0  ;;  %v1798_v2 = vpop.f32.mrb[114].mxu1 }
 0x1d0   : > { %2128 = vst [vmem:[%s3835_s24 + $0x28] sm:$0xff] %v2079_v44  ;;  %v1975_v24 = vmax.f32 %v1545_v59, %v1795_v18  ;;  %v1546_v51 = vmax.f32 %v4191_v49, %v1368_v50  ;;  %v2725_v4 = vpop.f32.mrb[115].mxu0  ;;  %v2831_v16 = vpop.f32.mrb[115].mxu1  ;;  %v4194_v50 = vmax.f32 %v3415_v9, %v3417_v10 }
 0x1d1   : > { %v4195_v4 = vmax.f32 %v3421_v19, %v3423_v23 }
 0x1d2   : > { %v2031_v63 = vadd.f32 %v3825_v31, %v1975_v24  ;;  %v1976_v53 = vmax.f32 %v1546_v51, %v1798_v2 }
 0x1d4   : > { %v2080_v28 = vmax.f32 %v2031_v63, 0.0  ;;  %v2032_v29 = vadd.f32 %v3825_v31, %v1976_v53 }
 0x1d5   : > { %v1373_v47 = vpop.f32.mrb[116].mxu0  ;;  %v1803_v34 = vpop.f32.mrb[116].mxu1 }
 0x1d6   : > { %2129 = vst [vmem:[%s3835_s24 + $0x30] sm:$0xff] %v2080_v28  ;;  %v2081_v32 = vmax.f32 %v2032_v29, 0.0  ;;  %v1547_v42 = vmax.f32 %v4192_v5, %v1373_v47  ;;  %v2728_v36 = vpop.f32.mrb[117].mxu0  ;;  %v2834_v1 = vpop.f32.mrb[117].mxu1 }
 0x1d7   : > { %v1376_v7 = vpop.f32.mrb[118].mxu0  ;;  %v1806_v43 = vpop.f32.mrb[118].mxu1 }
 0x1d8   : > { %2130 = vst [vmem:[%s3835_s24 + $0x38] sm:$0xff] %v2081_v32  ;;  %v1977_v6 = vmax.f32 %v1547_v42, %v1803_v34  ;;  %v1548_v13 = vmax.f32 %v4193_v12, %v1376_v7  ;;  %v2729_v44 = vpop.f32.mrb[119].mxu0  ;;  %v2835_v22 = vpop.f32.mrb[119].mxu1  ;;  %v4196_v42 = vmax.f32 %v3437_v35, %v3439_v37 }
 0x1da   : > { %v2033_v59 = vadd.f32 %v3825_v31, %v1977_v6  ;;  %v1978_v18 = vmax.f32 %v1548_v13, %v1806_v43  ;;  %v4197_v6 = vmax.f32 %v3443_v45, %v3445_v52 }
 0x1dc   : > { %v2082_v46 = vmax.f32 %v2033_v59, 0.0  ;;  %v2034_v48 = vadd.f32 %v3825_v31, %v1978_v18 }
 0x1dd   : > { %v1381_v20 = vpop.f32.mrb[120].mxu0  ;;  %v1811_v56 = vpop.f32.mrb[120].mxu1 }
 0x1de   : > { %2131 = vst [vmem:[%s3835_s24 + $0x40] sm:$0xff] %v2082_v46  ;;  %v2083_v60 = vmax.f32 %v2034_v48, 0.0  ;;  %v1549_v24 = vmax.f32 %v4194_v50, %v1381_v20  ;;  %v2732_v58 = vpop.f32.mrb[121].mxu0  ;;  %v2838_v49 = vpop.f32.mrb[121].mxu1  ;;  %v4198_v48 = vmax.f32 %v3459_v8, %v3461_v11 }
 0x1df   : > { %v1384_v51 = vpop.f32.mrb[122].mxu0  ;;  %v1814_v63 = vpop.f32.mrb[122].mxu1 }
 0x1e0   : > { %2132 = vst [vmem:[%s3835_s24 + $0x48] sm:$0xff] %v2083_v60  ;;  %v1979_v2 = vmax.f32 %v1549_v24, %v1811_v56  ;;  %v1550_v16 = vmax.f32 %v4195_v4, %v1384_v51  ;;  %v2733_v53 = vpop.f32.mrb[123].mxu0  ;;  %v2839_v28 = vpop.f32.mrb[123].mxu1  ;;  %v4199_v56 = vmax.f32 %v3465_v26, %v3467_v30 }
 0x1e1   : > { %v4200_v28 = vmax.f32 %v3481_v61, %v3483_v0 }
 0x1e2   : > { %v2035_v29 = vadd.f32 %v3825_v31, %v1979_v2  ;;  %v1980_v47 = vmax.f32 %v1550_v16, %v1814_v63 }
 0x1e4   : > { %v2084_v9 = vmax.f32 %v2035_v29, 0.0  ;;  %v2036_v10 = vadd.f32 %v3825_v31, %v1980_v47 }
 0x1e5   : > { %v1389_v32 = vpop.f32.mrb[124].mxu0  ;;  %v1819_v19 = vpop.f32.mrb[124].mxu1 }
 0x1e6   : > { %2133 = vst [vmem:[%s3835_s24 + $0x50] sm:$0xff] %v2084_v9  ;;  %v2085_v5 = vmax.f32 %v2036_v10, 0.0  ;;  %v1551_v34 = vmax.f32 %v4196_v42, %v1389_v32  ;;  %v2736_v23 = vpop.f32.mrb[125].mxu0  ;;  %v2842_v36 = vpop.f32.mrb[125].mxu1  ;;  %v4201_v32 = vmax.f32 %v3487_v17, %v3489_v27 }
 0x1e7   : > { %v1392_v1 = vpop.f32.mrb[126].mxu0  ;;  %v1822_v13 = vpop.f32.mrb[126].mxu1 }
 0x1e8   : > { %2134 = vst [vmem:[%s3835_s24 + $0x58] sm:$0xff] %v2085_v5  ;;  %v1981_v7 = vmax.f32 %v1551_v34, %v1819_v19  ;;  %v1552_v12 = vmax.f32 %v4197_v6, %v1392_v1  ;;  %v2737_v43 = vpop.f32.mrb[127].mxu0  ;;  %v2843_v44 = vpop.f32.mrb[127].mxu1  ;;  %v4202_v6 = vmax.f32 %v3503_v3, %v3505_v14 }
 0x1ea   : > { %v2037_v22 = vadd.f32 %v3825_v31, %v1981_v7  ;;  %v1982_v59 = vmax.f32 %v1552_v12, %v1822_v13 }
 0x1ec   : > { %v2086_v35 = vmax.f32 %v2037_v22, 0.0  ;;  %v2038_v37 = vadd.f32 %v3825_v31, %v1982_v59  ;;  %v4203_v22 = vmax.f32 %v3509_v39, %v3511_v21 }
 0x1ed   : > { %v1397_v18 = vpop.f32.mrb[128].mxu0  ;;  %v1827_v45 = vpop.f32.mrb[128].mxu1 }
 0x1ee   : > { %2135 = vst [vmem:[%s3835_s24 + $0x60] sm:$0xff] %v2086_v35  ;;  %v2087_v46 = vmax.f32 %v2038_v37, 0.0  ;;  %v1553_v20 = vmax.f32 %v4198_v48, %v1397_v18  ;;  %v2740_v52 = vpop.f32.mrb[129].mxu0  ;;  %v2846_v60 = vpop.f32.mrb[129].mxu1 }
 0x1ef   : > { %v1400_v50 = vpop.f32.mrb[130].mxu0  ;;  %v1830_v49 = vpop.f32.mrb[130].mxu1  ;;  %v4204_v52 = vmax.f32 %v3525_v57, %v3527_v33 }
 0x1f0   : > { %2136 = vst [vmem:[%s3835_s24 + $0x68] sm:$0xff] %v2087_v46  ;;  %v1983_v24 = vmax.f32 %v1553_v20, %v1827_v45  ;;  %v1554_v58 = vmax.f32 %v4199_v56, %v1400_v50  ;;  %v2741_v51 = vpop.f32.mrb[131].mxu0  ;;  %v2847_v2 = vpop.f32.mrb[131].mxu1 }
 0x1f2   : > { %v2039_v4 = vadd.f32 %v3825_v31, %v1983_v24  ;;  %v1984_v16 = vmax.f32 %v1554_v58, %v1830_v49  ;;  %v4205_v58 = vmax.f32 %v3531_v41, %v3533_v15 }
 0x1f4   : > { %v2088_v8 = vmax.f32 %v2039_v4, 0.0  ;;  %v2040_v11 = vadd.f32 %v3825_v31, %v1984_v16 }
 0x1f5   : > { %v1405_v63 = vpop.f32.mrb[132].mxu0  ;;  %v1835_v26 = vpop.f32.mrb[132].mxu1 }
 0x1f6   : > { %2137 = vst [vmem:[%s3835_s24 + $0x70] sm:$0xff] %v2088_v8  ;;  %v2089_v53 = vmax.f32 %v2040_v11, 0.0  ;;  %v1555_v29 = vmax.f32 %v4200_v28, %v1405_v63  ;;  %v2744_v30 = vpop.f32.mrb[133].mxu0  ;;  %v2850_v47 = vpop.f32.mrb[133].mxu1 }
 0x1f7   : > { %v1408_v9 = vpop.f32.mrb[134].mxu0  ;;  %v1838_v42 = vpop.f32.mrb[134].mxu1  ;;  %v4207_v47 = vld [vmem:[#allocation2_spill] sm:$0xff] }
 0x1f8   : > { %2138 = vst [vmem:[%s3835_s24 + $0x78] sm:$0xff] %v2089_v53  ;;  %v1985_v10 = vmax.f32 %v1555_v29, %v1835_v26  ;;  %v1556_v5 = vmax.f32 %v4201_v32, %v1408_v9  ;;  %v2745_v34 = vpop.f32.mrb[135].mxu0  ;;  %v2851_v19 = vpop.f32.mrb[135].mxu1  ;;  %v4206_v53 = vmax.f32 %v3547_v62, %v3549_v25  ;;  %v4208_v9 = vmax.f32 %v3553_v54, %v4207_v47 }
 0x1fa   : > { %v2041_v23 = vadd.f32 %v3825_v31, %v1985_v10  ;;  %v1986_v36 = vmax.f32 %v1556_v5, %v1838_v42 }
 0x1fc   : > { %v2090_v61 = vmax.f32 %v2041_v23, 0.0  ;;  %v2042_v0 = vadd.f32 %v3825_v31, %v1986_v36 }
 0x1fd   : > { %v1413_v1 = vpop.f32.mrb[136].mxu0  ;;  %v1843_v17 = vpop.f32.mrb[136].mxu1 }
 0x1fe   : > { %2139 = vst [vmem:[%s3835_s24 + $0x80] sm:$0xff] %v2090_v61  ;;  %v2091_v7 = vmax.f32 %v2042_v0, 0.0  ;;  %v1557_v12 = vmax.f32 %v4202_v6, %v1413_v1  ;;  %v2748_v27 = vpop.f32.mrb[137].mxu0  ;;  %v2854_v13 = vpop.f32.mrb[137].mxu1  ;;  %v4209_v61 = vld [vmem:[#allocation3_spill] sm:$0xff]  ;;  %v4210_v0 = vld [vmem:[#allocation4_spill] sm:$0xff] }
 0x1ff   : > { %v1416_v43 = vpop.f32.mrb[138].mxu0  ;;  %v1846_v35 = vpop.f32.mrb[138].mxu1  ;;  %v4211_v1 = vmax.f32 %v4209_v61, %v4210_v0  ;;  %v4212_v13 = vld [vmem:[#allocation5_spill] sm:$0xff] }
 0x200   : > { %2140 = vst [vmem:[%s3835_s24 + $0x88] sm:$0xff] %v2091_v7  ;;  %v1987_v44 = vmax.f32 %v1557_v12, %v1843_v17  ;;  %v1558_v59 = vmax.f32 %v4203_v22, %v1416_v43  ;;  %v2749_v37 = vpop.f32.mrb[139].mxu0  ;;  %v2855_v18 = vpop.f32.mrb[139].mxu1  ;;  %v4213_v43 = vld [vmem:[#allocation6_spill] sm:$0xff] }
 0x202   : > { %v2043_v46 = vadd.f32 %v3825_v31, %v1987_v44  ;;  %v1988_v48 = vmax.f32 %v1558_v59, %v1846_v35  ;;  %v4214_v44 = vmax.f32 %v4212_v13, %v4213_v43 }
 0x204   : > { %v2092_v3 = vmax.f32 %v2043_v46, 0.0  ;;  %v2044_v14 = vadd.f32 %v3825_v31, %v1988_v48 }
 0x205   : > { %v1421_v20 = vpop.f32.mrb[140].mxu0  ;;  %v1851_v21 = vpop.f32.mrb[140].mxu1 }
 0x206   : > { %2141 = vst [vmem:[%s3835_s24 + $0x90] sm:$0xff] %v2092_v3  ;;  %v2093_v45 = vmax.f32 %v2044_v14, 0.0  ;;  %v1559_v60 = vmax.f32 %v4204_v52, %v1421_v20  ;;  %v2752_v39 = vpop.f32.mrb[141].mxu0  ;;  %v2858_v50 = vpop.f32.mrb[141].mxu1  ;;  %v4216_v52 = vld [vmem:[#allocation8_spill] sm:$0xff] }
 0x207   : > { %v1424_v24 = vpop.f32.mrb[142].mxu0  ;;  %v1854_v51 = vpop.f32.mrb[142].mxu1 }
 0x208   : > { %2142 = vst [vmem:[%s3835_s24 + $0x98] sm:$0xff] %v2093_v45  ;;  %v1989_v56 = vmax.f32 %v1559_v60, %v1851_v21  ;;  %v1560_v49 = vmax.f32 %v4205_v58, %v1424_v24  ;;  %v2753_v2 = vpop.f32.mrb[143].mxu0  ;;  %v2859_v4 = vpop.f32.mrb[143].mxu1  ;;  %v4215_v45 = vld [vmem:[#allocation7_spill] sm:$0xff] }
 0x209   : > { %v4217_v60 = vmax.f32 %v4215_v45, %v4216_v52 }
 0x20a   : > { %v2045_v16 = vadd.f32 %v3825_v31, %v1989_v56  ;;  %v1990_v8 = vmax.f32 %v1560_v49, %v1854_v51  ;;  %v4218_v49 = vld [vmem:[#allocation9_spill] sm:$0xff]  ;;  %v4219_v51 = vld [vmem:[#allocation10_spill] sm:$0xff] }
 0x20b   : > { %v4220_v2 = vmax.f32 %v4218_v49, %v4219_v51 }
 0x20c   : > { %v2094_v57 = vmax.f32 %v2045_v16, 0.0  ;;  %v2046_v33 = vadd.f32 %v3825_v31, %v1990_v8 }
 0x20d   : > { %v1429_v11 = vpop.f32.mrb[144].mxu0  ;;  %v1859_v15 = vpop.f32.mrb[144].mxu1 }
 0x20e   : > { %2143 = vst [vmem:[%s3835_s24 + $0xa0] sm:$0xff] %v2094_v57  ;;  %v2095_v63 = vmax.f32 %v2046_v33, 0.0  ;;  %v1561_v28 = vmax.f32 %v4206_v53, %v1429_v11  ;;  %v2756_v41 = vpop.f32.mrb[145].mxu0  ;;  %v2862_v29 = vpop.f32.mrb[145].mxu1 }
 0x20f   : > { %v1432_v26 = vpop.f32.mrb[146].mxu0  ;;  %v1862_v32 = vpop.f32.mrb[146].mxu1  ;;  %v4221_v41 = vld [vmem:[#allocation11_spill] sm:$0xff]  ;;  %v4222_v29 = vld [vmem:[#allocation12_spill] sm:$0xff] }
 0x210   : > { %2144 = vst [vmem:[%s3835_s24 + $0xa8] sm:$0xff] %v2095_v63  ;;  %v1991_v30 = vmax.f32 %v1561_v28, %v1859_v15  ;;  %v1562_v10 = vmax.f32 %v4208_v9, %v1432_v26  ;;  %v2757_v5 = vpop.f32.mrb[147].mxu0  ;;  %v2863_v42 = vpop.f32.mrb[147].mxu1  ;;  %v4223_v26 = vmax.f32 %v4221_v41, %v4222_v29 }
 0x211   : > { %v4224_v42 = vld [vmem:[#allocation13_spill] sm:$0xff] }
 0x212   : > { %v2047_v34 = vadd.f32 %v3825_v31, %v1991_v30  ;;  %v1992_v19 = vmax.f32 %v1562_v10, %v1862_v32 }
 0x214   : > { %v2096_v62 = vmax.f32 %v2047_v34, 0.0  ;;  %v2048_v25 = vadd.f32 %v3825_v31, %v1992_v19  ;;  %v4225_v34 = vld [vmem:[#allocation14_spill] sm:$0xff] }
 0x215   : > { %v1437_v23 = vpop.f32.mrb[148].mxu0  ;;  %v1867_v54 = vpop.f32.mrb[148].mxu1  ;;  %v4226_v19 = vmax.f32 %v4224_v42, %v4225_v34 }
 0x216   : > { %2145 = vst [vmem:[%s3835_s24 + $0xb0] sm:$0xff] %v2096_v62  ;;  %v2097_v36 = vmax.f32 %v2048_v25, 0.0  ;;  %v1563_v7 = vmax.f32 %v4211_v1, %v1437_v23  ;;  %v2760_v6 = vpop.f32.mrb[149].mxu0  ;;  %v2866_v12 = vpop.f32.mrb[149].mxu1 }
 0x217   : > { %v1440_v17 = vpop.f32.mrb[150].mxu0  ;;  %v1870_v59 = vpop.f32.mrb[150].mxu1  ;;  %v4227_v12 = vld [vmem:[#allocation15_spill] sm:$0xff] }
 0x218   : > { %2146 = vst [vmem:[%s3835_s24 + $0xb8] sm:$0xff] %v2097_v36  ;;  %v1993_v27 = vmax.f32 %v1563_v7, %v1867_v54  ;;  %v1564_v22 = vmax.f32 %v4214_v44, %v1440_v17  ;;  %v2761_v35 = vpop.f32.mrb[151].mxu0  ;;  %v2867_v37 = vpop.f32.mrb[151].mxu1  ;;  %v4228_v17 = vld [vmem:[#allocation16_spill] sm:$0xff] }
 0x219   : > { %v4230_v37 = vld [vmem:[#allocation17_spill] sm:$0xff] }
 0x21a   : > { %v2049_v18 = vadd.f32 %v3825_v31, %v1993_v27  ;;  %v1994_v46 = vmax.f32 %v1564_v22, %v1870_v59  ;;  %v4229_v27 = vmax.f32 %v4227_v12, %v4228_v17 }
 0x21c   : > { %v2098_v48 = vmax.f32 %v2049_v18, 0.0  ;;  %v2050_v3 = vadd.f32 %v3825_v31, %v1994_v46  ;;  %v4231_v18 = vld [vmem:[#allocation18_spill] sm:$0xff] }
 0x21d   : > { %v1445_v14 = vpop.f32.mrb[152].mxu0  ;;  %v1875_v39 = vpop.f32.mrb[152].mxu1  ;;  %v4232_v46 = vmax.f32 %v4230_v37, %v4231_v18 }
 0x21e   : > { %2147 = vst [vmem:[%s3835_s24 + $0xc0] sm:$0xff] %v2098_v48  ;;  %v2099_v20 = vmax.f32 %v2050_v3, 0.0  ;;  %v1565_v21 = vmax.f32 %v4217_v60, %v1445_v14  ;;  %v2764_v50 = vpop.f32.mrb[153].mxu0  ;;  %v2870_v24 = vpop.f32.mrb[153].mxu1 }
 0x21f   : > { %v1448_v56 = vpop.f32.mrb[154].mxu0  ;;  %v1878_v16 = vpop.f32.mrb[154].mxu1  ;;  %v4233_v24 = vld [vmem:[#allocation19_spill] sm:$0xff] }
 0x220   : > { %2148 = vst [vmem:[%s3835_s24 + $0xc8] sm:$0xff] %v2099_v20  ;;  %v1995_v58 = vmax.f32 %v1565_v21, %v1875_v39  ;;  %v1566_v4 = vmax.f32 %v4220_v2, %v1448_v56  ;;  %v2765_v8 = vpop.f32.mrb[155].mxu0  ;;  %v2871_v57 = vpop.f32.mrb[155].mxu1  ;;  %v4234_v56 = vld [vmem:[#allocation20_spill] sm:$0xff] }
 0x221   : > { %v4236_v57 = vld [vmem:[#allocation21_spill] sm:$0xff] }
 0x222   : > { %v2051_v33 = vadd.f32 %v3825_v31, %v1995_v58  ;;  %v1996_v11 = vmax.f32 %v1566_v4, %v1878_v16  ;;  %v4235_v58 = vmax.f32 %v4233_v24, %v4234_v56 }
 0x224   : > { %v2100_v63 = vmax.f32 %v2051_v33, 0.0  ;;  %v2052_v53 = vadd.f32 %v3825_v31, %v1996_v11  ;;  %v4237_v33 = vld [vmem:[#allocation22_spill] sm:$0xff] }
 0x225   : > { %v1453_v28 = vpop.f32.mrb[156].mxu0  ;;  %v1883_v47 = vpop.f32.mrb[156].mxu1  ;;  %v4238_v11 = vmax.f32 %v4236_v57, %v4237_v33 }
 0x226   : > { %2149 = vst [vmem:[%s3835_s24 + $0xd0] sm:$0xff] %v2100_v63  ;;  %v2101_v15 = vmax.f32 %v2052_v53, 0.0  ;;  %v1567_v30 = vmax.f32 %v4223_v26, %v1453_v28  ;;  %v2768_v9 = vpop.f32.mrb[157].mxu0  ;;  %v2874_v10 = vpop.f32.mrb[157].mxu1 }
 0x227   : > { %v1456_v32 = vpop.f32.mrb[158].mxu0  ;;  %v1886_v25 = vpop.f32.mrb[158].mxu1  ;;  %v4239_v10 = vld [vmem:[#allocation23_spill] sm:$0xff] }
 0x228   : > { %2150 = vst [vmem:[%s3835_s24 + $0xd8] sm:$0xff] %v2101_v15  ;;  %v1997_v5 = vmax.f32 %v1567_v30, %v1883_v47  ;;  %v1568_v62 = vmax.f32 %v4226_v19, %v1456_v32  ;;  %v2769_v23 = vpop.f32.mrb[159].mxu0  ;;  %v2875_v36 = vpop.f32.mrb[159].mxu1  ;;  %v4240_v32 = vld [vmem:[#allocation24_spill] sm:$0xff] }
 0x229   : > { %v4242_v36 = vld [vmem:[#allocation25_spill] sm:$0xff] }
 0x22a   : > { %v2053_v61 = vadd.f32 %v3825_v31, %v1997_v5  ;;  %v1998_v0 = vmax.f32 %v1568_v62, %v1886_v25  ;;  %v4241_v5 = vmax.f32 %v4239_v10, %v4240_v32 }
 0x22c   : > { %v2102_v1 = vmax.f32 %v2053_v61, 0.0  ;;  %v2054_v7 = vadd.f32 %v3825_v31, %v1998_v0  ;;  %v4243_v61 = vld [vmem:[#allocation26_spill] sm:$0xff] }
 0x22d   : > { %v1461_v54 = vpop.f32.mrb[160].mxu0  ;;  %v1891_v43 = vpop.f32.mrb[160].mxu1  ;;  %v4244_v0 = vmax.f32 %v4242_v36, %v4243_v61 }
 0x22e   : > { %2151 = vst [vmem:[%s3835_s24 + $0xe0] sm:$0xff] %v2102_v1  ;;  %v2103_v6 = vmax.f32 %v2054_v7, 0.0  ;;  %v1569_v13 = vmax.f32 %v4229_v27, %v1461_v54  ;;  %v2772_v44 = vpop.f32.mrb[161].mxu0  ;;  %v2878_v22 = vpop.f32.mrb[161].mxu1 }
 0x22f   : > { %v1464_v59 = vpop.f32.mrb[162].mxu0  ;;  %v1894_v3 = vpop.f32.mrb[162].mxu1  ;;  %v4245_v22 = vld [vmem:[#allocation27_spill] sm:$0xff] }
 0x230   : > { %2152 = vst [vmem:[%s3835_s24 + $0xe8] sm:$0xff] %v2103_v6  ;;  %v1999_v35 = vmax.f32 %v1569_v13, %v1891_v43  ;;  %v1570_v48 = vmax.f32 %v4232_v46, %v1464_v59  ;;  %v2773_v14 = vpop.f32.mrb[163].mxu0  ;;  %v2879_v20 = vpop.f32.mrb[163].mxu1  ;;  %v4246_v59 = vld [vmem:[#allocation28_spill] sm:$0xff] }
 0x231   : > { %v4248_v20 = vld [vmem:[#allocation29_spill] sm:$0xff] }
 0x232   : > { %v2055_v45 = vadd.f32 %v3825_v31, %v1999_v35  ;;  %v2000_v52 = vmax.f32 %v1570_v48, %v1894_v3  ;;  %v4247_v35 = vmax.f32 %v4245_v22, %v4246_v59 }
 0x234   : > { %v2104_v60 = vmax.f32 %v2055_v45, 0.0  ;;  %v2056_v21 = vadd.f32 %v3825_v31, %v2000_v52  ;;  %v4249_v45 = vld [vmem:[#allocation30_spill] sm:$0xff] }
 0x235   : > { %v1469_v39 = vpop.f32.mrb[164].mxu0  ;;  %v1899_v51 = vpop.f32.mrb[164].mxu1  ;;  %v4250_v52 = vmax.f32 %v4248_v20, %v4249_v45 }
 0x236   : > { %2153 = vst [vmem:[%s3835_s24 + $0xf0] sm:$0xff] %v2104_v60  ;;  %v2105_v50 = vmax.f32 %v2056_v21, 0.0  ;;  %v1571_v49 = vmax.f32 %v4235_v58, %v1469_v39  ;;  %v2776_v2 = vpop.f32.mrb[165].mxu0  ;;  %v2882_v4 = vpop.f32.mrb[165].mxu1 }
 0x237   : > { %v1472_v16 = vpop.f32.mrb[166].mxu0  ;;  %v1902_v53 = vpop.f32.mrb[166].mxu1  ;;  %v4251_v4 = vld [vmem:[#allocation31_spill] sm:$0xff] }
 0x238   : > { %2154 = vst [vmem:[%s3835_s24 + $0xf8] sm:$0xff] %v2105_v50  ;;  %v2001_v8 = vmax.f32 %v1571_v49, %v1899_v51  ;;  %v1572_v63 = vmax.f32 %v4238_v11, %v1472_v16  ;;  %v2777_v28 = vpop.f32.mrb[167].mxu0  ;;  %v2883_v15 = vpop.f32.mrb[167].mxu1  ;;  %v4252_v16 = vld [vmem:[#allocation32_spill] sm:$0xff] }
 0x239   : > { %v4254_v15 = vld [vmem:[#allocation33_spill] sm:$0xff] }
 0x23a   : > { %v2057_v41 = vadd.f32 %v3825_v31, %v2001_v8  ;;  %v2002_v29 = vmax.f32 %v1572_v63, %v1902_v53  ;;  %v4253_v8 = vmax.f32 %v4251_v4, %v4252_v16 }
 0x23c   : > { %v2106_v26 = vmax.f32 %v2057_v41, 0.0  ;;  %v2058_v30 = vadd.f32 %v3825_v31, %v2002_v29  ;;  %v4255_v41 = vld [vmem:[#allocation34_spill] sm:$0xff] }
 0x23d   : > { %v1477_v47 = vpop.f32.mrb[168].mxu0  ;;  %v1907_v34 = vpop.f32.mrb[168].mxu1  ;;  %v4256_v29 = vmax.f32 %v4254_v15, %v4255_v41 }
 0x23e   : > { %2155 = vst [vmem:[%s3835_s24 + $0x100] sm:$0xff] %v2106_v26  ;;  %v2107_v9 = vmax.f32 %v2058_v30, 0.0  ;;  %v1573_v42 = vmax.f32 %v4241_v5, %v1477_v47  ;;  %v2780_v19 = vpop.f32.mrb[169].mxu0  ;;  %v2886_v62 = vpop.f32.mrb[169].mxu1 }
 0x23f   : > { %v1480_v25 = vpop.f32.mrb[170].mxu0  ;;  %v1910_v7 = vpop.f32.mrb[170].mxu1  ;;  %v4257_v62 = vld [vmem:[#allocation35_spill] sm:$0xff] }
 0x240   : > { %2156 = vst [vmem:[%s3835_s24 + $0x108] sm:$0xff] %v2107_v9  ;;  %v2003_v23 = vmax.f32 %v1573_v42, %v1907_v34  ;;  %v1574_v1 = vmax.f32 %v4244_v0, %v1480_v25  ;;  %v2781_v54 = vpop.f32.mrb[171].mxu0  ;;  %v2887_v6 = vpop.f32.mrb[171].mxu1  ;;  %v4258_v25 = vld [vmem:[#allocation36_spill] sm:$0xff] }
 0x241   : > { %v4260_v6 = vld [vmem:[#allocation37_spill] sm:$0xff] }
 0x242   : > { %v2059_v12 = vadd.f32 %v3825_v31, %v2003_v23  ;;  %v2004_v17 = vmax.f32 %v1574_v1, %v1910_v7  ;;  %v4259_v23 = vmax.f32 %v4257_v62, %v4258_v25 }
 0x244   : > { %v2108_v27 = vmax.f32 %v2059_v12, 0.0  ;;  %v2060_v13 = vadd.f32 %v3825_v31, %v2004_v17  ;;  %v4261_v12 = vld [vmem:[#allocation38_spill] sm:$0xff] }
 0x245   : > { %v1485_v43 = vpop.f32.mrb[172].mxu0  ;;  %v1915_v18 = vpop.f32.mrb[172].mxu1  ;;  %v4262_v17 = vmax.f32 %v4260_v6, %v4261_v12 }
 0x246   : > { %2157 = vst [vmem:[%s3835_s24 + $0x110] sm:$0xff] %v2108_v27  ;;  %v2109_v44 = vmax.f32 %v2060_v13, 0.0  ;;  %v1575_v37 = vmax.f32 %v4247_v35, %v1485_v43  ;;  %v2784_v46 = vpop.f32.mrb[173].mxu0  ;;  %v2890_v48 = vpop.f32.mrb[173].mxu1 }
 0x247   : > { %v1488_v3 = vpop.f32.mrb[174].mxu0  ;;  %v1918_v21 = vpop.f32.mrb[174].mxu1  ;;  %v4263_v48 = vmax.f32 %v3767_v38, %v3769_v55 }
 0x248   : > { %2158 = vst [vmem:[%s3835_s24 + $0x118] sm:$0xff] %v2109_v44  ;;  %v2005_v14 = vmax.f32 %v1575_v37, %v1915_v18  ;;  %v1576_v60 = vmax.f32 %v4250_v52, %v1488_v3  ;;  %v2785_v39 = vpop.f32.mrb[175].mxu0  ;;  %v2891_v50 = vpop.f32.mrb[175].mxu1 }
 0x249   : > { %v4265_v39 = vld [vmem:[#allocation40_spill] sm:$0xff] }
 0x24a   : > { %v2061_v24 = vadd.f32 %v3825_v31, %v2005_v14  ;;  %v2006_v56 = vmax.f32 %v1576_v60, %v1918_v21  ;;  %v4264_v21 = vld [vmem:[#allocation39_spill] sm:$0xff] }
 0x24b   : > { %v4266_v50 = vmax.f32 %v4264_v21, %v4265_v39 }
 0x24c   : > { %v2110_v58 = vmax.f32 %v2061_v24, 0.0  ;;  %v2062_v49 = vadd.f32 %v3825_v31, %v2006_v56 }
 0x24d   : > { %v1493_v51 = vpop.f32.mrb[176].mxu0  ;;  %v1923_v33 = vpop.f32.mrb[176].mxu1 }
 0x24e   : > { %2159 = vst [vmem:[%s3835_s24 + $0x120] sm:$0xff] %v2110_v58  ;;  %v2111_v2 = vmax.f32 %v2062_v49, 0.0  ;;  %v1577_v57 = vmax.f32 %v4253_v8, %v1493_v51  ;;  %v2788_v11 = vpop.f32.mrb[177].mxu0  ;;  %v2894_v63 = vpop.f32.mrb[177].mxu1  ;;  %v4267_v8 = vld [vmem:[#allocation41_spill] sm:$0xff] }
 0x24f   : > { %v1496_v53 = vpop.f32.mrb[178].mxu0  ;;  %v1926_v30 = vpop.f32.mrb[178].mxu1 }
 0x250   : > { %2160 = vst [vmem:[%s3835_s24 + $0x128] sm:$0xff] %v2111_v2  ;;  %v2007_v28 = vmax.f32 %v1577_v57, %v1923_v33  ;;  %v1578_v26 = vmax.f32 %v4256_v29, %v1496_v53  ;;  %v2789_v47 = vpop.f32.mrb[179].mxu0  ;;  %v2895_v9 = vpop.f32.mrb[179].mxu1  ;;  %v4268_v57 = vld [vmem:[#allocation42_spill] sm:$0xff]  ;;  %v4270_v29 = vld [vmem:[#allocation43_spill] sm:$0xff] }
 0x251   : > { %v4269_v33 = vmax.f32 %v4267_v8, %v4268_v57 }
 0x252   : > { %v2063_v10 = vadd.f32 %v3825_v31, %v2007_v28  ;;  %v2008_v32 = vmax.f32 %v1578_v26, %v1926_v30  ;;  %v4271_v26 = vld [vmem:[#allocation44_spill] sm:$0xff] }
 0x253   : > { %v4272_v30 = vmax.f32 %v4270_v29, %v4271_v26 }
 0x254   : > { %v2112_v5 = vmax.f32 %v2063_v10, 0.0  ;;  %v2064_v42 = vadd.f32 %v3825_v31, %v2008_v32 }
 0x255   : > { %v1501_v34 = vpop.f32.mrb[180].mxu0  ;;  %v1931_v61 = vpop.f32.mrb[180].mxu1 }
 0x256   : > { %2161 = vst [vmem:[%s3835_s24 + $0x130] sm:$0xff] %v2112_v5  ;;  %v2113_v19 = vmax.f32 %v2064_v42, 0.0  ;;  %v1579_v36 = vmax.f32 %v4259_v23, %v1501_v34  ;;  %v2792_v0 = vpop.f32.mrb[181].mxu0  ;;  %v2898_v1 = vpop.f32.mrb[181].mxu1  ;;  %v4273_v23 = vld [vmem:[#allocation45_spill] sm:$0xff] }
 0x257   : > { %v1504_v7 = vpop.f32.mrb[182].mxu0  ;;  %v1934_v13 = vpop.f32.mrb[182].mxu1 }
 0x258   : > { %2162 = vst [vmem:[%s3835_s24 + $0x138] sm:$0xff] %v2113_v19  ;;  %v2009_v54 = vmax.f32 %v1579_v36, %v1931_v61  ;;  %v1580_v27 = vmax.f32 %v4262_v17, %v1504_v7  ;;  %v2793_v43 = vpop.f32.mrb[183].mxu0  ;;  %v2899_v44 = vpop.f32.mrb[183].mxu1  ;;  %v4274_v36 = vld [vmem:[#allocation46_spill] sm:$0xff]  ;;  %v4276_v17 = vld [vmem:[#allocation47_spill] sm:$0xff] }
 0x259   : > { %v4275_v61 = vmax.f32 %v4273_v23, %v4274_v36 }
 0x25a   : > { %v2065_v22 = vadd.f32 %v3825_v31, %v2009_v54  ;;  %v2010_v59 = vmax.f32 %v1580_v27, %v1934_v13  ;;  %v4277_v27 = vld [vmem:[#allocation48_spill] sm:$0xff] }
 0x25b   : > { %v4278_v13 = vmax.f32 %v4276_v17, %v4277_v27 }
 0x25c   : > { %v2114_v35 = vmax.f32 %v2065_v22, 0.0  ;;  %v2066_v37 = vadd.f32 %v3825_v31, %v2010_v59 }
 0x25d   : > { %v1509_v18 = vpop.f32.mrb[184].mxu0  ;;  %v1939_v14 = vpop.f32.mrb[184].mxu1 }
 0x25e   : > { %2163 = vst [vmem:[%s3835_s24 + $0x140] sm:$0xff] %v2114_v35  ;;  %v2115_v46 = vmax.f32 %v2066_v37, 0.0  ;;  %v1581_v3 = vmax.f32 %v4263_v48, %v1509_v18  ;;  %v2796_v20 = vpop.f32.mrb[185].mxu0  ;;  %v2902_v45 = vpop.f32.mrb[185].mxu1 }
 0x25f   : > { %v1512_v52 = vpop.f32.mrb[186].mxu0  ;;  %v1942_v56 = vpop.f32.mrb[186].mxu1 }
 0x260   : > { %2164 = vst [vmem:[%s3835_s24 + $0x148] sm:$0xff] %v2115_v46  ;;  %v2011_v60 = vmax.f32 %v1581_v3, %v1939_v14  ;;  %v1582_v24 = vmax.f32 %v4266_v50, %v1512_v52  ;;  %v2797_v58 = vpop.f32.mrb[187].mxu0  ;;  %v2903_v49 = vpop.f32.mrb[187].mxu1  ;;  %v4279_v14 = vld [vmem:[#allocation49_spill] sm:$0xff] }
 0x261   : > { %v4280_v20 = vmax.f32 %v3813_v40, %v4279_v14 }
 0x262   : > { %v2067_v51 = vadd.f32 %v3825_v31, %v2011_v60  ;;  %v2012_v2 = vmax.f32 %v1582_v24, %v1942_v56 }
 0x264   : > { %v2116_v38 = vmax.f32 %v2067_v51, 0.0  ;;  %v2068_v55 = vadd.f32 %v3825_v31, %v2012_v2 }
 0x265   : > { %v1517_v4 = vpop.f32.mrb[188].mxu0  ;;  %v1947_v63 = vpop.f32.mrb[188].mxu1 }
 0x266   : > { %2165 = vst [vmem:[%s3835_s24 + $0x150] sm:$0xff] %v2116_v38  ;;  %v2117_v16 = vmax.f32 %v2068_v55, 0.0  ;;  %v1583_v11 = vmax.f32 %v4269_v33, %v1517_v4  ;;  %v2800_v53 = vpop.f32.mrb[189].mxu0  ;;  %v2906_v28 = vpop.f32.mrb[189].mxu1 }
 0x267   : > { %v1520_v15 = vpop.f32.mrb[190].mxu0  ;;  %v1950_v9 = vpop.f32.mrb[190].mxu1 }
 0x268   : > { %2166 = vst [vmem:[%s3835_s24 + $0x158] sm:$0xff] %v2117_v16  ;;  %v2013_v41 = vmax.f32 %v1583_v11, %v1947_v63  ;;  %v1584_v47 = vmax.f32 %v4272_v30, %v1520_v15  ;;  %v2801_v10 = vpop.f32.mrb[191].mxu0  ;;  %v2907_v32 = vpop.f32.mrb[191].mxu1 }
 0x26a   : > { %v2069_v5 = vadd.f32 %v3825_v31, %v2013_v41  ;;  %v2014_v42 = vmax.f32 %v1584_v47, %v1950_v9 }
 0x26c   : > { %v2118_v34 = vmax.f32 %v2069_v5, 0.0  ;;  %v2070_v19 = vadd.f32 %v3825_v31, %v2014_v42 }
 0x26d   : > { %v1525_v62 = vpop.f32.mrb[192].mxu0  ;;  %v1955_v1 = vpop.f32.mrb[192].mxu1 }
 0x26e   : > { %2167 = vst [vmem:[%s3835_s24 + $0x160] sm:$0xff] %v2118_v34  ;;  %v2119_v25 = vmax.f32 %v2070_v19, 0.0  ;;  %v1585_v0 = vmax.f32 %v4275_v61, %v1525_v62  ;;  %v2804_v7 = vpop.f32.mrb[193].mxu0  ;;  %v2910_v54 = vpop.f32.mrb[193].mxu1 }
 0x26f   : > { %v1528_v6 = vpop.f32.mrb[194].mxu0  ;;  %v1958_v44 = vpop.f32.mrb[194].mxu1 }
 0x270   : > { %2168 = vst [vmem:[%s3835_s24 + $0x168] sm:$0xff] %v2119_v25  ;;  %v2015_v12 = vmax.f32 %v1585_v0, %v1955_v1  ;;  %v1586_v43 = vmax.f32 %v4278_v13, %v1528_v6  ;;  %v2805_v22 = vpop.f32.mrb[195].mxu0  ;;  %v2911_v59 = vpop.f32.mrb[195].mxu1 }
 0x272   : > { %v2071_v35 = vadd.f32 %v3825_v31, %v2015_v12  ;;  %v2016_v37 = vmax.f32 %v1586_v43, %v1958_v44 }
 0x274   : > { %v2120_v18 = vmax.f32 %v2071_v35, 0.0  ;;  %v2072_v46 = vadd.f32 %v3825_v31, %v2016_v37 }
 0x275   : > { %v1533_v48 = vpop.f32.mrb[196].mxu0  ;;  %v1963_v52 = vpop.f32.mrb[196].mxu1 }
 0x276   : > { %2169 = vst [vmem:[%s3835_s24 + $0x170] sm:$0xff] %v2120_v18  ;;  %v2121_v3 = vmax.f32 %v2072_v46, 0.0  ;;  %v1587_v45 = vmax.f32 %v4280_v20, %v1533_v48  ;;  %v2808_v60 = vpop.f32.mrb[197].mxu0  ;;  %v2914_v21 = vpop.f32.mrb[197].mxu1 }
 0x277   : > { %v1536_v39 = vpop.f32.mrb[198].mxu0  ;;  %v1966_v24 = vpop.f32.mrb[198].mxu1 }
 0x278   : > { %2170 = vst [vmem:[%s3835_s24 + $0x178] sm:$0xff] %v2121_v3  ;;  %v2017_v50 = vmax.f32 %v1587_v45, %v1963_v52  ;;  %v2809_v56 = vpop.f32.mrb[199].mxu0  ;;  %v2915_v58 = vpop.f32.mrb[199].mxu1 }
 0x27a   : > { %v2073_v49 = vadd.f32 %v3825_v31, %v2017_v50 }
 0x27c   : > { %v2122_v51 = vmax.f32 %v2073_v49, 0.0 }
 0x27e   : > { %2171 = vst [vmem:[%s3835_s24 + $0x180] sm:$0xff] %v2122_v51 }
 0x27f PF: > { %s16_s21 = sadd.s32 1, %s2935_s21  }
 0x280   : > { %p13_p4 = scmp.ge.s32.totalorder %s16_s21, 4  }
 0x282   :  { %15 = sbr.rel (!%p13_p4) target bundleno = 1 (0x1), region = 83 }

// kernel: mnist_cnn_forward.3
= control target key start
LH: loop header
LB: loop body
LE: loop exit
PB: predicated region body
PF: predicated region fallthrough
CT: control target
= control target key end

     0   :  { %10 = vsyncpa [#allocation3], 0  ;;  %s7580_s0 = inlined_call_operand.vmem [shape: f32[16,6272], index: 0, kind: input, shape index: {}]   ;;  %s7581_s1 = inlined_call_operand.vmem [shape: bf16[6272,128], index: 1, kind: input, shape index: {}]   ;;  %s7582_s2 = inlined_call_operand.vmem [shape: f32[1,128], index: 2, kind: input, shape index: {}]   ;;  %s7583_s3 = inlined_call_operand.vmem [shape: bf16[128,10], index: 3, kind: input, shape index: {}]   ;;  %s7584_s4 = inlined_call_operand.vmem [shape: f32[1,10], index: 4, kind: input, shape index: {}]   ;;  %s7585_s5 = inlined_call_operand.hbm [shape: f32[16,10], index: 5, kind: output, shape index: {}]  }
   0x1   :  { %12 = vsyncpa [#allocation3 + $0x1], 0  ;;  %s6190_s18 = smov 0   ;;  %s6192_s19 = smov 0  }
   0x2   :  { %s6194_s20 = smov 0   ;;  %s6196_s21 = smov 0  }
   0x3 LB: > { %s6211_s22 = sadd.s32 4294967295, %s6155_s21   ;;  %s4653_s23 = sadd.s32 4294967294, %s6155_s21   ;;  %s6155_s21 = sphi %s6196_s21, %s7591_s21   ;;  %s6151_s20 = sphi %s6194_s20, %s7590_s20   ;;  %s6147_s19 = sphi %s6192_s19, %s7589_s19   ;;  %s6143_s18 = sphi %s6190_s18, %s7588_s18  }
   0x4   : > { %s6215_s24 = sadd.s32 1, %s6155_s21   ;;  %s135_s25 = sadd.s32 1, %s6151_s20 }
   0x5   : > { %s132_s26 = ssub.s32 %s6155_s21, %s6215_s24  ;;  %p145_p0 = scmp.ne.s32.totalorder %s6151_s20, %s6147_s19 }
   0x6   : > { %p133_p1 = scmp.eq.s32.totalorder %s132_s26, 0  ;;  %p146_p2 = scmp.eq.s32.totalorder %s6211_s22, 1 }
   0x7   : > { %p151_p3 = scmp.ne.s32.totalorder %s6147_s19, %s6143_s18  ;;  %p152_p4 = scmp.eq.s32.totalorder %s4653_s23, 1 }
   0x8   : > { %s6226_s27 = scalar_select %p133_p1, %s6151_s20, %s135_s25  }
   0x9   : > { %p6228_p5 = por %p146_p2, %p145_p0  ;;  %p6232_p6 = por %p152_p4, %p151_p3 }
   0xa   : > { %p4656_p7 = scmp.ge.s32.totalorder %s6155_s21, 1  ;;  %p190_p8 = scmp.lt.s32.totalorder %s6155_s21, 3 }
   0xc   : > { %p191_p9 = pnand %p4656_p7, %p190_p8 }
   0xd   : > { %v5693_v0 = vld [vmem:[%s7581_s1 + $0x40] sm:$0xff] (!%p191_p9)   ;;  %v5697_v4 = vld [vmem:[%s7581_s1 + $0x48] sm:$0xff] (!%p191_p9)   ;;  %v5701_v8 = vld [vmem:[%s7581_s1 + $0x50] sm:$0xff] (!%p191_p9)   ;;  %p218_p10 = scmp.lt.s32.totalorder (!%p191_p9), %s6211_s22, 1  ;;  %vm6158_vm0 = vmmov (!%p191_p9), 0   ;;  %s5062_s16 = sshll.u32 (!%p191_p9), %s6211_s22, 7 }
   0xe   : > { %194 = sbr.rel (%p191_p9) target bundleno = 876 (0x36c), region = 40  ;;  %v5694_v1 = vld [vmem:[%s7581_s1] sm:$0xff] (!%p191_p9)   ;;  %5065 = vmatprep.subr.bf16.mxu0 (!%p191_p9), %v5693_v0  ;;  %v5698_v5 = vld [vmem:[%s7581_s1 + $0x8] sm:$0xff] (!%p191_p9)   ;;  %v5702_v9 = vld [vmem:[%s7581_s1 + $0x10] sm:$0xff] (!%p191_p9)   ;;  %vm4578_vm1 = vcmask (!%p191_p9), 80896   ;;  %s7538_s30 = scalar_lea.hbm (!%p191_p9), %s7585_s5, %s5062_s16 }
   0xf   : > { %v5695_v2 = vld [vmem:[%s7581_s1 + $0xc0] sm:$0xff] (!%p191_p9)   ;;  %5066 = vmatpush3.bf16.msra.mxu0 (!%p191_p9), %v5694_v1  ;;  %v5699_v6 = vld [vmem:[%s7581_s1 + $0xc8] sm:$0xff] (!%p191_p9)   ;;  %v5703_v10 = vld [vmem:[%s7581_s1 + $0xd0] sm:$0xff] (!%p191_p9)   ;;  %s6159_s7 = smov (!%p191_p9), [#allocation2]  }
  0x10   : > { %v5696_v3 = vld [vmem:[%s7581_s1 + $0x80] sm:$0xff] (!%p191_p9)   ;;  %5087 = vmatprep.subr.bf16.mxu1 (!%p191_p9), %v5695_v2  ;;  %5067 = vmatprep.subr.bf16.mxu0 (!%p191_p9), %v5697_v4  ;;  %v5700_v7 = vld [vmem:[%s7581_s1 + $0x88] sm:$0xff] (!%p191_p9)   ;;  %v5704_v11 = vld [vmem:[%s7581_s1 + $0x90] sm:$0xff] (!%p191_p9)  }
  0x11   : > { %5088 = vmatpush3.bf16.msra.mxu1 (!%p191_p9), %v5696_v3  ;;  %v5705_v12 = vld [vmem:[%s7581_s1 + $0x58] sm:$0xff] (!%p191_p9)   ;;  %v5709_v16 = vld [vmem:[%s7581_s1 + $0x60] sm:$0xff] (!%p191_p9)   ;;  %v5713_v20 = vld [vmem:[%s7581_s1 + $0x68] sm:$0xff] (!%p191_p9)  }
  0x12   : > { %5089 = vmatprep.subr.bf16.mxu1 (!%p191_p9), %v5699_v6  ;;  %v5706_v13 = vld [vmem:[%s7581_s1 + $0x18] sm:$0xff] (!%p191_p9)   ;;  %v5710_v17 = vld [vmem:[%s7581_s1 + $0x20] sm:$0xff] (!%p191_p9)   ;;  %v5714_v21 = vld [vmem:[%s7581_s1 + $0x28] sm:$0xff] (!%p191_p9)  }
  0x13   : > { %5068 = vmatpush3.bf16.msra.mxu0 (!%p191_p9), %v5698_v5  ;;  %v5707_v14 = vld [vmem:[%s7581_s1 + $0xd8] sm:$0xff] (!%p191_p9)   ;;  %v5711_v18 = vld [vmem:[%s7581_s1 + $0xe0] sm:$0xff] (!%p191_p9)   ;;  %v5715_v22 = vld [vmem:[%s7581_s1 + $0xe8] sm:$0xff] (!%p191_p9)  }
  0x14   : > { %5069 = vmatprep.subr.bf16.mxu0 (!%p191_p9), %v5701_v8  ;;  %v5708_v15 = vld [vmem:[%s7581_s1 + $0x98] sm:$0xff] (!%p191_p9)   ;;  %v5712_v19 = vld [vmem:[%s7581_s1 + $0xa0] sm:$0xff] (!%p191_p9)   ;;  %v5716_v23 = vld [vmem:[%s7581_s1 + $0xa8] sm:$0xff] (!%p191_p9)  }
  0x15   : > { %5090 = vmatpush3.bf16.msra.mxu1 %v5700_v7  ;;  %s219_s15 = scalar_select %p218_p10, %s6211_s22, 1  ;;  %v5717_v24 = vld [vmem:[%s7581_s1 + $0x70] sm:$0xff]   ;;  %v5721_v28 = vld [vmem:[%s7581_s1 + $0x78] sm:$0xff]   ;;  %v5725_v36 = vld [vmem:[%s7581_s1 + $0x140] sm:$0xff]  }
  0x16   : > { %5091 = vmatprep.subr.bf16.mxu1 %v5703_v10  ;;  %v5718_v25 = vld [vmem:[%s7581_s1 + $0x30] sm:$0xff]   ;;  %v5722_v29 = vld [vmem:[%s7581_s1 + $0x38] sm:$0xff]   ;;  %v5726_v39 = vld [vmem:[%s7581_s1 + $0x100] sm:$0xff]  }
  0x17   : > { %5070 = vmatpush3.bf16.msra.mxu0 %v5702_v9  ;;  %s5651_s8 = smul.u32 392, %s219_s15  ;;  %v5719_v26 = vld [vmem:[%s7581_s1 + $0xf0] sm:$0xff]   ;;  %v5723_v30 = vld [vmem:[%s7581_s1 + $0xf8] sm:$0xff]   ;;  %v5727_v42 = vld [vmem:[%s7581_s1 + $0x1c0] sm:$0xff]  }
  0x18   : > { %5071 = vmatprep.subr.bf16.mxu0 %v5705_v12  ;;  %v5720_v27 = vld [vmem:[%s7581_s1 + $0xb0] sm:$0xff]   ;;  %v5724_v33 = vld [vmem:[%s7581_s1 + $0xb8] sm:$0xff]   ;;  %v5728_v43 = vld [vmem:[%s7581_s1 + $0x180] sm:$0xff]  }
  0x19   : > { %5092 = vmatpush3.bf16.msra.mxu1 %v5704_v11  ;;  %s6330_s25 = scalar_lea.vmem %s7580_s0, %s5651_s8  ;;  %v5729_v44 = vld [vmem:[%s7581_s1 + $0x148] sm:$0xff]   ;;  %v5733_v48 = vld [vmem:[%s7581_s1 + $0x150] sm:$0xff]   ;;  %v5737_v52 = vld [vmem:[%s7581_s1 + $0x158] sm:$0xff]   ;;  %s6097_s8 = sshll.u32 %s6159_s7, 4  ;;  %s6098_s8 = int_to_ptr.vmem [resolvable:$false] %s6097_s8 }
  0x1a   : > { %5093 = vmatprep.subr.bf16.mxu1 %v5707_v14  ;;  %v225_v31 = vld [vmem:[%s6330_s25 + $0x8] sm:$0xff]  ;;  %v224_v34 = vld [vmem:[%s6330_s25] sm:$0xff]  ;;  %v227_v37 = vld [vmem:[%s6330_s25 + $0x18] sm:$0xff]  ;;  %s6099_s9 = scalar_lea.vmem %s6098_s8, 256 }
  0x1b   : > { %5072 = vmatpush3.bf16.msra.mxu0 %v5706_v13  ;;  %v274_v32 = vpack.c.bf16 %v225_v31, %v225_v31  ;;  %v273_v35 = vpack.c.bf16 %v224_v34, %v224_v34  ;;  %v276_v38 = vpack.c.bf16 %v227_v37, %v227_v37  ;;  %v226_v40 = vld [vmem:[%s6330_s25 + $0x10] sm:$0xff]  ;;  %v5730_v45 = vld [vmem:[%s7581_s1 + $0x108] sm:$0xff]   ;;  %v5738_v53 = vld [vmem:[%s7581_s1 + $0x118] sm:$0xff]  }
  0x1c   : > { %5073 = vmatprep.subr.bf16.mxu0 %v5709_v16  ;;  %v275_v41 = vpack.c.bf16 %v226_v40, %v226_v40  ;;  %v5731_v46 = vld [vmem:[%s7581_s1 + $0x1c8] sm:$0xff]   ;;  %v5734_v49 = vld [vmem:[%s7581_s1 + $0x110] sm:$0xff]   ;;  %v5739_v54 = vld [vmem:[%s7581_s1 + $0x1d8] sm:$0xff]  }
  0x1d   : > { %5094 = vmatpush3.bf16.msra.mxu1 %v5708_v15  ;;  %3497 = vmatprep.mubr.bf16.mxu0 %v274_v32  ;;  %v5732_v47 = vld [vmem:[%s7581_s1 + $0x188] sm:$0xff]   ;;  %v5735_v50 = vld [vmem:[%s7581_s1 + $0x1d0] sm:$0xff]   ;;  %v5740_v55 = vld [vmem:[%s7581_s1 + $0x198] sm:$0xff]  }
  0x1e   : > { %5095 = vmatprep.subr.bf16.mxu1 %v5711_v18  ;;  %3537 = vmatprep.mubr.bf16.mxu1 %v276_v38  ;;  %v5736_v51 = vld [vmem:[%s7581_s1 + $0x190] sm:$0xff]   ;;  %v5741_v56 = vld [vmem:[%s7581_s1 + $0x160] sm:$0xff]   ;;  %v5745_v60 = vld [vmem:[%s7581_s1 + $0x168] sm:$0xff]  }
  0x1f   : > { %5074 = vmatpush3.bf16.msra.mxu0 %v5710_v17  ;;  %v5742_v57 = vld [vmem:[%s7581_s1 + $0x120] sm:$0xff]   ;;  %v5746_v61 = vld [vmem:[%s7581_s1 + $0x128] sm:$0xff]   ;;  %v5749_v0 = vld [vmem:[%s7581_s1 + $0x170] sm:$0xff]  }
  0x20   : > { %5075 = vmatprep.subr.bf16.mxu0 %v5713_v20  ;;  %v5743_v58 = vld [vmem:[%s7581_s1 + $0x1e0] sm:$0xff]   ;;  %v5747_v62 = vld [vmem:[%s7581_s1 + $0x1e8] sm:$0xff]   ;;  %v5750_v1 = vld [vmem:[%s7581_s1 + $0x130] sm:$0xff]  }
  0x21   : > { %5096 = vmatpush3.bf16.msra.mxu1 %v5712_v19  ;;  %v5744_v59 = vld [vmem:[%s7581_s1 + $0x1a0] sm:$0xff]   ;;  %v5748_v63 = vld [vmem:[%s7581_s1 + $0x1a8] sm:$0xff]   ;;  %v5751_v2 = vld [vmem:[%s7581_s1 + $0x1f0] sm:$0xff]  }
  0x22   : > { %5097 = vmatprep.subr.bf16.mxu1 %v5715_v22  ;;  %v5752_v3 = vld [vmem:[%s7581_s1 + $0x1b0] sm:$0xff]   ;;  %v5753_v4 = vld [vmem:[%s7581_s1 + $0x178] sm:$0xff]   ;;  %v229_v7 = vld [vmem:[%s6330_s25 + $0x28] sm:$0xff] }
  0x23   : > { %5076 = vmatpush3.bf16.msra.mxu0 %v5714_v21  ;;  %v5754_v5 = vld [vmem:[%s7581_s1 + $0x138] sm:$0xff]   ;;  %v278_v8 = vpack.c.bf16 %v229_v7, %v229_v7  ;;  %v228_v10 = vld [vmem:[%s6330_s25 + $0x20] sm:$0xff]  ;;  %v230_v16 = vld [vmem:[%s6330_s25 + $0x30] sm:$0xff] }
  0x24   : > { %5077 = vmatprep.subr.bf16.mxu0 %v5717_v24  ;;  %v5755_v6 = vld [vmem:[%s7581_s1 + $0x1f8] sm:$0xff]   ;;  %v277_v11 = vpack.c.bf16 %v228_v10, %v228_v10  ;;  %v5757_v12 = vld [vmem:[%s7581_s1 + $0x240] sm:$0xff]   ;;  %v279_v17 = vpack.c.bf16 %v230_v16, %v230_v16  ;;  %v5761_v20 = vld [vmem:[%s7581_s1 + $0x248] sm:$0xff]  }
  0x25   : > { %5098 = vmatpush3.bf16.msra.mxu1 %v5716_v23  ;;  %v5756_v9 = vld [vmem:[%s7581_s1 + $0x1b8] sm:$0xff]   ;;  %v5758_v15 = vld [vmem:[%s7581_s1 + $0x200] sm:$0xff]   ;;  %v5762_v21 = vld [vmem:[%s7581_s1 + $0x208] sm:$0xff]  }
  0x26   : > { %5099 = vmatprep.subr.bf16.mxu1 %v5719_v26  ;;  %v231_v13 = vld [vmem:[%s6330_s25 + $0x38] sm:$0xff]  ;;  %v5759_v18 = vld [vmem:[%s7581_s1 + $0x2c0] sm:$0xff]   ;;  %v5763_v22 = vld [vmem:[%s7581_s1 + $0x2c8] sm:$0xff]  }
  0x27   : > { %5078 = vmatpush3.bf16.msra.mxu0 %v5718_v25  ;;  %v280_v14 = vpack.c.bf16 %v231_v13, %v231_v13  ;;  %v5760_v19 = vld [vmem:[%s7581_s1 + $0x280] sm:$0xff]   ;;  %v5764_v23 = vld [vmem:[%s7581_s1 + $0x288] sm:$0xff]   ;;  %v5765_v24 = vld [vmem:[%s7581_s1 + $0x250] sm:$0xff]  }
  0x28   : > { %5079 = vmatprep.subr.bf16.mxu0 %v5721_v28  ;;  %v5766_v25 = vld [vmem:[%s7581_s1 + $0x210] sm:$0xff]   ;;  %v5769_v28 = vld [vmem:[%s7581_s1 + $0x258] sm:$0xff]   ;;  %v5773_v32 = vld [vmem:[%s7581_s1 + $0x260] sm:$0xff]  }
  0x29   : > { %5100 = vmatpush3.bf16.msra.mxu1 %v5720_v27  ;;  %v5767_v26 = vld [vmem:[%s7581_s1 + $0x2d0] sm:$0xff]   ;;  %v5772_v31 = vld [vmem:[%s7581_s1 + $0x298] sm:$0xff]   ;;  %v5775_v34 = vld [vmem:[%s7581_s1 + $0x2e0] sm:$0xff]  }
  0x2a   : > { %5101 = vmatprep.subr.bf16.mxu1 %v5723_v30  ;;  %v5768_v27 = vld [vmem:[%s7581_s1 + $0x290] sm:$0xff]   ;;  %v5771_v30 = vld [vmem:[%s7581_s1 + $0x2d8] sm:$0xff]   ;;  %v5778_v37 = vld [vmem:[%s7581_s1 + $0x228] sm:$0xff]  }
  0x2b   : > { %5080 = vmatpush3.bf16.msra.mxu0 %v5722_v29  ;;  %v5770_v29 = vld [vmem:[%s7581_s1 + $0x218] sm:$0xff]   ;;  %v5779_v38 = vld [vmem:[%s7581_s1 + $0x2e8] sm:$0xff]   ;;  %v5781_v40 = vld [vmem:[%s7581_s1 + $0x270] sm:$0xff]  }
  0x2c   : > { %5109 = vmatprep.subr.bf16.mxu0 %v5725_v36  ;;  %v5777_v36 = vld [vmem:[%s7581_s1 + $0x268] sm:$0xff]   ;;  %v5804_v7 = vld [vmem:[%s7581_s1 + $0x398] sm:$0xff]   ;;  %v5807_v10 = vld [vmem:[%s7581_s1 + $0x3e0] sm:$0xff]  }
  0x2d   : > { %5102 = vmatpush3.bf16.msra.mxu1 %v5724_v33  ;;  %v5774_v33 = vld [vmem:[%s7581_s1 + $0x220] sm:$0xff]   ;;  %v5810_v13 = vld [vmem:[%s7581_s1 + $0x328] sm:$0xff]   ;;  %v5813_v16 = vld [vmem:[%s7581_s1 + $0x370] sm:$0xff]  }
  0x2e   : > { %3498 = vmatmul.mubr.bf16.vlgmr.msra.gmra.mrb[0].mxu0 %v273_v35  ;;  %5131 = vmatprep.subr.bf16.mxu1 %v5727_v42  ;;  %v5776_v35 = vld [vmem:[%s7581_s1 + $0x2a0] sm:$0xff]   ;;  %v5783_v42 = vld [vmem:[%s7581_s1 + $0x2f0] sm:$0xff]  }
  0x2f   : > { %5110 = vmatpush3.bf16.msra.mxu0 %v5726_v39  ;;  %3577 = vmatprep.mubr.bf16.mxu0 %v278_v8  ;;  %v5780_v39 = vld [vmem:[%s7581_s1 + $0x2a8] sm:$0xff]   ;;  %v5805_v8 = vld [vmem:[%s7581_s1 + $0x360] sm:$0xff]  }
  0x30   : > { %3538 = vmatmul.mubr.bf16.vlgmr.msra.gmra.mrb[0].mxu1 %v275_v41  ;;  %5111 = vmatprep.subr.bf16.mxu0 %v5729_v44  ;;  %v5782_v41 = vld [vmem:[%s7581_s1 + $0x230] sm:$0xff]   ;;  %v5785_v44 = vld [vmem:[%s7581_s1 + $0x278] sm:$0xff]  }
  0x31   : > { %5132 = vmatpush3.bf16.msra.mxu1 %v5728_v43  ;;  %3617 = vmatprep.mubr.bf16.mxu1 %v280_v14  ;;  %v5784_v43 = vld [vmem:[%s7581_s1 + $0x2b0] sm:$0xff]   ;;  %v5811_v14 = vld [vmem:[%s7581_s1 + $0x3e8] sm:$0xff]  }
  0x32   : > { %5133 = vmatprep.subr.bf16.mxu1 %v5731_v46  ;;  %v5787_v46 = vld [vmem:[%s7581_s1 + $0x2f8] sm:$0xff]  }
  0x33   : > { %5112 = vmatpush3.bf16.msra.mxu0 %v5730_v45  ;;  %v5786_v45 = vld [vmem:[%s7581_s1 + $0x238] sm:$0xff]  }
  0x34   : > { %5113 = vmatprep.subr.bf16.mxu0 %v5733_v48 }
  0x35   : > { %5134 = vmatpush3.bf16.msra.mxu1 %v5732_v47  ;;  %v233_v47 = vld [vmem:[%s6330_s25 + $0x48] sm:$0xff] }
  0x36   : > { %5135 = vmatprep.subr.bf16.mxu1 %v5735_v50  ;;  %v282_v48 = vpack.c.bf16 %v233_v47, %v233_v47  ;;  %v232_v50 = vld [vmem:[%s6330_s25 + $0x40] sm:$0xff]  ;;  %v5836_v47 = vld [vmem:[%s7581_s1 + $0x498] sm:$0xff]  }
  0x37   : > { %5114 = vmatpush3.bf16.msra.mxu0 %v5734_v49  ;;  %v5788_v49 = vld [vmem:[%s7581_s1 + $0x2b8] sm:$0xff]  }
  0x38   : > { %5115 = vmatprep.subr.bf16.mxu0 %v5737_v52  ;;  %v5789_v52 = vld [vmem:[%s7581_s1 + $0x340] sm:$0xff]  }
  0x39   : > { %5136 = vmatpush3.bf16.msra.mxu1 %v5736_v51  ;;  %v281_v51 = vpack.c.bf16 %v232_v50, %v232_v50  ;;  %v5839_v50 = vld [vmem:[%s7581_s1 + $0x4e0] sm:$0xff]  }
  0x3a   : > { %5137 = vmatprep.subr.bf16.mxu1 %v5739_v54 }
  0x3b   : > { %5116 = vmatpush3.bf16.msra.mxu0 %v5738_v53  ;;  %v235_v53 = vld [vmem:[%s6330_s25 + $0x58] sm:$0xff] }
  0x3c   : > { %5117 = vmatprep.subr.bf16.mxu0 %v5741_v56  ;;  %v284_v54 = vpack.c.bf16 %v235_v53, %v235_v53  ;;  %v234_v56 = vld [vmem:[%s6330_s25 + $0x50] sm:$0xff]  ;;  %v5842_v53 = vld [vmem:[%s7581_s1 + $0x428] sm:$0xff]  }
  0x3d   : > { %5138 = vmatpush3.bf16.msra.mxu1 %v5740_v55  ;;  %v5790_v55 = vld [vmem:[%s7581_s1 + $0x300] sm:$0xff]  }
  0x3e   : > { %5139 = vmatprep.subr.bf16.mxu1 %v5743_v58  ;;  %v5791_v58 = vld [vmem:[%s7581_s1 + $0x3c0] sm:$0xff]  }
  0x3f   : > { %5118 = vmatpush3.bf16.msra.mxu0 %v5742_v57  ;;  %v283_v57 = vpack.c.bf16 %v234_v56, %v234_v56  ;;  %v5845_v56 = vld [vmem:[%s7581_s1 + $0x470] sm:$0xff]  }
  0x40   : > { %5119 = vmatprep.subr.bf16.mxu0 %v5745_v60  ;;  %v5793_v60 = vld [vmem:[%s7581_s1 + $0x348] sm:$0xff]  }
  0x41   : > { %5140 = vmatpush3.bf16.msra.mxu1 %v5744_v59  ;;  %v5792_v59 = vld [vmem:[%s7581_s1 + $0x380] sm:$0xff]  }
  0x42   : > { %5141 = vmatprep.subr.bf16.mxu1 %v5747_v62  ;;  %v5795_v62 = vld [vmem:[%s7581_s1 + $0x3c8] sm:$0xff]  }
  0x43   : > { %5120 = vmatpush3.bf16.msra.mxu0 %v5746_v61  ;;  %v5794_v61 = vld [vmem:[%s7581_s1 + $0x308] sm:$0xff]  }
  0x44   : > { %5121 = vmatprep.subr.bf16.mxu0 %v5749_v0  ;;  %v5797_v0 = vld [vmem:[%s7581_s1 + $0x350] sm:$0xff]  }
  0x45   : > { %5142 = vmatpush3.bf16.msra.mxu1 %v5748_v63  ;;  %v5796_v63 = vld [vmem:[%s7581_s1 + $0x388] sm:$0xff]  }
  0x46   : > { %5143 = vmatprep.subr.bf16.mxu1 %v5751_v2  ;;  %v5799_v2 = vld [vmem:[%s7581_s1 + $0x3d0] sm:$0xff]  }
  0x47   : > { %5122 = vmatpush3.bf16.msra.mxu0 %v5750_v1  ;;  %v5798_v1 = vld [vmem:[%s7581_s1 + $0x310] sm:$0xff]  }
  0x48   : > { %5123 = vmatprep.subr.bf16.mxu0 %v5753_v4  ;;  %v5801_v4 = vld [vmem:[%s7581_s1 + $0x358] sm:$0xff]  }
  0x49   : > { %5144 = vmatpush3.bf16.msra.mxu1 %v5752_v3  ;;  %v5800_v3 = vld [vmem:[%s7581_s1 + $0x390] sm:$0xff]  }
  0x4a   : > { %5145 = vmatprep.subr.bf16.mxu1 %v5755_v6  ;;  %v5803_v6 = vld [vmem:[%s7581_s1 + $0x3d8] sm:$0xff]  }
  0x4b   : > { %5124 = vmatpush3.bf16.msra.mxu0 %v5754_v5  ;;  %v5802_v5 = vld [vmem:[%s7581_s1 + $0x318] sm:$0xff]  }
  0x4c   : > { %5153 = vmatprep.subr.bf16.mxu0 %v5757_v12  ;;  %v5809_v12 = vld [vmem:[%s7581_s1 + $0x368] sm:$0xff]  }
  0x4d   : > { %5146 = vmatpush3.bf16.msra.mxu1 %v5756_v9  ;;  %v5806_v9 = vld [vmem:[%s7581_s1 + $0x320] sm:$0xff]  }
  0x4e   : > { %3578 = vmatmul.mubr.bf16.vlgmr.msra.gmra.mrb[4].mxu0 %v277_v11  ;;  %5175 = vmatprep.subr.bf16.mxu1 %v5759_v18  ;;  %v5808_v11 = vld [vmem:[%s7581_s1 + $0x3a0] sm:$0xff]   ;;  %v5815_v18 = vld [vmem:[%s7581_s1 + $0x3f0] sm:$0xff]  }
  0x4f   : > { %5154 = vmatpush3.bf16.msra.mxu0 %v5758_v15  ;;  %3657 = vmatprep.mubr.bf16.mxu0 %v282_v48  ;;  %v5812_v15 = vld [vmem:[%s7581_s1 + $0x3a8] sm:$0xff]   ;;  %v5837_v48 = vld [vmem:[%s7581_s1 + $0x460] sm:$0xff]  }
  0x50   : > { %3618 = vmatmul.mubr.bf16.vlgmr.msra.gmra.mrb[4].mxu1 %v279_v17  ;;  %5155 = vmatprep.subr.bf16.mxu0 %v5761_v20  ;;  %v5814_v17 = vld [vmem:[%s7581_s1 + $0x330] sm:$0xff]   ;;  %v5817_v20 = vld [vmem:[%s7581_s1 + $0x378] sm:$0xff]  }
  0x51   : > { %5176 = vmatpush3.bf16.msra.mxu1 %v5760_v19  ;;  %3697 = vmatprep.mubr.bf16.mxu1 %v284_v54  ;;  %v5816_v19 = vld [vmem:[%s7581_s1 + $0x3b0] sm:$0xff]   ;;  %v5843_v54 = vld [vmem:[%s7581_s1 + $0x4e8] sm:$0xff]  }
  0x52   : > { %5177 = vmatprep.subr.bf16.mxu1 %v5763_v22  ;;  %v5819_v22 = vld [vmem:[%s7581_s1 + $0x3f8] sm:$0xff]  }
  0x53   : > { %5156 = vmatpush3.bf16.msra.mxu0 %v5762_v21  ;;  %v5818_v21 = vld [vmem:[%s7581_s1 + $0x338] sm:$0xff]  }
  0x54   : > { %5157 = vmatprep.subr.bf16.mxu0 %v5765_v24 }
  0x55   : > { %5178 = vmatpush3.bf16.msra.mxu1 %v5764_v23  ;;  %v237_v23 = vld [vmem:[%s6330_s25 + $0x68] sm:$0xff] }
  0x56   : > { %5179 = vmatprep.subr.bf16.mxu1 %v5767_v26  ;;  %v286_v24 = vpack.c.bf16 %v237_v23, %v237_v23  ;;  %v236_v26 = vld [vmem:[%s6330_s25 + $0x60] sm:$0xff]  ;;  %v5868_v23 = vld [vmem:[%s7581_s1 + $0x598] sm:$0xff]  }
  0x57   : > { %5158 = vmatpush3.bf16.msra.mxu0 %v5766_v25  ;;  %v5820_v25 = vld [vmem:[%s7581_s1 + $0x3b8] sm:$0xff]  }
  0x58   : > { %5159 = vmatprep.subr.bf16.mxu0 %v5769_v28  ;;  %v5821_v28 = vld [vmem:[%s7581_s1 + $0x440] sm:$0xff]  }
  0x59   : > { %5180 = vmatpush3.bf16.msra.mxu1 %v5768_v27  ;;  %v285_v27 = vpack.c.bf16 %v236_v26, %v236_v26  ;;  %v5871_v26 = vld [vmem:[%s7581_s1 + $0x5e0] sm:$0xff]  }
  0x5a   : > { %5181 = vmatprep.subr.bf16.mxu1 %v5771_v30 }
  0x5b   : > { %5160 = vmatpush3.bf16.msra.mxu0 %v5770_v29  ;;  %v239_v29 = vld [vmem:[%s6330_s25 + $0x78] sm:$0xff] }
  0x5c   : > { %5161 = vmatprep.subr.bf16.mxu0 %v5773_v32  ;;  %v288_v30 = vpack.c.bf16 %v239_v29, %v239_v29  ;;  %v238_v32 = vld [vmem:[%s6330_s25 + $0x70] sm:$0xff]  ;;  %v5874_v29 = vld [vmem:[%s7581_s1 + $0x528] sm:$0xff]  }
  0x5d   : > { %5182 = vmatpush3.bf16.msra.mxu1 %v5772_v31  ;;  %v5822_v31 = vld [vmem:[%s7581_s1 + $0x400] sm:$0xff]  }
  0x5e   : > { %5183 = vmatprep.subr.bf16.mxu1 %v5775_v34  ;;  %v5823_v34 = vld [vmem:[%s7581_s1 + $0x4c0] sm:$0xff]  }
  0x5f   : > { %5162 = vmatpush3.bf16.msra.mxu0 %v5774_v33  ;;  %v287_v33 = vpack.c.bf16 %v238_v32, %v238_v32  ;;  %v5877_v32 = vld [vmem:[%s7581_s1 + $0x570] sm:$0xff]  }
  0x60   : > { %5163 = vmatprep.subr.bf16.mxu0 %v5777_v36  ;;  %v5825_v36 = vld [vmem:[%s7581_s1 + $0x448] sm:$0xff]  }
  0x61   : > { %5184 = vmatpush3.bf16.msra.mxu1 %v5776_v35  ;;  %v5824_v35 = vld [vmem:[%s7581_s1 + $0x480] sm:$0xff]  }
  0x62   : > { %5185 = vmatprep.subr.bf16.mxu1 %v5779_v38  ;;  %v5827_v38 = vld [vmem:[%s7581_s1 + $0x4c8] sm:$0xff]  }
  0x63   : > { %5164 = vmatpush3.bf16.msra.mxu0 %v5778_v37  ;;  %v5826_v37 = vld [vmem:[%s7581_s1 + $0x408] sm:$0xff]  }
  0x64   : > { %5165 = vmatprep.subr.bf16.mxu0 %v5781_v40  ;;  %v5829_v40 = vld [vmem:[%s7581_s1 + $0x450] sm:$0xff]  }
  0x65   : > { %5186 = vmatpush3.bf16.msra.mxu1 %v5780_v39  ;;  %v5828_v39 = vld [vmem:[%s7581_s1 + $0x488] sm:$0xff]  }
  0x66   : > { %5187 = vmatprep.subr.bf16.mxu1 %v5783_v42  ;;  %v5831_v42 = vld [vmem:[%s7581_s1 + $0x4d0] sm:$0xff]  }
  0x67   : > { %5166 = vmatpush3.bf16.msra.mxu0 %v5782_v41  ;;  %v5830_v41 = vld [vmem:[%s7581_s1 + $0x410] sm:$0xff]  }
  0x68   : > { %5167 = vmatprep.subr.bf16.mxu0 %v5785_v44  ;;  %v5833_v44 = vld [vmem:[%s7581_s1 + $0x458] sm:$0xff]  }
  0x69   : > { %5188 = vmatpush3.bf16.msra.mxu1 %v5784_v43  ;;  %v5832_v43 = vld [vmem:[%s7581_s1 + $0x490] sm:$0xff]  }
  0x6a   : > { %5189 = vmatprep.subr.bf16.mxu1 %v5787_v46  ;;  %v5835_v46 = vld [vmem:[%s7581_s1 + $0x4d8] sm:$0xff]  }
  0x6b   : > { %5168 = vmatpush3.bf16.msra.mxu0 %v5786_v45  ;;  %v5834_v45 = vld [vmem:[%s7581_s1 + $0x418] sm:$0xff]  }
  0x6c   : > { %5197 = vmatprep.subr.bf16.mxu0 %v5789_v52  ;;  %v5841_v52 = vld [vmem:[%s7581_s1 + $0x468] sm:$0xff]  }
  0x6d   : > { %5190 = vmatpush3.bf16.msra.mxu1 %v5788_v49  ;;  %v5838_v49 = vld [vmem:[%s7581_s1 + $0x420] sm:$0xff]  }
  0x6e   : > { %3658 = vmatmul.mubr.bf16.vlgmr.msra.gmra.mrb[8].mxu0 %v281_v51  ;;  %5219 = vmatprep.subr.bf16.mxu1 %v5791_v58  ;;  %v5840_v51 = vld [vmem:[%s7581_s1 + $0x4a0] sm:$0xff]   ;;  %v5847_v58 = vld [vmem:[%s7581_s1 + $0x4f0] sm:$0xff]  }
  0x6f   : > { %5198 = vmatpush3.bf16.msra.mxu0 %v5790_v55  ;;  %3737 = vmatprep.mubr.bf16.mxu0 %v286_v24  ;;  %v5844_v55 = vld [vmem:[%s7581_s1 + $0x4a8] sm:$0xff]   ;;  %v5869_v24 = vld [vmem:[%s7581_s1 + $0x560] sm:$0xff]  }
  0x70   : > { %3698 = vmatmul.mubr.bf16.vlgmr.msra.gmra.mrb[8].mxu1 %v283_v57  ;;  %5199 = vmatprep.subr.bf16.mxu0 %v5793_v60  ;;  %v5846_v57 = vld [vmem:[%s7581_s1 + $0x430] sm:$0xff]   ;;  %v5849_v60 = vld [vmem:[%s7581_s1 + $0x478] sm:$0xff]  }
  0x71   : > { %5220 = vmatpush3.bf16.msra.mxu1 %v5792_v59  ;;  %3777 = vmatprep.mubr.bf16.mxu1 %v288_v30  ;;  %v5848_v59 = vld [vmem:[%s7581_s1 + $0x4b0] sm:$0xff]   ;;  %v5875_v30 = vld [vmem:[%s7581_s1 + $0x5e8] sm:$0xff]  }
  0x72   : > { %5221 = vmatprep.subr.bf16.mxu1 %v5795_v62  ;;  %v5851_v62 = vld [vmem:[%s7581_s1 + $0x4f8] sm:$0xff]  }
  0x73   : > { %5200 = vmatpush3.bf16.msra.mxu0 %v5794_v61  ;;  %v5850_v61 = vld [vmem:[%s7581_s1 + $0x438] sm:$0xff]  }
  0x74   : > { %5201 = vmatprep.subr.bf16.mxu0 %v5797_v0 }
  0x75   : > { %5222 = vmatpush3.bf16.msra.mxu1 %v5796_v63  ;;  %v241_v63 = vld [vmem:[%s6330_s25 + $0x88] sm:$0xff] }
  0x76   : > { %5223 = vmatprep.subr.bf16.mxu1 %v5799_v2  ;;  %v290_v0 = vpack.c.bf16 %v241_v63, %v241_v63  ;;  %v240_v2 = vld [vmem:[%s6330_s25 + $0x80] sm:$0xff]  ;;  %v5900_v63 = vld [vmem:[%s7581_s1 + $0x698] sm:$0xff]  }
  0x77   : > { %5202 = vmatpush3.bf16.msra.mxu0 %v5798_v1  ;;  %v5852_v1 = vld [vmem:[%s7581_s1 + $0x4b8] sm:$0xff]  }
  0x78   : > { %5203 = vmatprep.subr.bf16.mxu0 %v5801_v4  ;;  %v5853_v4 = vld [vmem:[%s7581_s1 + $0x540] sm:$0xff]  }
  0x79   : > { %5224 = vmatpush3.bf16.msra.mxu1 %v5800_v3  ;;  %v289_v3 = vpack.c.bf16 %v240_v2, %v240_v2  ;;  %v5903_v2 = vld [vmem:[%s7581_s1 + $0x6e0] sm:$0xff]  }
  0x7a   : > { %5225 = vmatprep.subr.bf16.mxu1 %v5803_v6 }
  0x7b   : > { %5204 = vmatpush3.bf16.msra.mxu0 %v5802_v5  ;;  %v243_v5 = vld [vmem:[%s6330_s25 + $0x98] sm:$0xff] }
  0x7c   : > { %5205 = vmatprep.subr.bf16.mxu0 %v5805_v8  ;;  %v292_v6 = vpack.c.bf16 %v243_v5, %v243_v5  ;;  %v242_v8 = vld [vmem:[%s6330_s25 + $0x90] sm:$0xff]  ;;  %v5906_v5 = vld [vmem:[%s7581_s1 + $0x628] sm:$0xff]  }
  0x7d   : > { %5226 = vmatpush3.bf16.msra.mxu1 %v5804_v7  ;;  %v5854_v7 = vld [vmem:[%s7581_s1 + $0x500] sm:$0xff]  }
  0x7e   : > { %5227 = vmatprep.subr.bf16.mxu1 %v5807_v10  ;;  %v5855_v10 = vld [vmem:[%s7581_s1 + $0x5c0] sm:$0xff]  }
  0x7f   : > { %5206 = vmatpush3.bf16.msra.mxu0 %v5806_v9  ;;  %v291_v9 = vpack.c.bf16 %v242_v8, %v242_v8  ;;  %v5909_v8 = vld [vmem:[%s7581_s1 + $0x670] sm:$0xff]  }
  0x80   : > { %5207 = vmatprep.subr.bf16.mxu0 %v5809_v12  ;;  %v5857_v12 = vld [vmem:[%s7581_s1 + $0x548] sm:$0xff]  }
  0x81   : > { %5228 = vmatpush3.bf16.msra.mxu1 %v5808_v11  ;;  %v5856_v11 = vld [vmem:[%s7581_s1 + $0x580] sm:$0xff]  }
  0x82   : > { %5229 = vmatprep.subr.bf16.mxu1 %v5811_v14  ;;  %v5859_v14 = vld [vmem:[%s7581_s1 + $0x5c8] sm:$0xff]  }
  0x83   : > { %5208 = vmatpush3.bf16.msra.mxu0 %v5810_v13  ;;  %v5858_v13 = vld [vmem:[%s7581_s1 + $0x508] sm:$0xff]  }
  0x84   : > { %5209 = vmatprep.subr.bf16.mxu0 %v5813_v16  ;;  %v5861_v16 = vld [vmem:[%s7581_s1 + $0x550] sm:$0xff]  }
  0x85   : > { %5230 = vmatpush3.bf16.msra.mxu1 %v5812_v15  ;;  %v5860_v15 = vld [vmem:[%s7581_s1 + $0x588] sm:$0xff]  }
  0x86   : > { %5231 = vmatprep.subr.bf16.mxu1 %v5815_v18  ;;  %v5863_v18 = vld [vmem:[%s7581_s1 + $0x5d0] sm:$0xff]  }
  0x87   : > { %5210 = vmatpush3.bf16.msra.mxu0 %v5814_v17  ;;  %v5862_v17 = vld [vmem:[%s7581_s1 + $0x510] sm:$0xff]  }
  0x88   : > { %5211 = vmatprep.subr.bf16.mxu0 %v5817_v20  ;;  %v5865_v20 = vld [vmem:[%s7581_s1 + $0x558] sm:$0xff]  }
  0x89   : > { %5232 = vmatpush3.bf16.msra.mxu1 %v5816_v19  ;;  %v5864_v19 = vld [vmem:[%s7581_s1 + $0x590] sm:$0xff]  }
  0x8a   : > { %5233 = vmatprep.subr.bf16.mxu1 %v5819_v22  ;;  %v5867_v22 = vld [vmem:[%s7581_s1 + $0x5d8] sm:$0xff]  }
  0x8b   : > { %5212 = vmatpush3.bf16.msra.mxu0 %v5818_v21  ;;  %v5866_v21 = vld [vmem:[%s7581_s1 + $0x518] sm:$0xff]  }
  0x8c   : > { %5241 = vmatprep.subr.bf16.mxu0 %v5821_v28  ;;  %v5873_v28 = vld [vmem:[%s7581_s1 + $0x568] sm:$0xff]  }
  0x8d   : > { %5234 = vmatpush3.bf16.msra.mxu1 %v5820_v25  ;;  %v5870_v25 = vld [vmem:[%s7581_s1 + $0x520] sm:$0xff]  }
  0x8e   : > { %3738 = vmatmul.mubr.bf16.vlgmr.msra.gmra.mrb[12].mxu0 %v285_v27  ;;  %5263 = vmatprep.subr.bf16.mxu1 %v5823_v34  ;;  %v5872_v27 = vld [vmem:[%s7581_s1 + $0x5a0] sm:$0xff]   ;;  %v5879_v34 = vld [vmem:[%s7581_s1 + $0x5f0] sm:$0xff]  }
  0x8f   : > { %5242 = vmatpush3.bf16.msra.mxu0 %v5822_v31  ;;  %3817 = vmatprep.mubr.bf16.mxu0 %v290_v0  ;;  %v5876_v31 = vld [vmem:[%s7581_s1 + $0x5a8] sm:$0xff]   ;;  %v5901_v0 = vld [vmem:[%s7581_s1 + $0x660] sm:$0xff]  }
  0x90   : > { %3778 = vmatmul.mubr.bf16.vlgmr.msra.gmra.mrb[12].mxu1 %v287_v33  ;;  %5243 = vmatprep.subr.bf16.mxu0 %v5825_v36  ;;  %v5878_v33 = vld [vmem:[%s7581_s1 + $0x530] sm:$0xff]   ;;  %v5881_v36 = vld [vmem:[%s7581_s1 + $0x578] sm:$0xff]  }
  0x91   : > { %5264 = vmatpush3.bf16.msra.mxu1 %v5824_v35  ;;  %3857 = vmatprep.mubr.bf16.mxu1 %v292_v6  ;;  %v5880_v35 = vld [vmem:[%s7581_s1 + $0x5b0] sm:$0xff]   ;;  %v5907_v6 = vld [vmem:[%s7581_s1 + $0x6e8] sm:$0xff]  }
  0x92   : > { %5265 = vmatprep.subr.bf16.mxu1 %v5827_v38  ;;  %v5883_v38 = vld [vmem:[%s7581_s1 + $0x5f8] sm:$0xff]  }
  0x93   : > { %5244 = vmatpush3.bf16.msra.mxu0 %v5826_v37  ;;  %v5882_v37 = vld [vmem:[%s7581_s1 + $0x538] sm:$0xff]  }
  0x94   : > { %5245 = vmatprep.subr.bf16.mxu0 %v5829_v40 }
  0x95   : > { %5266 = vmatpush3.bf16.msra.mxu1 %v5828_v39  ;;  %v245_v39 = vld [vmem:[%s6330_s25 + $0xa8] sm:$0xff] }
  0x96   : > { %5267 = vmatprep.subr.bf16.mxu1 %v5831_v42  ;;  %v294_v40 = vpack.c.bf16 %v245_v39, %v245_v39  ;;  %v244_v42 = vld [vmem:[%s6330_s25 + $0xa0] sm:$0xff] }
  0x97   : > { %5246 = vmatpush3.bf16.msra.mxu0 %v5830_v41  ;;  %v5884_v41 = vld [vmem:[%s7581_s1 + $0x5b8] sm:$0xff]  }
  0x98   : > { %5247 = vmatprep.subr.bf16.mxu0 %v5833_v44  ;;  %v5885_v44 = vld [vmem:[%s7581_s1 + $0x640] sm:$0xff]  }
  0x99   : > { %5268 = vmatpush3.bf16.msra.mxu1 %v5832_v43  ;;  %v293_v43 = vpack.c.bf16 %v244_v42, %v244_v42 }
  0x9a   : > { %5269 = vmatprep.subr.bf16.mxu1 %v5835_v46 }
  0x9b   : > { %5248 = vmatpush3.bf16.msra.mxu0 %v5834_v45  ;;  %v247_v45 = vld [vmem:[%s6330_s25 + $0xb8] sm:$0xff] }
  0x9c   : > { %5249 = vmatprep.subr.bf16.mxu0 %v5837_v48  ;;  %v296_v46 = vpack.c.bf16 %v247_v45, %v247_v45  ;;  %v246_v48 = vld [vmem:[%s6330_s25 + $0xb0] sm:$0xff]  ;;  %v5933_v45 = vld [vmem:[%s7581_s1 + $0x760] sm:$0xff]  }
  0x9d   : > { %5270 = vmatpush3.bf16.msra.mxu1 %v5836_v47  ;;  %v5886_v47 = vld [vmem:[%s7581_s1 + $0x600] sm:$0xff]  }
  0x9e   : > { %5271 = vmatprep.subr.bf16.mxu1 %v5839_v50  ;;  %v5887_v50 = vld [vmem:[%s7581_s1 + $0x6c0] sm:$0xff]  }
  0x9f   : > { %5250 = vmatpush3.bf16.msra.mxu0 %v5838_v49  ;;  %v295_v49 = vpack.c.bf16 %v246_v48, %v246_v48 }
  0xa0   : > { %5251 = vmatprep.subr.bf16.mxu0 %v5841_v52  ;;  %v5889_v52 = vld [vmem:[%s7581_s1 + $0x648] sm:$0xff]  }
  0xa1   : > { %5272 = vmatpush3.bf16.msra.mxu1 %v5840_v51  ;;  %v5888_v51 = vld [vmem:[%s7581_s1 + $0x680] sm:$0xff]  }
  0xa2   : > { %5273 = vmatprep.subr.bf16.mxu1 %v5843_v54  ;;  %v5891_v54 = vld [vmem:[%s7581_s1 + $0x6c8] sm:$0xff]  }
  0xa3   : > { %5252 = vmatpush3.bf16.msra.mxu0 %v5842_v53  ;;  %v5890_v53 = vld [vmem:[%s7581_s1 + $0x608] sm:$0xff]  }
  0xa4   : > { %5253 = vmatprep.subr.bf16.mxu0 %v5845_v56  ;;  %v5893_v56 = vld [vmem:[%s7581_s1 + $0x650] sm:$0xff]  }
  0xa5   : > { %5274 = vmatpush3.bf16.msra.mxu1 %v5844_v55  ;;  %v5892_v55 = vld [vmem:[%s7581_s1 + $0x688] sm:$0xff]  }
  0xa6   : > { %5275 = vmatprep.subr.bf16.mxu1 %v5847_v58  ;;  %v5895_v58 = vld [vmem:[%s7581_s1 + $0x6d0] sm:$0xff]  }
  0xa7   : > { %5254 = vmatpush3.bf16.msra.mxu0 %v5846_v57  ;;  %v5894_v57 = vld [vmem:[%s7581_s1 + $0x610] sm:$0xff]  }
  0xa8   : > { %5255 = vmatprep.subr.bf16.mxu0 %v5849_v60  ;;  %v5897_v60 = vld [vmem:[%s7581_s1 + $0x658] sm:$0xff]  }
  0xa9   : > { %5276 = vmatpush3.bf16.msra.mxu1 %v5848_v59  ;;  %v5896_v59 = vld [vmem:[%s7581_s1 + $0x690] sm:$0xff]  }
  0xaa   : > { %5277 = vmatprep.subr.bf16.mxu1 %v5851_v62  ;;  %v5899_v62 = vld [vmem:[%s7581_s1 + $0x6d8] sm:$0xff]  }
  0xab   : > { %5256 = vmatpush3.bf16.msra.mxu0 %v5850_v61  ;;  %v5898_v61 = vld [vmem:[%s7581_s1 + $0x618] sm:$0xff]  }
  0xac   : > { %5285 = vmatprep.subr.bf16.mxu0 %v5853_v4  ;;  %v5905_v4 = vld [vmem:[%s7581_s1 + $0x668] sm:$0xff]  }
  0xad   : > { %5278 = vmatpush3.bf16.msra.mxu1 %v5852_v1  ;;  %v5902_v1 = vld [vmem:[%s7581_s1 + $0x620] sm:$0xff]  }
  0xae   : > { %3818 = vmatmul.mubr.bf16.vlgmr.msra.gmra.mrb[16].mxu0 %v289_v3  ;;  %5307 = vmatprep.subr.bf16.mxu1 %v5855_v10  ;;  %v5904_v3 = vld [vmem:[%s7581_s1 + $0x6a0] sm:$0xff]   ;;  %v5911_v10 = vld [vmem:[%s7581_s1 + $0x6f0] sm:$0xff]  }
  0xaf   : > { %5286 = vmatpush3.bf16.msra.mxu0 %v5854_v7  ;;  %3897 = vmatprep.mubr.bf16.mxu0 %v294_v40  ;;  %v5908_v7 = vld [vmem:[%s7581_s1 + $0x6a8] sm:$0xff]   ;;  %v5931_v40 = vld [vmem:[%s7581_s1 + $0x7d8] sm:$0xff]  }
  0xb0   : > { %3858 = vmatmul.mubr.bf16.vlgmr.msra.gmra.mrb[16].mxu1 %v291_v9  ;;  %5287 = vmatprep.subr.bf16.mxu0 %v5857_v12  ;;  %v5910_v9 = vld [vmem:[%s7581_s1 + $0x630] sm:$0xff]   ;;  %v5913_v12 = vld [vmem:[%s7581_s1 + $0x678] sm:$0xff]  }
  0xb1   : > { %5308 = vmatpush3.bf16.msra.mxu1 %v5856_v11  ;;  %3937 = vmatprep.mubr.bf16.mxu1 %v296_v46  ;;  %v5912_v11 = vld [vmem:[%s7581_s1 + $0x6b0] sm:$0xff]  }
  0xb2   : > { %5309 = vmatprep.subr.bf16.mxu1 %v5859_v14  ;;  %v5915_v14 = vld [vmem:[%s7581_s1 + $0x6f8] sm:$0xff]  }
  0xb3   : > { %5288 = vmatpush3.bf16.msra.mxu0 %v5858_v13  ;;  %v5914_v13 = vld [vmem:[%s7581_s1 + $0x638] sm:$0xff]  }
  0xb4   : > { %5289 = vmatprep.subr.bf16.mxu0 %v5861_v16 }
  0xb5   : > { %5310 = vmatpush3.bf16.msra.mxu1 %v5860_v15  ;;  %v249_v15 = vld [vmem:[%s6330_s25 + $0xc8] sm:$0xff] }
  0xb6   : > { %5311 = vmatprep.subr.bf16.mxu1 %v5863_v18  ;;  %v298_v16 = vpack.c.bf16 %v249_v15, %v249_v15  ;;  %v248_v18 = vld [vmem:[%s6330_s25 + $0xc0] sm:$0xff] }
  0xb7   : > { %5290 = vmatpush3.bf16.msra.mxu0 %v5862_v17  ;;  %v5916_v17 = vld [vmem:[%s7581_s1 + $0x6b8] sm:$0xff]   ;;  %v5951_v15 = vld [vmem:[%s7581_s1 + $0x8c0] sm:$0xff]  }
  0xb8   : > { %5291 = vmatprep.subr.bf16.mxu0 %v5865_v20  ;;  %v5917_v20 = vld [vmem:[%s7581_s1 + $0x740] sm:$0xff]  }
  0xb9   : > { %5312 = vmatpush3.bf16.msra.mxu1 %v5864_v19  ;;  %v297_v19 = vpack.c.bf16 %v248_v18, %v248_v18  ;;  %v5954_v18 = vld [vmem:[%s7581_s1 + $0x808] sm:$0xff]  }
  0xba   : > { %5313 = vmatprep.subr.bf16.mxu1 %v5867_v22 }
  0xbb   : > { %5292 = vmatpush3.bf16.msra.mxu0 %v5866_v21  ;;  %v251_v21 = vld [vmem:[%s6330_s25 + $0xd8] sm:$0xff] }
  0xbc   : > { %5293 = vmatprep.subr.bf16.mxu0 %v5869_v24  ;;  %v300_v22 = vpack.c.bf16 %v251_v21, %v251_v21  ;;  %v250_v24 = vld [vmem:[%s6330_s25 + $0xd0] sm:$0xff] }
  0xbd   : > { %5314 = vmatpush3.bf16.msra.mxu1 %v5868_v23  ;;  %v5918_v23 = vld [vmem:[%s7581_s1 + $0x700] sm:$0xff]   ;;  %v5957_v21 = vld [vmem:[%s7581_s1 + $0x850] sm:$0xff]  }
  0xbe   : > { %5315 = vmatprep.subr.bf16.mxu1 %v5871_v26  ;;  %v5919_v26 = vld [vmem:[%s7581_s1 + $0x7c0] sm:$0xff]  }
  0xbf   : > { %5294 = vmatpush3.bf16.msra.mxu0 %v5870_v25  ;;  %v299_v25 = vpack.c.bf16 %v250_v24, %v250_v24  ;;  %v5960_v24 = vld [vmem:[%s7581_s1 + $0x890] sm:$0xff]  }
  0xc0   : > { %5295 = vmatprep.subr.bf16.mxu0 %v5873_v28  ;;  %v5921_v28 = vld [vmem:[%s7581_s1 + $0x748] sm:$0xff]  }
  0xc1   : > { %5316 = vmatpush3.bf16.msra.mxu1 %v5872_v27  ;;  %v5920_v27 = vld [vmem:[%s7581_s1 + $0x780] sm:$0xff]  }
  0xc2   : > { %5317 = vmatprep.subr.bf16.mxu1 %v5875_v30  ;;  %v5923_v30 = vld [vmem:[%s7581_s1 + $0x7c8] sm:$0xff]  }
  0xc3   : > { %5296 = vmatpush3.bf16.msra.mxu0 %v5874_v29  ;;  %v5922_v29 = vld [vmem:[%s7581_s1 + $0x708] sm:$0xff]  }
  0xc4   : > { %5297 = vmatprep.subr.bf16.mxu0 %v5877_v32  ;;  %v5925_v32 = vld [vmem:[%s7581_s1 + $0x750] sm:$0xff]  }
  0xc5   : > { %5318 = vmatpush3.bf16.msra.mxu1 %v5876_v31  ;;  %v5924_v31 = vld [vmem:[%s7581_s1 + $0x788] sm:$0xff]  }
  0xc6   : > { %5319 = vmatprep.subr.bf16.mxu1 %v5879_v34  ;;  %v5927_v34 = vld [vmem:[%s7581_s1 + $0x7d0] sm:$0xff]  }
  0xc7   : > { %5298 = vmatpush3.bf16.msra.mxu0 %v5878_v33  ;;  %v5926_v33 = vld [vmem:[%s7581_s1 + $0x710] sm:$0xff]  }
  0xc8   : > { %5299 = vmatprep.subr.bf16.mxu0 %v5881_v36  ;;  %v5929_v36 = vld [vmem:[%s7581_s1 + $0x758] sm:$0xff]  }
  0xc9   : > { %5320 = vmatpush3.bf16.msra.mxu1 %v5880_v35  ;;  %v5928_v35 = vld [vmem:[%s7581_s1 + $0x790] sm:$0xff]  }
  0xca   : > { %5321 = vmatprep.subr.bf16.mxu1 %v5883_v38  ;;  %v5930_v38 = vld [vmem:[%s7581_s1 + $0x718] sm:$0xff]  }
  0xcb   : > { %5300 = vmatpush3.bf16.msra.mxu0 %v5882_v37 }
  0xcc   : > { %5329 = vmatprep.subr.bf16.mxu0 %v5885_v44 }
  0xcd   : > { %5322 = vmatpush3.bf16.msra.mxu1 %v5884_v41 }
  0xce   : > { %3898 = vmatmul.mubr.bf16.vlgmr.msra.gmra.mrb[20].mxu0 %v293_v43  ;;  %5351 = vmatprep.subr.bf16.mxu1 %v5887_v50  ;;  %v5932_v43 = vld [vmem:[%s7581_s1 + $0x798] sm:$0xff]  }
  0xcf   : > { %5330 = vmatpush3.bf16.msra.mxu0 %v5886_v47  ;;  %3977 = vmatprep.mubr.bf16.mxu0 %v298_v16  ;;  %v5934_v47 = vld [vmem:[%s7581_s1 + $0x720] sm:$0xff]  }
  0xd0   : > { %3938 = vmatmul.mubr.bf16.vlgmr.msra.gmra.mrb[20].mxu1 %v295_v49  ;;  %5331 = vmatprep.subr.bf16.mxu0 %v5889_v52  ;;  %v5935_v49 = vld [vmem:[%s7581_s1 + $0x7e0] sm:$0xff]  }
  0xd1   : > { %5352 = vmatpush3.bf16.msra.mxu1 %v5888_v51  ;;  %4017 = vmatprep.mubr.bf16.mxu1 %v300_v22  ;;  %v5936_v52 = vld [vmem:[%s7581_s1 + $0x7a0] sm:$0xff]   ;;  %v5958_v22 = vld [vmem:[%s7581_s1 + $0x810] sm:$0xff]  }
  0xd2   : > { %5353 = vmatprep.subr.bf16.mxu1 %v5891_v54  ;;  %v5952_v16 = vld [vmem:[%s7581_s1 + $0x880] sm:$0xff]  }
  0xd3   : > { %5332 = vmatpush3.bf16.msra.mxu0 %v5890_v53  ;;  %v4659_v53 = vld [vmem:[%s7582_s2] ss:$0 sm:$0xff] }
  0xd4   : > { %5333 = vmatprep.subr.bf16.mxu0 %v5893_v56  ;;  %v5937_v56 = vld [vmem:[%s7581_s1 + $0x768] sm:$0xff]  }
  0xd5   : > { %5354 = vmatpush3.bf16.msra.mxu1 %v5892_v55 }
  0xd6   : > { %5355 = vmatprep.subr.bf16.mxu1 %v5895_v58 }
  0xd7   : > { %5334 = vmatpush3.bf16.msra.mxu0 %v5894_v57  ;;  %v5938_v57 = vld [vmem:[%s7581_s1 + $0x728] sm:$0xff]  }
  0xd8   : > { %5335 = vmatprep.subr.bf16.mxu0 %v5897_v60  ;;  %v5940_v60 = vld [vmem:[%s7581_s1 + $0x7a8] sm:$0xff]  }
  0xd9   : > { %5356 = vmatpush3.bf16.msra.mxu1 %v5896_v59  ;;  %v5939_v59 = vld [vmem:[%s7581_s1 + $0x7e8] sm:$0xff]  }
  0xda   : > { %5357 = vmatprep.subr.bf16.mxu1 %v5899_v62  ;;  %v5942_v62 = vld [vmem:[%s7581_s1 + $0x730] sm:$0xff]  }
  0xdb   : > { %5336 = vmatpush3.bf16.msra.mxu0 %v5898_v61  ;;  %v5941_v61 = vld [vmem:[%s7581_s1 + $0x770] sm:$0xff]  }
  0xdc   : > { %5337 = vmatprep.subr.bf16.mxu0 %v5901_v0  ;;  %v5944_v0 = vld [vmem:[%s7581_s1 + $0x7b0] sm:$0xff]  }
  0xdd   : > { %5358 = vmatpush3.bf16.msra.mxu1 %v5900_v63  ;;  %v5943_v63 = vld [vmem:[%s7581_s1 + $0x7f0] sm:$0xff]  }
  0xde   : > { %5359 = vmatprep.subr.bf16.mxu1 %v5903_v2  ;;  %v5946_v2 = vld [vmem:[%s7581_s1 + $0x738] sm:$0xff]  }
  0xdf   : > { %5338 = vmatpush3.bf16.msra.mxu0 %v5902_v1  ;;  %v5945_v1 = vld [vmem:[%s7581_s1 + $0x778] sm:$0xff]  }
  0xe0   : > { %5339 = vmatprep.subr.bf16.mxu0 %v5905_v4  ;;  %v253_v4 = vld [vmem:[%s6330_s25 + $0xe8] sm:$0xff] }
  0xe1   : > { %5360 = vmatpush3.bf16.msra.mxu1 %v5904_v3  ;;  %v5947_v3 = vld [vmem:[%s7581_s1 + $0x7f8] sm:$0xff]  }
  0xe2   : > { %5361 = vmatprep.subr.bf16.mxu1 %v5907_v6  ;;  %v5948_v6 = vld [vmem:[%s7581_s1 + $0x7b8] sm:$0xff]  }
  0xe3   : > { %5340 = vmatpush3.bf16.msra.mxu0 %v5906_v5  ;;  %v302_v5 = vpack.c.bf16 %v253_v4, %v253_v4  ;;  %v5984_v4 = vld [vmem:[%s7581_s1 + $0x980] sm:$0xff]  }
  0xe4   : > { %5341 = vmatprep.subr.bf16.mxu0 %v5909_v8 }
  0xe5   : > { %5362 = vmatpush3.bf16.msra.mxu1 %v5908_v7  ;;  %v252_v7 = vld [vmem:[%s6330_s25 + $0xe0] sm:$0xff] }
  0xe6   : > { %5363 = vmatprep.subr.bf16.mxu1 %v5911_v10  ;;  %v301_v8 = vpack.c.bf16 %v252_v7, %v252_v7  ;;  %v255_v10 = vld [vmem:[%s6330_s25 + $0xf8] sm:$0xff]  ;;  %v5987_v7 = vld [vmem:[%s7581_s1 + $0x9c8] sm:$0xff]  }
  0xe7   : > { %5342 = vmatpush3.bf16.msra.mxu0 %v5910_v9  ;;  %v5949_v9 = vld [vmem:[%s7581_s1 + $0x840] sm:$0xff]  }
  0xe8   : > { %5343 = vmatprep.subr.bf16.mxu0 %v5913_v12  ;;  %v5950_v12 = vld [vmem:[%s7581_s1 + $0x800] sm:$0xff]  }
  0xe9   : > { %5364 = vmatpush3.bf16.msra.mxu1 %v5912_v11  ;;  %v304_v11 = vpack.c.bf16 %v255_v10, %v255_v10  ;;  %v5990_v10 = vld [vmem:[%s7581_s1 + $0x910] sm:$0xff]  }
  0xea   : > { %5365 = vmatprep.subr.bf16.mxu1 %v5915_v14 }
  0xeb   : > { %5344 = vmatpush3.bf16.msra.mxu0 %v5914_v13  ;;  %v254_v13 = vld [vmem:[%s6330_s25 + $0xf0] sm:$0xff] }
  0xec   : > { %5373 = vmatprep.subr.bf16.mxu0 %v5917_v20  ;;  %v303_v14 = vpack.c.bf16 %v254_v13, %v254_v13  ;;  %v5956_v20 = vld [vmem:[%s7581_s1 + $0x888] sm:$0xff]   ;;  %v5993_v13 = vld [vmem:[%s7581_s1 + $0x958] sm:$0xff]  }
  0xed   : > { %5366 = vmatpush3.bf16.msra.mxu1 %v5916_v17  ;;  %v5953_v17 = vld [vmem:[%s7581_s1 + $0x848] sm:$0xff]  }
  0xee   : > { %3978 = vmatmul.mubr.bf16.vlgmr.msra.gmra.mrb[24].mxu0 %v297_v19  ;;  %5395 = vmatprep.subr.bf16.mxu1 %v5919_v26  ;;  %v5955_v19 = vld [vmem:[%s7581_s1 + $0x8c8] sm:$0xff]  }
  0xef   : > { %5374 = vmatpush3.bf16.msra.mxu0 %v5918_v23  ;;  %4057 = vmatprep.mubr.bf16.mxu0 %v302_v5  ;;  %v5959_v23 = vld [vmem:[%s7581_s1 + $0x8d0] sm:$0xff]   ;;  %v5985_v5 = vld [vmem:[%s7581_s1 + $0x948] sm:$0xff]  }
  0xf0   : > { %4018 = vmatmul.mubr.bf16.vlgmr.msra.gmra.mrb[24].mxu1 %v299_v25  ;;  %5375 = vmatprep.subr.bf16.mxu0 %v5921_v28  ;;  %v5961_v25 = vld [vmem:[%s7581_s1 + $0x858] sm:$0xff]  }
  0xf1   : > { %5396 = vmatpush3.bf16.msra.mxu1 %v5920_v27  ;;  %4097 = vmatprep.mubr.bf16.mxu1 %v304_v11  ;;  %v5962_v27 = vld [vmem:[%s7581_s1 + $0x818] sm:$0xff]   ;;  %v5991_v11 = vld [vmem:[%s7581_s1 + $0x9d0] sm:$0xff]  }
  0xf2   : > { %5397 = vmatprep.subr.bf16.mxu1 %v5923_v30 }
  0xf3   : > { %5376 = vmatpush3.bf16.msra.mxu0 %v5922_v29  ;;  %v5963_v29 = vld [vmem:[%s7581_s1 + $0x8d8] sm:$0xff]  }
  0xf4   : > { %5377 = vmatprep.subr.bf16.mxu0 %v5925_v32  ;;  %v5964_v32 = vld [vmem:[%s7581_s1 + $0x898] sm:$0xff]  }
  0xf5   : > { %5398 = vmatpush3.bf16.msra.mxu1 %v5924_v31 }
  0xf6   : > { %5399 = vmatprep.subr.bf16.mxu1 %v5927_v34  ;;  %v5965_v34 = vld [vmem:[%s7581_s1 + $0x860] sm:$0xff]  }
  0xf7   : > { %5378 = vmatpush3.bf16.msra.mxu0 %v5926_v33 }
  0xf8   : > { %5379 = vmatprep.subr.bf16.mxu0 %v5929_v36 }
  0xf9   : > { %5400 = vmatpush3.bf16.msra.mxu1 %v5928_v35 }
  0xfa   : > { %5401 = vmatprep.subr.bf16.mxu1 %v5931_v40 }
  0xfb   : > { %5380 = vmatpush3.bf16.msra.mxu0 %v5930_v38 }
  0xfc   : > { %5381 = vmatprep.subr.bf16.mxu0 %v5933_v45 }
  0xfd   : > { %5402 = vmatpush3.bf16.msra.mxu1 %v5932_v43 }
  0xfe   : > { %5403 = vmatprep.subr.bf16.mxu1 %v5935_v49  ;;  %v5973_v49 = vld [vmem:[%s7581_s1 + $0x870] sm:$0xff]  }
  0xff   : > { %5382 = vmatpush3.bf16.msra.mxu0 %v5934_v47  ;;  %v5971_v47 = vld [vmem:[%s7581_s1 + $0x8e8] sm:$0xff]  }
 0x100   : > { %5383 = vmatprep.subr.bf16.mxu0 %v5937_v56  ;;  %v257_v56 = vld [vmem:[%s6330_s25 + $0x108] sm:$0xff] }
 0x101   : > { %v5081_v37 = vpop.f32.mrb[0].mxu0  ;;  %5404 = vmatpush3.bf16.msra.mxu1 %v5936_v52  ;;  %v5976_v52 = vld [vmem:[%s7581_s1 + $0x8b0] sm:$0xff]  }
 0x102   : > { %v5082_v39 = vpop.f32.mrb[1].mxu0  ;;  %5405 = vmatprep.subr.bf16.mxu1 %v5939_v59  ;;  %v256_v59 = vld [vmem:[%s6330_s25 + $0x100] sm:$0xff] }
 0x103   : > { %v5083_v41 = vadd.f32 %v5082_v39, %v5081_v37  ;;  %v5084_v42 = vpop.f32.mrb[2].mxu0  ;;  %v5103_v44 = vpop.f32.mrb[0].mxu1  ;;  %5384 = vmatpush3.bf16.msra.mxu0 %v5938_v57  ;;  %v5966_v37 = vld [vmem:[%s7581_s1 + $0x820] sm:$0xff]   ;;  %v306_v57 = vpack.c.bf16 %v257_v56, %v257_v56 }
 0x104   : > { %v5085_v46 = vpop.f32.mrb[3].mxu0  ;;  %v5104_v48 = vpop.f32.mrb[1].mxu1  ;;  %5385 = vmatprep.subr.bf16.mxu0 %v5941_v61  ;;  %v5967_v39 = vld [vmem:[%s7581_s1 + $0x8e0] sm:$0xff]  }
 0x105   : > { %v5105_v50 = vadd.f32 %v5104_v48, %v5103_v44  ;;  %v5106_v51 = vpop.f32.mrb[2].mxu1  ;;  %v3500_v55 = vadd.f32 %v5083_v41, %v4659_v53  ;;  %5406 = vmatpush3.bf16.msra.mxu1 %v5940_v60  ;;  %v5968_v42 = vld [vmem:[%s7581_s1 + $0x8a0] sm:$0xff]   ;;  %v5969_v44 = vld [vmem:[%s7581_s1 + $0x868] sm:$0xff]   ;;  %v5977_v53 = vld [vmem:[%s7581_s1 + $0x878] sm:$0xff]   ;;  %v305_v60 = vpack.c.bf16 %v256_v59, %v256_v59 }
 0x106   : > { %v5107_v54 = vpop.f32.mrb[3].mxu1  ;;  %5407 = vmatprep.subr.bf16.mxu1 %v5943_v63  ;;  %v5970_v46 = vld [vmem:[%s7581_s1 + $0x828] sm:$0xff]   ;;  %v5975_v51 = vld [vmem:[%s7581_s1 + $0x8f0] sm:$0xff]   ;;  %v5981_v61 = vld [vmem:[%s7581_s1 + $0x940] sm:$0xff]  }
 0x107   : > { %v7014_v58 = vadd.f32 %v5105_v50, %v3500_v55  ;;  %5386 = vmatpush3.bf16.msra.mxu0 %v5942_v62  ;;  %v5972_v48 = vld [vmem:[%s7581_s1 + $0x8a8] sm:$0xff]   ;;  %v5974_v50 = vld [vmem:[%s7581_s1 + $0x830] sm:$0xff]   ;;  %v5978_v54 = vld [vmem:[%s7581_s1 + $0x838] sm:$0xff]  }
 0x108   : > { %5387 = vmatprep.subr.bf16.mxu0 %v5945_v1  ;;  %v5979_v55 = vld [vmem:[%s7581_s1 + $0x8f8] sm:$0xff]   ;;  %v258_v1 = vld [vmem:[%s6330_s25 + $0x110] sm:$0xff]  ;;  %v6016_v56 = vld [vmem:[%s7581_s1 + $0xa80] sm:$0xff]  }
 0x109   : > { %5408 = vmatpush3.bf16.msra.mxu1 %v5944_v0  ;;  %v259_v62 = vld [vmem:[%s6330_s25 + $0x118] sm:$0xff]  ;;  %v5982_v0 = vld [vmem:[%s7581_s1 + $0x900] sm:$0xff]   ;;  %v6019_v59 = vld [vmem:[%s7581_s1 + $0xac8] sm:$0xff]  }
 0x10a   : > { %5409 = vmatprep.subr.bf16.mxu1 %v5947_v3  ;;  %v308_v63 = vpack.c.bf16 %v259_v62, %v259_v62  ;;  %v5983_v3 = vld [vmem:[%s7581_s1 + $0x9c0] sm:$0xff]   ;;  %v6022_v62 = vld [vmem:[%s7581_s1 + $0xa10] sm:$0xff]  }
 0x10b   : > { %5388 = vmatpush3.bf16.msra.mxu0 %v5946_v2  ;;  %v307_v2 = vpack.c.bf16 %v258_v1, %v258_v1  ;;  %v6025_v1 = vld [vmem:[%s7581_s1 + $0xa58] sm:$0xff]  }
 0x10c   : > { %5417 = vmatprep.subr.bf16.mxu0 %v5949_v9  ;;  %v5989_v9 = vld [vmem:[%s7581_s1 + $0x950] sm:$0xff]  }
 0x10d   : > { %5410 = vmatpush3.bf16.msra.mxu1 %v5948_v6  ;;  %v5986_v6 = vld [vmem:[%s7581_s1 + $0x908] sm:$0xff]  }
 0x10e   : > { %4058 = vmatmul.mubr.bf16.vlgmr.msra.gmra.mrb[28].mxu0 %v301_v8  ;;  %5439 = vmatprep.subr.bf16.mxu1 %v5951_v15  ;;  %v5988_v8 = vld [vmem:[%s7581_s1 + $0x988] sm:$0xff]   ;;  %v5994_v15 = vld [vmem:[%s7581_s1 + $0x918] sm:$0xff]  }
 0x10f   : > { %5418 = vmatpush3.bf16.msra.mxu0 %v5950_v12  ;;  %4137 = vmatprep.mubr.bf16.mxu0 %v306_v57  ;;  %v5992_v12 = vld [vmem:[%s7581_s1 + $0x990] sm:$0xff]   ;;  %v6017_v57 = vld [vmem:[%s7581_s1 + $0xa48] sm:$0xff]  }
 0x110   : > { %4098 = vmatmul.mubr.bf16.vlgmr.msra.gmra.mrb[28].mxu1 %v303_v14  ;;  %5419 = vmatprep.subr.bf16.mxu0 %v5953_v17  ;;  %v5995_v17 = vld [vmem:[%s7581_s1 + $0x9d8] sm:$0xff]  }
 0x111   : > { %5440 = vmatpush3.bf16.msra.mxu1 %v5952_v16  ;;  %4177 = vmatprep.mubr.bf16.mxu1 %v308_v63  ;;  %v6023_v63 = vld [vmem:[%s7581_s1 + $0xad0] sm:$0xff]  }
 0x112   : > { %5441 = vmatprep.subr.bf16.mxu1 %v5955_v19 }
 0x113   : > { %5420 = vmatpush3.bf16.msra.mxu0 %v5954_v18 }
 0x114   : > { %5421 = vmatprep.subr.bf16.mxu0 %v5957_v21 }
 0x115   : > { %5442 = vmatpush3.bf16.msra.mxu1 %v5956_v20  ;;  %v5996_v20 = vld [vmem:[%s7581_s1 + $0x998] sm:$0xff]  }
 0x116   : > { %5443 = vmatprep.subr.bf16.mxu1 %v5959_v23 }
 0x117   : > { %5422 = vmatpush3.bf16.msra.mxu0 %v5958_v22  ;;  %v5997_v22 = vld [vmem:[%s7581_s1 + $0x960] sm:$0xff]  }
 0x118   : > { %5423 = vmatprep.subr.bf16.mxu0 %v5961_v25  ;;  %v5998_v25 = vld [vmem:[%s7581_s1 + $0x920] sm:$0xff]  }
 0x119   : > { %5444 = vmatpush3.bf16.msra.mxu1 %v5960_v24 }
 0x11a   : > { %5445 = vmatprep.subr.bf16.mxu1 %v5963_v29 }
 0x11b   : > { %5424 = vmatpush3.bf16.msra.mxu0 %v5962_v27  ;;  %v5999_v27 = vld [vmem:[%s7581_s1 + $0x9e0] sm:$0xff]  }
 0x11c   : > { %5425 = vmatprep.subr.bf16.mxu0 %v5965_v34  ;;  %v6002_v34 = vld [vmem:[%s7581_s1 + $0x928] sm:$0xff]  }
 0x11d   : > { %5446 = vmatpush3.bf16.msra.mxu1 %v5964_v32  ;;  %v6001_v32 = vld [vmem:[%s7581_s1 + $0x968] sm:$0xff]  }
 0x11e   : > { %5447 = vmatprep.subr.bf16.mxu1 %v5967_v39  ;;  %v6007_v39 = vld [vmem:[%s7581_s1 + $0x9f0] sm:$0xff]  }
 0x11f   : > { %5426 = vmatpush3.bf16.msra.mxu0 %v5966_v37  ;;  %v6005_v37 = vld [vmem:[%s7581_s1 + $0x970] sm:$0xff]  }
 0x120   : > { %5427 = vmatprep.subr.bf16.mxu0 %v5969_v44  ;;  %v261_v44 = vld [vmem:[%s6330_s25 + $0x128] sm:$0xff] }
 0x121   : > { %v5125_v26 = vpop.f32.mrb[4].mxu0  ;;  %5448 = vmatpush3.bf16.msra.mxu1 %v5968_v42  ;;  %v6010_v42 = vld [vmem:[%s7581_s1 + $0x938] sm:$0xff]  }
 0x122   : > { %v5126_v28 = vpop.f32.mrb[5].mxu0  ;;  %5449 = vmatprep.subr.bf16.mxu1 %v5971_v47  ;;  %v260_v47 = vld [vmem:[%s6330_s25 + $0x120] sm:$0xff] }
 0x123   : > { %v5127_v30 = vadd.f32 %v5126_v28, %v5125_v26  ;;  %v5128_v31 = vpop.f32.mrb[6].mxu0  ;;  %v5147_v33 = vpop.f32.mrb[4].mxu1  ;;  %5428 = vmatpush3.bf16.msra.mxu0 %v5970_v46  ;;  %v6012_v46 = vld [vmem:[%s7581_s1 + $0x9b8] sm:$0xff]  }
 0x124   : > { %v5129_v36 = vpop.f32.mrb[7].mxu0  ;;  %v5148_v38 = vpop.f32.mrb[5].mxu1  ;;  %5429 = vmatprep.subr.bf16.mxu0 %v5973_v49  ;;  %v6013_v49 = vld [vmem:[%s7581_s1 + $0xa40] sm:$0xff]  }
 0x125   : > { %v3580_v35 = vadd.f32 %v5127_v30, %v7014_v58  ;;  %v5149_v40 = vadd.f32 %v5148_v38, %v5147_v33  ;;  %v5150_v41 = vpop.f32.mrb[6].mxu1  ;;  %5450 = vmatpush3.bf16.msra.mxu1 %v5972_v48  ;;  %v5980_v58 = vld [vmem:[%s7581_s1 + $0x8b8] sm:$0xff]   ;;  %v6000_v30 = vld [vmem:[%s7581_s1 + $0x9a0] sm:$0xff]   ;;  %v6004_v36 = vld [vmem:[%s7581_s1 + $0x9a8] sm:$0xff]   ;;  %v309_v48 = vpack.c.bf16 %v260_v47, %v260_v47 }
 0x126   : > { %v5151_v43 = vpop.f32.mrb[7].mxu1  ;;  %5451 = vmatprep.subr.bf16.mxu1 %v5975_v51  ;;  %v6006_v38 = vld [vmem:[%s7581_s1 + $0x930] sm:$0xff]   ;;  %v6009_v41 = vld [vmem:[%s7581_s1 + $0x978] sm:$0xff]   ;;  %v6051_v47 = vld [vmem:[%s7581_s1 + $0xbc8] sm:$0xff]  }
 0x127   : > { %v7114_v45 = vadd.f32 %v5149_v40, %v3580_v35  ;;  %5430 = vmatpush3.bf16.msra.mxu0 %v5974_v50  ;;  %v6003_v35 = vld [vmem:[%s7581_s1 + $0x9e8] sm:$0xff]   ;;  %v6008_v40 = vld [vmem:[%s7581_s1 + $0x9b0] sm:$0xff]   ;;  %v6011_v43 = vld [vmem:[%s7581_s1 + $0x9f8] sm:$0xff]  }
 0x128   : > { %5431 = vmatprep.subr.bf16.mxu0 %v5977_v53  ;;  %v263_v50 = vld [vmem:[%s6330_s25 + $0x138] sm:$0xff]  ;;  %v262_v53 = vld [vmem:[%s6330_s25 + $0x130] sm:$0xff] }
 0x129   : > { %5452 = vmatpush3.bf16.msra.mxu1 %v5976_v52  ;;  %v312_v51 = vpack.c.bf16 %v263_v50, %v263_v50  ;;  %v6014_v52 = vld [vmem:[%s7581_s1 + $0xa00] sm:$0xff]   ;;  %v6054_v50 = vld [vmem:[%s7581_s1 + $0xb10] sm:$0xff]  }
 0x12a   : > { %5453 = vmatprep.subr.bf16.mxu1 %v5979_v55  ;;  %v6015_v55 = vld [vmem:[%s7581_s1 + $0xac0] sm:$0xff]  }
 0x12b   : > { %5432 = vmatpush3.bf16.msra.mxu0 %v5978_v54  ;;  %v311_v54 = vpack.c.bf16 %v262_v53, %v262_v53  ;;  %v6057_v53 = vld [vmem:[%s7581_s1 + $0xb58] sm:$0xff]  }
 0x12c   : > { %5461 = vmatprep.subr.bf16.mxu0 %v5981_v61  ;;  %v6021_v61 = vld [vmem:[%s7581_s1 + $0xa50] sm:$0xff]  }
 0x12d   : > { %5454 = vmatpush3.bf16.msra.mxu1 %v5980_v58  ;;  %v6018_v58 = vld [vmem:[%s7581_s1 + $0xa08] sm:$0xff]  }
 0x12e   : > { %4138 = vmatmul.mubr.bf16.vlgmr.msra.gmra.mrb[32].mxu0 %v305_v60  ;;  %5483 = vmatprep.subr.bf16.mxu1 %v5983_v3  ;;  %v6020_v60 = vld [vmem:[%s7581_s1 + $0xa88] sm:$0xff]   ;;  %v6026_v3 = vld [vmem:[%s7581_s1 + $0xa18] sm:$0xff]  }
 0x12f   : > { %5462 = vmatpush3.bf16.msra.mxu0 %v5982_v0  ;;  %v6024_v0 = vld [vmem:[%s7581_s1 + $0xa90] sm:$0xff]  }
 0x130   : > { %4178 = vmatmul.mubr.bf16.vlgmr.msra.gmra.mrb[32].mxu1 %v307_v2  ;;  %5463 = vmatprep.subr.bf16.mxu0 %v5985_v5  ;;  %v6027_v5 = vld [vmem:[%s7581_s1 + $0xad8] sm:$0xff]  }
 0x131   : > { %5484 = vmatpush3.bf16.msra.mxu1 %v5984_v4  ;;  %4257 = vmatprep.mubr.bf16.mxu1 %v312_v51  ;;  %v6055_v51 = vld [vmem:[%s7581_s1 + $0xbd0] sm:$0xff]  }
 0x132   : > { %5485 = vmatprep.subr.bf16.mxu1 %v5987_v7 }
 0x133   : > { %5464 = vmatpush3.bf16.msra.mxu0 %v5986_v6 }
 0x134   : > { %5465 = vmatprep.subr.bf16.mxu0 %v5989_v9 }
 0x135   : > { %5486 = vmatpush3.bf16.msra.mxu1 %v5988_v8  ;;  %v6028_v8 = vld [vmem:[%s7581_s1 + $0xa98] sm:$0xff]  }
 0x136   : > { %5487 = vmatprep.subr.bf16.mxu1 %v5991_v11 }
 0x137   : > { %5466 = vmatpush3.bf16.msra.mxu0 %v5990_v10  ;;  %v6029_v10 = vld [vmem:[%s7581_s1 + $0xa60] sm:$0xff]  }
 0x138   : > { %5467 = vmatprep.subr.bf16.mxu0 %v5993_v13  ;;  %v6030_v13 = vld [vmem:[%s7581_s1 + $0xa20] sm:$0xff]  }
 0x139   : > { %5488 = vmatpush3.bf16.msra.mxu1 %v5992_v12 }
 0x13a   : > { %5489 = vmatprep.subr.bf16.mxu1 %v5995_v17 }
 0x13b   : > { %5468 = vmatpush3.bf16.msra.mxu0 %v5994_v15  ;;  %v6031_v15 = vld [vmem:[%s7581_s1 + $0xae0] sm:$0xff]  }
 0x13c   : > { %5469 = vmatprep.subr.bf16.mxu0 %v5997_v22  ;;  %v6034_v22 = vld [vmem:[%s7581_s1 + $0xa28] sm:$0xff]  }
 0x13d   : > { %5490 = vmatpush3.bf16.msra.mxu1 %v5996_v20  ;;  %v6033_v20 = vld [vmem:[%s7581_s1 + $0xa68] sm:$0xff]  }
 0x13e   : > { %5491 = vmatprep.subr.bf16.mxu1 %v5999_v27  ;;  %v6039_v27 = vld [vmem:[%s7581_s1 + $0xaf0] sm:$0xff]  }
 0x13f   : > { %5470 = vmatpush3.bf16.msra.mxu0 %v5998_v25  ;;  %v6037_v25 = vld [vmem:[%s7581_s1 + $0xa70] sm:$0xff]  }
 0x140   : > { %5471 = vmatprep.subr.bf16.mxu0 %v6001_v32  ;;  %v265_v32 = vld [vmem:[%s6330_s25 + $0x148] sm:$0xff] }
 0x141   : > { %v5169_v14 = vpop.f32.mrb[8].mxu0  ;;  %5492 = vmatpush3.bf16.msra.mxu1 %v6000_v30  ;;  %v6042_v30 = vld [vmem:[%s7581_s1 + $0xa38] sm:$0xff]  }
 0x142   : > { %v5170_v16 = vpop.f32.mrb[9].mxu0  ;;  %5493 = vmatprep.subr.bf16.mxu1 %v6003_v35  ;;  %v264_v35 = vld [vmem:[%s6330_s25 + $0x140] sm:$0xff] }
 0x143   : > { %v5171_v18 = vadd.f32 %v5170_v16, %v5169_v14  ;;  %v5172_v19 = vpop.f32.mrb[10].mxu0  ;;  %v5191_v21 = vpop.f32.mrb[8].mxu1  ;;  %5472 = vmatpush3.bf16.msra.mxu0 %v6002_v34  ;;  %v6044_v34 = vld [vmem:[%s7581_s1 + $0xab8] sm:$0xff]  }
 0x144   : > { %v5173_v24 = vpop.f32.mrb[11].mxu0  ;;  %v5192_v26 = vpop.f32.mrb[9].mxu1  ;;  %5473 = vmatprep.subr.bf16.mxu0 %v6005_v37  ;;  %v6045_v37 = vld [vmem:[%s7581_s1 + $0xb40] sm:$0xff]  }
 0x145   : > { %v3660_v23 = vadd.f32 %v5171_v18, %v7114_v45  ;;  %v5193_v28 = vadd.f32 %v5192_v26, %v5191_v21  ;;  %v5194_v29 = vpop.f32.mrb[10].mxu1  ;;  %5494 = vmatpush3.bf16.msra.mxu1 %v6004_v36  ;;  %v310_v45 = vpack.c.bf16 %v261_v44, %v261_v44  ;;  %v6032_v18 = vld [vmem:[%s7581_s1 + $0xaa0] sm:$0xff]   ;;  %v6036_v24 = vld [vmem:[%s7581_s1 + $0xaa8] sm:$0xff]   ;;  %v6038_v26 = vld [vmem:[%s7581_s1 + $0xa30] sm:$0xff]   ;;  %v313_v36 = vpack.c.bf16 %v264_v35, %v264_v35 }
 0x146   : > { %v5195_v31 = vpop.f32.mrb[11].mxu1  ;;  %5495 = vmatprep.subr.bf16.mxu1 %v6007_v39  ;;  %v6041_v29 = vld [vmem:[%s7581_s1 + $0xa78] sm:$0xff]   ;;  %v6048_v44 = vld [vmem:[%s7581_s1 + $0xb80] sm:$0xff]  }
 0x147   : > { %v7217_v33 = vadd.f32 %v5193_v28, %v3660_v23  ;;  %5474 = vmatpush3.bf16.msra.mxu0 %v6006_v38  ;;  %4217 = vmatprep.mubr.bf16.mxu0 %v310_v45  ;;  %v6035_v23 = vld [vmem:[%s7581_s1 + $0xae8] sm:$0xff]   ;;  %v6040_v28 = vld [vmem:[%s7581_s1 + $0xab0] sm:$0xff]   ;;  %v6043_v31 = vld [vmem:[%s7581_s1 + $0xaf8] sm:$0xff]  }
 0x148   : > { %5475 = vmatprep.subr.bf16.mxu0 %v6009_v41  ;;  %v267_v38 = vld [vmem:[%s6330_s25 + $0x158] sm:$0xff]  ;;  %v266_v41 = vld [vmem:[%s6330_s25 + $0x150] sm:$0xff]  ;;  %v6049_v45 = vld [vmem:[%s7581_s1 + $0xb48] sm:$0xff]  }
 0x149   : > { %5496 = vmatpush3.bf16.msra.mxu1 %v6008_v40  ;;  %v316_v39 = vpack.c.bf16 %v267_v38, %v267_v38  ;;  %v6046_v40 = vld [vmem:[%s7581_s1 + $0xb00] sm:$0xff]  }
 0x14a   : > { %5497 = vmatprep.subr.bf16.mxu1 %v6011_v43  ;;  %v6047_v43 = vld [vmem:[%s7581_s1 + $0xbc0] sm:$0xff]  }
 0x14b   : > { %5476 = vmatpush3.bf16.msra.mxu0 %v6010_v42  ;;  %v315_v42 = vpack.c.bf16 %v266_v41, %v266_v41 }
 0x14c   : > { %5505 = vmatprep.subr.bf16.mxu0 %v6013_v49  ;;  %v6053_v49 = vld [vmem:[%s7581_s1 + $0xb50] sm:$0xff]  }
 0x14d   : > { %5498 = vmatpush3.bf16.msra.mxu1 %v6012_v46  ;;  %v6050_v46 = vld [vmem:[%s7581_s1 + $0xb08] sm:$0xff]  }
 0x14e   : > { %4218 = vmatmul.mubr.bf16.vlgmr.msra.gmra.mrb[36].mxu0 %v309_v48  ;;  %5527 = vmatprep.subr.bf16.mxu1 %v6015_v55  ;;  %v6052_v48 = vld [vmem:[%s7581_s1 + $0xb88] sm:$0xff]   ;;  %v6058_v55 = vld [vmem:[%s7581_s1 + $0xb18] sm:$0xff]  }
 0x14f   : > { %5506 = vmatpush3.bf16.msra.mxu0 %v6014_v52  ;;  %v6056_v52 = vld [vmem:[%s7581_s1 + $0xb90] sm:$0xff]  }
 0x150   : > { %4258 = vmatmul.mubr.bf16.vlgmr.msra.gmra.mrb[36].mxu1 %v311_v54  ;;  %5507 = vmatprep.subr.bf16.mxu0 %v6017_v57  ;;  %v6059_v57 = vld [vmem:[%s7581_s1 + $0xbd8] sm:$0xff]  }
 0x151   : > { %5528 = vmatpush3.bf16.msra.mxu1 %v6016_v56  ;;  %4337 = vmatprep.mubr.bf16.mxu1 %v316_v39 }
 0x152   : > { %5529 = vmatprep.subr.bf16.mxu1 %v6019_v59 }
 0x153   : > { %5508 = vmatpush3.bf16.msra.mxu0 %v6018_v58 }
 0x154   : > { %5509 = vmatprep.subr.bf16.mxu0 %v6021_v61 }
 0x155   : > { %5530 = vmatpush3.bf16.msra.mxu1 %v6020_v60  ;;  %v6060_v60 = vld [vmem:[%s7581_s1 + $0xb98] sm:$0xff]  }
 0x156   : > { %5531 = vmatprep.subr.bf16.mxu1 %v6023_v63 }
 0x157   : > { %5510 = vmatpush3.bf16.msra.mxu0 %v6022_v62  ;;  %v6061_v62 = vld [vmem:[%s7581_s1 + $0xb60] sm:$0xff]  }
 0x158   : > { %5511 = vmatprep.subr.bf16.mxu0 %v6025_v1  ;;  %v6062_v1 = vld [vmem:[%s7581_s1 + $0xb20] sm:$0xff]  }
 0x159   : > { %5532 = vmatpush3.bf16.msra.mxu1 %v6024_v0 }
 0x15a   : > { %5533 = vmatprep.subr.bf16.mxu1 %v6027_v5 }
 0x15b   : > { %5512 = vmatpush3.bf16.msra.mxu0 %v6026_v3  ;;  %v6063_v3 = vld [vmem:[%s7581_s1 + $0xbe0] sm:$0xff]  }
 0x15c   : > { %5513 = vmatprep.subr.bf16.mxu0 %v6029_v10  ;;  %v6066_v10 = vld [vmem:[%s7581_s1 + $0xb28] sm:$0xff]  }
 0x15d   : > { %5534 = vmatpush3.bf16.msra.mxu1 %v6028_v8  ;;  %v6065_v8 = vld [vmem:[%s7581_s1 + $0xb68] sm:$0xff]  }
 0x15e   : > { %5535 = vmatprep.subr.bf16.mxu1 %v6031_v15  ;;  %v6071_v15 = vld [vmem:[%s7581_s1 + $0xbf0] sm:$0xff]  }
 0x15f   : > { %5514 = vmatpush3.bf16.msra.mxu0 %v6030_v13  ;;  %v6069_v13 = vld [vmem:[%s7581_s1 + $0xb70] sm:$0xff]  }
 0x160   : > { %5515 = vmatprep.subr.bf16.mxu0 %v6033_v20  ;;  %v269_v20 = vld [vmem:[%s6330_s25 + $0x168] sm:$0xff] }
 0x161   : > { %v5213_v2 = vpop.f32.mrb[12].mxu0  ;;  %5536 = vmatpush3.bf16.msra.mxu1 %v6032_v18  ;;  %v6074_v18 = vld [vmem:[%s7581_s1 + $0xb38] sm:$0xff]  }
 0x162   : > { %v5214_v4 = vpop.f32.mrb[13].mxu0  ;;  %5537 = vmatprep.subr.bf16.mxu1 %v6035_v23  ;;  %v268_v23 = vld [vmem:[%s6330_s25 + $0x160] sm:$0xff] }
 0x163   : > { %v5215_v6 = vadd.f32 %v5214_v4, %v5213_v2  ;;  %v5216_v7 = vpop.f32.mrb[14].mxu0  ;;  %v5235_v9 = vpop.f32.mrb[12].mxu1  ;;  %5516 = vmatpush3.bf16.msra.mxu0 %v6034_v22  ;;  %v6076_v22 = vld [vmem:[%s7581_s1 + $0xbb8] sm:$0xff]  }
 0x164   : > { %v5217_v12 = vpop.f32.mrb[15].mxu0  ;;  %v5236_v14 = vpop.f32.mrb[13].mxu1  ;;  %5517 = vmatprep.subr.bf16.mxu0 %v6037_v25  ;;  %v271_v25 = vld [vmem:[%s6330_s25 + $0x178] sm:$0xff] }
 0x165   : > { %v3740_v11 = vadd.f32 %v5215_v6, %v7217_v33  ;;  %v5237_v16 = vadd.f32 %v5236_v14, %v5235_v9  ;;  %v5238_v17 = vpop.f32.mrb[14].mxu1  ;;  %5538 = vmatpush3.bf16.msra.mxu1 %v6036_v24  ;;  %v314_v33 = vpack.c.bf16 %v265_v32, %v265_v32  ;;  %v6064_v6 = vld [vmem:[%s7581_s1 + $0xba0] sm:$0xff]   ;;  %v6068_v12 = vld [vmem:[%s7581_s1 + $0xba8] sm:$0xff]   ;;  %v6070_v14 = vld [vmem:[%s7581_s1 + $0xb30] sm:$0xff]   ;;  %v6157_v24 = vmov 0.0  }
 0x166   : > { %v5239_v19 = vpop.f32.mrb[15].mxu1  ;;  %5539 = vmatprep.subr.bf16.mxu1 %v6039_v27  ;;  %v6073_v17 = vld [vmem:[%s7581_s1 + $0xb78] sm:$0xff]   ;;  %v320_v27 = vpack.c.bf16 %v271_v25, %v271_v25  ;;  %v6079_v32 = vld [vmem:[%s7581_s1 + $0xc10] sm:$0xff]  }
 0x167   : > { %v7320_v21 = vadd.f32 %v5237_v16, %v3740_v11  ;;  %5518 = vmatpush3.bf16.msra.mxu0 %v6038_v26  ;;  %4297 = vmatprep.mubr.bf16.mxu0 %v314_v33  ;;  %v6067_v11 = vld [vmem:[%s7581_s1 + $0xbe8] sm:$0xff]   ;;  %v6072_v16 = vld [vmem:[%s7581_s1 + $0xbb0] sm:$0xff]   ;;  %v6075_v19 = vld [vmem:[%s7581_s1 + $0xbf8] sm:$0xff]   ;;  %v317_v26 = vpack.c.bf16 %v268_v23, %v268_v23 }
 0x168   : > { %5519 = vmatprep.subr.bf16.mxu0 %v6041_v29  ;;  %v270_v29 = vld [vmem:[%s6330_s25 + $0x170] sm:$0xff]  ;;  %v6080_v33 = vld [vmem:[%s7581_s1 + $0xc18] sm:$0xff]  }
 0x169   : > { %5540 = vmatpush3.bf16.msra.mxu1 %v6040_v28  ;;  %v6077_v28 = vld [vmem:[%s7581_s1 + $0xc00] sm:$0xff]  }
 0x16a   : > { %5541 = vmatprep.subr.bf16.mxu1 %v6043_v31  ;;  %v6078_v31 = vld [vmem:[%s7581_s1 + $0xc08] sm:$0xff]  }
 0x16b   : > { %5520 = vmatpush3.bf16.msra.mxu0 %v6042_v30  ;;  %v319_v30 = vpack.c.bf16 %v270_v29, %v270_v29 }
 0x16c   : > { %5549 = vmatprep.subr.bf16.mxu0 %v6045_v37 }
 0x16d   : > { %5542 = vmatpush3.bf16.msra.mxu1 %v6044_v34 }
 0x16e   : > { %4298 = vmatmul.mubr.bf16.vlgmr.msra.gmra.mrb[40].mxu0 %v313_v36  ;;  %5571 = vmatprep.subr.bf16.mxu1 %v6047_v43  ;;  %v6081_v36 = vld [vmem:[%s7581_s1 + $0xc20] sm:$0xff]  }
 0x16f   : > { %5550 = vmatpush3.bf16.msra.mxu0 %v6046_v40 }
 0x170   : > { %4338 = vmatmul.mubr.bf16.vlgmr.msra.gmra.mrb[40].mxu1 %v315_v42  ;;  %5551 = vmatprep.subr.bf16.mxu0 %v6049_v45 }
 0x171   : > { %5572 = vmatpush3.bf16.msra.mxu1 %v6048_v44  ;;  %4417 = vmatprep.mubr.bf16.mxu1 %v320_v27 }
 0x172   : > { %5573 = vmatprep.subr.bf16.mxu1 %v6051_v47 }
 0x173   : > { %5552 = vmatpush3.bf16.msra.mxu0 %v6050_v46  ;;  %v6082_v46 = vld [vmem:[%s7581_s1 + $0xc28] sm:$0xff]  }
 0x174   : > { %5553 = vmatprep.subr.bf16.mxu0 %v6053_v49  ;;  %v6084_v49 = vld [vmem:[%s7581_s1 + $0xc38] sm:$0xff]  }
 0x175   : > { %5574 = vmatpush3.bf16.msra.mxu1 %v6052_v48  ;;  %v6083_v48 = vld [vmem:[%s7581_s1 + $0xc30] sm:$0xff]  }
 0x176   : > { %5575 = vmatprep.subr.bf16.mxu1 %v6055_v51 }
 0x177   : > { %5554 = vmatpush3.bf16.msra.mxu0 %v6054_v50  ;;  %v272_v50 = vld [vmem:[%s6330_s25 + $0x180] sm:$0xff]  ;;  %s215_s25 = sand.u32 1, %s6147_s19  }
 0x178   : > { %5555 = vmatprep.subr.bf16.mxu0 %v6057_v53  ;;  %v321_v51 = vpack.c.bf16 %v272_v50, %v272_v50  ;;  %s4657_s12 = sshll.u32 %s215_s25, 3  ;;  %s4581_s22 = scalar_lea.sflag [#allocation3], %s215_s25 }
 0x179   : > { %5576 = vmatpush3.bf16.msra.mxu1 %v6056_v52  ;;  %s217_s17 = scalar_lea.vmem [#allocation2], %s4657_s12 }
 0x17a   : > { %5577 = vmatprep.subr.bf16.mxu1 %v6059_v57  ;;  %s4594_s15 = sshll.u32 %s217_s17, 4  ;;  %s7540_s15 = int_to_ptr.vmem [resolvable:$true] %s4594_s15 }
 0x17b   : > { %5556 = vmatpush3.bf16.msra.mxu0 %v6058_v55  ;;  %s6093_s6 = scalar_lea.vmem %s7540_s15, 128  ;;  %p6100_p0 = scmp.lt.s32.totalorder %s7540_s15, %s6098_s8 }
 0x17c   : > { %5557 = vmatprep.subr.bf16.mxu0 %v6061_v62  ;;  %p6094_p11 = scmp.ne.s32.totalorder %s7540_s15, %s6093_s6  ;;  %p6101_p1 = scmp.lt.s32.totalorder %s6099_s9, %s6093_s6 }
 0x17d   : > { %5578 = vmatpush3.bf16.msra.mxu1 %v6060_v60 }
 0x17e   : > { %5579 = vmatprep.subr.bf16.mxu1 %v6063_v3  ;;  %p6095_p12 = pnand %p6094_p11, %p6228_p5  ;;  %p6102_p2 = por %p6101_p1, %p6100_p0 }
 0x17f   : > { %5558 = vmatpush3.bf16.msra.mxu0 %v6062_v1 }
 0x180   : > { %5559 = vmatprep.subr.bf16.mxu0 %v6065_v8  ;;  %p6096_p13 = pneg %p6095_p12 }
 0x181   : > { %v5257_v54 = vpop.f32.mrb[16].mxu0  ;;  %5580 = vmatpush3.bf16.msra.mxu1 %v6064_v6 }
 0x182   : > { %v5258_v56 = vpop.f32.mrb[17].mxu0  ;;  %5581 = vmatprep.subr.bf16.mxu1 %v6067_v11  ;;  %p6103_p3 = pnand %p6102_p2, %p6096_p13 }
 0x183   : > { %v5259_v58 = vadd.f32 %v5258_v56, %v5257_v54  ;;  %v5260_v59 = vpop.f32.mrb[18].mxu0  ;;  %v5279_v61 = vpop.f32.mrb[16].mxu1  ;;  %5560 = vmatpush3.bf16.msra.mxu0 %v6066_v10 }
 0x184   : > { %v5261_v0 = vpop.f32.mrb[19].mxu0  ;;  %v5280_v2 = vpop.f32.mrb[17].mxu1  ;;  %5561 = vmatprep.subr.bf16.mxu0 %v6069_v13  ;;  %v6086_v13 = vld [vmem:[%s7583_s3 + $0x8] sm:$0xff]  }
 0x185   : > { %v3820_v63 = vadd.f32 %v5259_v58, %v7320_v21  ;;  %v5281_v4 = vadd.f32 %v5280_v2, %v5279_v61  ;;  %v5282_v5 = vpop.f32.mrb[18].mxu1  ;;  %5582 = vmatpush3.bf16.msra.mxu1 %v6068_v12  ;;  %v318_v21 = vpack.c.bf16 %v269_v20, %v269_v20  ;;  %v6085_v12 = vld [vmem:[%s7583_s3] sm:$0xff]  }
 0x186   : > { %v5283_v7 = vpop.f32.mrb[19].mxu1  ;;  %5583 = vmatprep.subr.bf16.mxu1 %v6071_v15  ;;  %v6088_v15 = vld [vmem:[%s7583_s3 + $0x18] sm:$0xff]  }
 0x187   : > { %v7423_v9 = vadd.f32 %v5281_v4, %v3820_v63  ;;  %5562 = vmatpush3.bf16.msra.mxu0 %v6070_v14  ;;  %4377 = vmatprep.mubr.bf16.mxu0 %v318_v21  ;;  %v6087_v14 = vld [vmem:[%s7583_s3 + $0x10] sm:$0xff]  }
 0x188   : > { %5563 = vmatprep.subr.bf16.mxu0 %v6073_v17  ;;  %v6090_v17 = vld [vmem:[%s7583_s3 + $0x28] sm:$0xff]  }
 0x189   : > { %5584 = vmatpush3.bf16.msra.mxu1 %v6072_v16  ;;  %v6089_v16 = vld [vmem:[%s7583_s3 + $0x20] sm:$0xff]  }
 0x18a   : > { %5585 = vmatprep.subr.bf16.mxu1 %v6075_v19 }
 0x18b   : > { %5564 = vmatpush3.bf16.msra.mxu0 %v6074_v18 }
 0x18c   : > { %5611 = vmatprep.subr.bf16.mxu0 %v6157_v24 }
 0x18d   : > { %5586 = vmatpush3.bf16.msra.mxu1 %v6076_v22  ;;  %v6091_v22 = vld [vmem:[%s7583_s3 + $0x30] sm:$0xff]  }
 0x18e   : > { %4378 = vmatmul.mubr.bf16.vlgmr.msra.gmra.mrb[44].mxu0 %v317_v26  ;;  %5631 = vmatprep.subr.bf16.mxu1 %v6157_v24 }
 0x18f   : > { %5612 = vmatpush3.bf16.msra.mxu0 %v6077_v28  ;;  %5627 = vmatprep.mubr.msk.bf16.mxu0 %vm6158_vm0, %v6157_v24 }
 0x190   : > { %4418 = vmatmul.mubr.bf16.vlgmr.msra.gmra.mrb[44].mxu1 %v319_v30  ;;  %5613 = vmatprep.subr.bf16.mxu0 %v6157_v24 }
 0x191   : > { %5647 = vmatprep.mubr.msk.bf16.mxu1 %vm6158_vm0, %v6157_v24  ;;  %5632 = vmatpush3.bf16.msra.mxu1 %v6085_v12 }
 0x192   : > { %5633 = vmatprep.subr.bf16.mxu1 %v6157_v24 }
 0x193   : > { %5614 = vmatpush3.bf16.msra.mxu0 %v6078_v31  ;;  %v6092_v31 = vld [vmem:[%s7583_s3 + $0x38] sm:$0xff]  }
 0x194   : > { %5615 = vmatprep.subr.bf16.mxu0 %v6157_v24 }
 0x195   : > { %5634 = vmatpush3.bf16.msra.mxu1 %v6086_v13 }
 0x196   : > { %5635 = vmatprep.subr.bf16.mxu1 %v6157_v24 }
 0x197   : > { %5616 = vmatpush3.bf16.msra.mxu0 %v6079_v32 }
 0x198   : > { %5617 = vmatprep.subr.bf16.mxu0 %v6157_v24 }
 0x199   : > { %5636 = vmatpush3.bf16.msra.mxu1 %v6087_v14 }
 0x19a   : > { %5637 = vmatprep.subr.bf16.mxu1 %v6157_v24 }
 0x19b   : > { %5618 = vmatpush3.bf16.msra.mxu0 %v6080_v33 }
 0x19c   : > { %5619 = vmatprep.subr.bf16.mxu0 %v6157_v24 }
 0x19d   : > { %5638 = vmatpush3.bf16.msra.mxu1 %v6088_v15 }
 0x19e   : > { %5639 = vmatprep.subr.bf16.mxu1 %v6157_v24 }
 0x19f   : > { %5620 = vmatpush3.bf16.msra.mxu0 %v6081_v36 }
 0x1a0   : > { %5621 = vmatprep.subr.bf16.mxu0 %v6157_v24 }
 0x1a1   : > { %v5301_v34 = vpop.f32.mrb[20].mxu0  ;;  %5640 = vmatpush3.bf16.msra.mxu1 %v6089_v16 }
 0x1a2   : > { %v5302_v35 = vpop.f32.mrb[21].mxu0  ;;  %5641 = vmatprep.subr.bf16.mxu1 %v6157_v24 }
 0x1a3   : > { %v5303_v37 = vadd.f32 %v5302_v35, %v5301_v34  ;;  %v5304_v38 = vpop.f32.mrb[22].mxu0  ;;  %v5323_v39 = vpop.f32.mrb[20].mxu1  ;;  %5622 = vmatpush3.bf16.msra.mxu0 %v6082_v46 }
 0x1a4   : > { %v5305_v40 = vpop.f32.mrb[23].mxu0  ;;  %v5324_v41 = vpop.f32.mrb[21].mxu1  ;;  %5623 = vmatprep.subr.bf16.mxu0 %v6157_v24 }
 0x1a5   : > { %v3900_v42 = vadd.f32 %v5303_v37, %v7423_v9  ;;  %v5325_v43 = vadd.f32 %v5324_v41, %v5323_v39  ;;  %v5326_v44 = vpop.f32.mrb[22].mxu1  ;;  %5642 = vmatpush3.bf16.msra.mxu1 %v6090_v17 }
 0x1a6   : > { %v5327_v45 = vpop.f32.mrb[23].mxu1  ;;  %5643 = vmatprep.subr.bf16.mxu1 %v6157_v24 }
 0x1a7   : > { %v3940_v47 = vadd.f32 %v5325_v43, %v3900_v42  ;;  %5624 = vmatpush3.bf16.msra.mxu0 %v6083_v48 }
 0x1a8   : > { %5625 = vmatprep.subr.bf16.mxu0 %v6157_v24 }
 0x1a9   : > { %5644 = vmatpush3.bf16.msra.mxu1 %v6091_v22 }
 0x1aa   : > { %5645 = vmatprep.subr.bf16.mxu1 %v6157_v24 }
 0x1ab   : > { %5626 = vmatpush3.bf16.msra.mxu0 %v6084_v49 }
 0x1ad   : > { %5646 = vmatpush3.bf16.msra.mxu1 %v6092_v31 }
 0x1ae   : > { %5628 = vmatmul.mubr.bf16.vlgmr.msra.gmra.mrb[48].mxu0 %v321_v51 }
 0x1c1   : > { %v5345_v52 = vpop.f32.mrb[24].mxu0 }
 0x1c2   : > { %v5346_v53 = vpop.f32.mrb[25].mxu0 }
 0x1c3   : > { %v5347_v54 = vadd.f32 %v5346_v53, %v5345_v52  ;;  %v5348_v55 = vpop.f32.mrb[26].mxu0  ;;  %v5367_v56 = vpop.f32.mrb[24].mxu1 }
 0x1c4   : > { %v5349_v57 = vpop.f32.mrb[27].mxu0  ;;  %v5368_v59 = vpop.f32.mrb[25].mxu1 }
 0x1c5   : > { %v3980_v58 = vadd.f32 %v5347_v54, %v3940_v47  ;;  %v5369_v60 = vadd.f32 %v5368_v59, %v5367_v56  ;;  %v5370_v61 = vpop.f32.mrb[26].mxu1 }
 0x1c6   : > { %v5371_v62 = vpop.f32.mrb[27].mxu1 }
 0x1c7   : > { %v4020_v63 = vadd.f32 %v5369_v60, %v3980_v58 }
 0x1e1   : > { %v5389_v0 = vpop.f32.mrb[28].mxu0 }
 0x1e2   : > { %v5390_v1 = vpop.f32.mrb[29].mxu0 }
 0x1e3   : > { %v5391_v2 = vadd.f32 %v5390_v1, %v5389_v0  ;;  %v5392_v3 = vpop.f32.mrb[30].mxu0  ;;  %v5411_v4 = vpop.f32.mrb[28].mxu1 }
 0x1e4   : > { %v5393_v5 = vpop.f32.mrb[31].mxu0  ;;  %v5412_v6 = vpop.f32.mrb[29].mxu1 }
 0x1e5   : > { %v4060_v7 = vadd.f32 %v5391_v2, %v4020_v63  ;;  %v5413_v8 = vadd.f32 %v5412_v6, %v5411_v4  ;;  %v5414_v9 = vpop.f32.mrb[30].mxu1 }
 0x1e6   : > { %v5415_v10 = vpop.f32.mrb[31].mxu1 }
 0x1e7   : > { %v4100_v11 = vadd.f32 %v5413_v8, %v4060_v7 }
 0x201   : > { %v5433_v18 = vpop.f32.mrb[32].mxu0 }
 0x202   : > { %v5434_v19 = vpop.f32.mrb[33].mxu0 }
 0x203   : > { %v5435_v20 = vadd.f32 %v5434_v19, %v5433_v18  ;;  %v5436_v21 = vpop.f32.mrb[34].mxu0  ;;  %v5455_v23 = vpop.f32.mrb[32].mxu1 }
 0x204   : > { %v5437_v25 = vpop.f32.mrb[35].mxu0  ;;  %v5456_v27 = vpop.f32.mrb[33].mxu1 }
 0x205   : > { %v4140_v26 = vadd.f32 %v5435_v20, %v4100_v11  ;;  %v5457_v28 = vadd.f32 %v5456_v27, %v5455_v23  ;;  %v5458_v29 = vpop.f32.mrb[34].mxu1  ;;  %v5052_v11 = vld [vmem:[%s7584_s4] ss:$0 sm:$0xff] }
 0x206   : > { %v5459_v30 = vpop.f32.mrb[35].mxu1 }
 0x207   : > { %v4180_v32 = vadd.f32 %v5457_v28, %v4140_v26 }
 0x221   : > { %v5477_v33 = vpop.f32.mrb[36].mxu0 }
 0x222   : > { %v5478_v34 = vpop.f32.mrb[37].mxu0 }
 0x223   : > { %v5479_v35 = vadd.f32 %v5478_v34, %v5477_v33  ;;  %v5480_v36 = vpop.f32.mrb[38].mxu0  ;;  %v5499_v37 = vpop.f32.mrb[36].mxu1 }
 0x224   : > { %v5481_v38 = vpop.f32.mrb[39].mxu0  ;;  %v5500_v40 = vpop.f32.mrb[37].mxu1 }
 0x225   : > { %v4220_v39 = vadd.f32 %v5479_v35, %v4180_v32  ;;  %v5501_v41 = vadd.f32 %v5500_v40, %v5499_v37  ;;  %v5502_v42 = vpop.f32.mrb[38].mxu1 }
 0x226   : > { %v5503_v43 = vpop.f32.mrb[39].mxu1 }
 0x227   : > { %v4260_v44 = vadd.f32 %v5501_v41, %v4220_v39 }
 0x241   : > { %v5521_v24 = vpop.f32.mrb[40].mxu0 }
 0x242   : > { %v5522_v45 = vpop.f32.mrb[41].mxu0 }
 0x243   : > { %v5523_v46 = vadd.f32 %v5522_v45, %v5521_v24  ;;  %v5524_v47 = vpop.f32.mrb[42].mxu0  ;;  %v5543_v48 = vpop.f32.mrb[40].mxu1 }
 0x244   : > { %v5525_v49 = vpop.f32.mrb[43].mxu0  ;;  %v5544_v50 = vpop.f32.mrb[41].mxu1 }
 0x245   : > { %v4300_v51 = vadd.f32 %v5523_v46, %v4260_v44  ;;  %v5545_v52 = vadd.f32 %v5544_v50, %v5543_v48  ;;  %v5546_v53 = vpop.f32.mrb[42].mxu1 }
 0x246   : > { %v5547_v54 = vpop.f32.mrb[43].mxu1 }
 0x247   : > { %v4340_v55 = vadd.f32 %v5545_v52, %v4300_v51 }
 0x261   : > { %v5565_v56 = vpop.f32.mrb[44].mxu0 }
 0x262   : > { %v5566_v57 = vpop.f32.mrb[45].mxu0 }
 0x263   : > { %v5567_v58 = vadd.f32 %v5566_v57, %v5565_v56  ;;  %v5568_v59 = vpop.f32.mrb[46].mxu0  ;;  %v5587_v60 = vpop.f32.mrb[44].mxu1 }
 0x264   : > { %v5569_v61 = vpop.f32.mrb[47].mxu0  ;;  %v5588_v62 = vpop.f32.mrb[45].mxu1 }
 0x265   : > { %v4380_v63 = vadd.f32 %v5567_v58, %v4340_v55  ;;  %v5589_v0 = vadd.f32 %v5588_v62, %v5587_v60  ;;  %v5590_v1 = vpop.f32.mrb[46].mxu1 }
 0x266   : > { %v5591_v2 = vpop.f32.mrb[47].mxu1 }
 0x267   : > { %v4420_v3 = vadd.f32 %v5589_v0, %v4380_v63 }
 0x281   : > { %v4459_v4 = vpop.f32.mrb[48].mxu0 }
 0x282   : > { %v4460_v5 = vadd.f32 %v4459_v4, %v4420_v3  ;;  %v5629_v6 = vpop.f32.mrb[49].mxu0 }
 0x283   : > { %v4462_v7 = vpop.f32.mrb[50].mxu0 }
 0x284   : > { %v4465_v8 = vmax.f32 %v4460_v5, 0.0  ;;  %v5630_v9 = vpop.f32.mrb[51].mxu0 }
 0x286   : > { %v4466_v10 = vpack.c.bf16 %v4465_v8, %v4465_v8 }
 0x288   : > { %5648 = vmatmul.mubr.bf16.vlgmr.msra.gmra.mrb[48].mxu1 %v4466_v10 }
 0x35b   : > { %v4572_v12 = vpop.f32.mrb[48].mxu1 }
 0x35c   : > { %v4573_v13 = vadd.f32 %v5052_v11, %v4572_v12  ;;  %v5649_v14 = vpop.f32.mrb[49].mxu1 }
 0x35d   : > { %v4575_v15 = vpop.f32.mrb[50].mxu1 }
 0x35e   : > { %v5650_v16 = vpop.f32.mrb[51].mxu1  ;;  %4579 = vst.msk [vmem:[%s217_s17] sm:$0xff] %vm4578_vm1, %v4573_v13 }
 0x35f   : > { %6106 = shalt.err (!%p6103_p3)
}
 0x360   : > { %s6107_s10 = scalar_lea.hbm %s7538_s30, 128  ;;  %s6111_s12 = scalar_lea.hbm %s7585_s5, 256 }
 0x361   : > { %p6108_p4 = scmp.ne.s32.totalorder %s7538_s30, %s6107_s10  ;;  %p6112_p9 = scmp.lt.u32.totalorder %s7538_s30, %s7585_s5 }
 0x362   : > { %p6113_p10 = scmp.lt.u32.totalorder %s6111_s12, %s6107_s10  ;;  %p6115_p12 = scmp.lt.u32.totalorder %s6107_s10, %s7538_s30 }
 0x363   : > { %p6109_p7 = pnand %p6108_p4, %p6228_p5 }
 0x364   : > { %p6114_p11 = por %p6113_p10, %p6112_p9 }
 0x365   : > { %p6110_p8 = pneg %p6109_p7 }
 0x366   : > { %p6116_p13 = por %p6115_p12, %p6114_p11 }
 0x368   : > { %p6117_p0 = pnand %p6116_p13, %p6110_p8 }
 0x36a   : > { %6120 = shalt.err (!%p6117_p0)
}
 0x36b   : > { %5652 = dma.vmem_to_hbm [thread:$0]  (%p6228_p5), %s7540_s15, 128, %s7538_s30, %s4581_s22  }
 0x36c PF: > { %p5658_p1 = scmp.ge.s32.totalorder %s6155_s21, 2  ;;  %s4606_s16 = sand.u32 1, %s6143_s18  }
 0x36d   : > { %s4607_s17 = scalar_lea.sflag [#allocation3], %s4606_s16 }
 0x36e   : > { %p5655_p2 = pnand %p5658_p1, %p6232_p6 }
 0x370   : > { %6138 = dma.done.wait (!%p5655_p2), %s4607_s17, 128  }
 0x371   : > { %6140 = vsyncadd (!%p5655_p2), %s4607_s17, 4294967168  ;;  %p15_p3 = scmp.ge.s32.totalorder %s6215_s24, 4   ;;  %s7588_s18 = smov %s6147_s19 }
 0x372   : > { %s7589_s19 = smov %s6151_s20  ;;  %s7590_s20 = smov %s6226_s27 }
 0x373   : > { %s7591_s21 = smov %s6215_s24  ;;  %17 = sbr.rel (!%p15_p3) target bundleno = 3 (0x3), region = 75 }
 0x37a   :  { %4612 = vsyncpa [#allocation3], 1 }
 0x37b   :  { %4614 = vsyncpa [#allocation3 + $0x1], 1 }

</bundles_post_ra>
